<compile_context>
chip_gen: v7x
topology: tpu7x:2x2x1
jax: 0.10.0
libtpu: 0.0.40
codegen_flags: <defaults>
</compile_context>

<pallas_src>
import jax
import jax.numpy as jnp
import numpy as np
from jax.experimental import pallas as pl
from jax.experimental.pallas import tpu as pltpu


# --------------------------------------------------------------------------- #
# build_grid (identical to the PyTorch helper)
# --------------------------------------------------------------------------- #
def build_grid(resolution):
    ranges = [np.linspace(0.0, 1.0, num=res) for res in resolution]
    grid = np.meshgrid(*ranges, sparse=False, indexing="ij")
    grid = np.stack(grid, axis=-1)
    grid = np.reshape(grid, [resolution[0], resolution[1], -1])
    grid = np.expand_dims(grid, axis=0)
    grid = grid.astype(np.float32)
    return np.concatenate([grid, 1.0 - grid], axis=-1)  # (1, H, W, 4)


# conv3 tap bookkeeping: kernel offset kh in 0..3 reads conv2-output row
# 2i+kh-1, which lives in parity sub-grid _PAR[kh] at sub-grid row i+_DI[kh].
_DI = (-1, 0, 0, 1)
_PAR = (1, 0, 1, 0)


# --------------------------------------------------------------------------- #
# Pallas kernel A: conv1 as a lane-dense GEMM (grouped im2col, bf16 in & out)
#   patches : (B*256, 192) bf16   (4 output pixels per row, K = 4*48)
#   w       : (192, 128)   bf16   (block-diagonal expansion of the (48,32) weight)
#   out     : (B*256, 128) bf16   == NHWC (B,32,32,32), lane-dense stores
# --------------------------------------------------------------------------- #
def _conv1_kernel(p_ref, w_ref, b_ref, o_ref):
    acc = jnp.dot(p_ref[...], w_ref[...], preferred_element_type=jnp.float32)
    o_ref[...] = jnp.maximum(acc + b_ref[...], 0.0).astype(o_ref.dtype)


def conv1_gemm(patches, w, b):
    M, K = patches.shape
    N = w.shape[1]
    tm = 256  # one example per grid step -> B parallel steps (>=2 for v7x)
    return pl.pallas_call(
        _conv1_kernel,
        out_shape=jax.ShapeDtypeStruct((M, N), jnp.bfloat16),
        grid=(M // tm,),
        in_specs=[
            pl.BlockSpec((tm, K), lambda i: (i, 0)),
            pl.BlockSpec((K, N), lambda i: (0, 0)),
            pl.BlockSpec((1, N), lambda i: (0, 0)),
        ],
        out_specs=pl.BlockSpec((tm, N), lambda i: (i, 0)),
        compiler_params=pltpu.CompilerParams(dimension_semantics=("parallel",)),
    )(patches, w, b)


# --------------------------------------------------------------------------- #
# Pallas kernel B: fused conv2 + conv3 + SoftPositionEmbed + LayerNorm + MLP.
#   p2  : (B, 256, 512) bf16  conv2 im2col patches, rows ordered (parity s, m, n)
#   out : (B, 64, S)    f32
# Per example everything stays in VMEM: y2 (256,64) f32 -> parity sub-grids in a
# zero-ringed scratch -> 16 shifted (64,64)@(64,128) taps for conv3 -> head.
# --------------------------------------------------------------------------- #
def _conv23_head_kernel(p2_ref, w2_ref, b2_ref, w3_ref, b3_ref, pos_ref,
                        g_ref, be_ref, w1_ref, b1_ref, w2h_ref, b2h_ref,
                        o_ref, sg_ref):
    # conv2: single big-K (512) matmul, f32 accumulation, bias+ReLU in f32.
    y2 = jnp.dot(p2_ref[0], w2_ref[...], preferred_element_type=jnp.float32)
    y2 = jnp.maximum(y2 + b2_ref[...], 0.0)                       # (256, 64) f32

    # Scatter the four parity sub-grids into a zero-ringed scratch:
    #   sg[s, 1+m, 1+n, :] = conv2 output pixel (2m + s//2, 2n + s%2).
    sg_ref[...] = jnp.zeros_like(sg_ref)
    y2 = y2.reshape(4, 8, 8, 64)
    for s in range(4):
        sg_ref[s, 1:9, 1:9, :] = y2[s]

    # conv3: 16 shifted taps; every slice is full-lane-width and unstrided
    # (only sublane start offsets 0..2), each tap is one MXU dot.
    acc = jnp.zeros((64, 128), jnp.float32)
    for kh in range(4):
        for kw in range(4):
            s = _PAR[kh] * 2 + _PAR[kw]
            di, dj = _DI[kh], _DI[kw]
            lhs = sg_ref[s, 1 + di:9 + di, 1 + dj:9 + dj, :].reshape(64, 64)
            acc = acc + jnp.dot(lhs.astype(jnp.bfloat16), w3_ref[kh * 4 + kw],
                                preferred_element_type=jnp.float32)
    y3 = jnp.maximum(acc + b3_ref[...], 0.0)                      # (64, 128) f32

    # SoftPositionEmbed (pos = grid @ Wp + bp hoisted outside) + LayerNorm + MLP.
    h = y3 + pos_ref[...]
    mu = jnp.mean(h, axis=-1, keepdims=True)
    var = jnp.mean((h - mu) * (h - mu), axis=-1, keepdims=True)
    hn = (h - mu) * jax.lax.rsqrt(var + 1e-5) * g_ref[...] + be_ref[...]
    h1 = jnp.maximum(
        jnp.dot(hn.astype(jnp.bfloat16), w1_ref[...],
                preferred_element_type=jnp.float32) + b1_ref[...], 0.0)
    o_ref[0] = jnp.dot(h1.astype(jnp.bfloat16), w2h_ref[...],
                       preferred_element_type=jnp.float32) + b2h_ref[...]


def conv23_head(p2, kp):
    B = p2.shape[0]
    S = kp["w2"].shape[1]
    return pl.pallas_call(
        _conv23_head_kernel,
        out_shape=jax.ShapeDtypeStruct((B, 64, S), jnp.float32),
        grid=(B,),
        in_specs=[
            pl.BlockSpec((1, 256, 512), lambda b: (b, 0, 0)),
            pl.BlockSpec((512, 64), lambda b: (0, 0)),
            pl.BlockSpec((1, 64), lambda b: (0, 0)),
            pl.BlockSpec((16, 64, 128), lambda b: (0, 0, 0)),
            pl.BlockSpec((1, 128), lambda b: (0, 0)),
            pl.BlockSpec((64, 128), lambda b: (0, 0)),
            pl.BlockSpec((1, 128), lambda b: (0, 0)),
            pl.BlockSpec((1, 128), lambda b: (0, 0)),
            pl.BlockSpec((128, 128), lambda b: (0, 0)),
            pl.BlockSpec((1, 128), lambda b: (0, 0)),
            pl.BlockSpec((128, S), lambda b: (0, 0)),
            pl.BlockSpec((1, S), lambda b: (0, 0)),
        ],
        out_specs=pl.BlockSpec((1, 64, S), lambda b: (b, 0, 0)),
        scratch_shapes=[pltpu.VMEM((4, 10, 16, 64), jnp.float32)],
        compiler_params=pltpu.CompilerParams(dimension_semantics=("parallel",)),
    )(p2, kp["c2_w"], kp["c2_b"], kp["c3_w"], kp["c3_b"], kp["pos"],
      kp["ln_g"], kp["ln_b"], kp["w1"], kp["b1"], kp["w2"], kp["b2"])


# --------------------------------------------------------------------------- #
# XLA glue: im2col for conv1 and parity-ordered im2col patches for conv2.
# --------------------------------------------------------------------------- #
def im2col(x_nhwc, k=4, s=2, p=1):
    B, H, W, C = x_nhwc.shape
    Ho = (H + 2 * p - k) // s + 1
    Wo = (W + 2 * p - k) // s + 1
    xp = jnp.pad(x_nhwc, ((0, 0), (p, p), (p, p), (0, 0)))
    cols = []
    for kh in range(k):
        for kw in range(k):
            cols.append(xp[:, kh:kh + s * Ho:s, kw:kw + s * Wo:s, :])  # (B,Ho,Wo,C)
    patches = jnp.stack(cols, axis=3)                 # (B, Ho, Wo, k*k, C)
    return patches.reshape(B * Ho * Wo, k * k * C), Ho, Wo


def conv2_patches(x1):
    """conv2 im2col patches from conv1 output (B,32,32,32), K=512, with rows
    ordered (parity class s = (p%2)*2 + q%2, m = p//2, n = q//2) so conv2's
    result inside kernel B is directly the four space-to-depth sub-grids."""
    B = x1.shape[0]
    xp = jnp.pad(x1, ((0, 0), (1, 1), (1, 1), (0, 0)))           # (B,34,34,32)
    cols = []
    for kh in range(4):
        for kw in range(4):
            cols.append(xp[:, kh:kh + 32:2, kw:kw + 32:2, :])    # (B,16,16,32)
    pt = jnp.stack(cols, axis=3).reshape(B, 16, 16, 512)         # cols = (kh,kw,cin)
    pt = pt.reshape(B, 8, 2, 8, 2, 512).transpose(0, 2, 4, 1, 3, 5)  # (B,a,c,m,n,K)
    return pt.reshape(B, 256, 512)


# --------------------------------------------------------------------------- #
# Parameters (deterministic, synthetic) + one-time kernel-layout preparation
# --------------------------------------------------------------------------- #
def init_params(key, slot_dim=64):
    keys = jax.random.split(key, 16)
    p = {}
    # conv weights stored in im2col layout (kH*kW*Cin, Cout), row order (kh, kw, cin)
    conv_dims = [(3, 32), (32, 64), (64, 128)]
    for i, (cin, cout) in enumerate(conv_dims):
        p[f"conv{i}_w"] = 0.05 * jax.random.normal(keys[2 * i], (16 * cin, cout), jnp.float32)
        p[f"conv{i}_b"] = 0.05 * jax.random.normal(keys[2 * i + 1], (1, cout), jnp.float32)
    p["wp"] = 0.1 * jax.random.normal(keys[6], (4, 128), jnp.float32)
    p["bp"] = 0.1 * jax.random.normal(keys[7], (1, 128), jnp.float32)
    p["ln_g"] = jnp.ones((1, 128), jnp.float32) + 0.01 * jax.random.normal(keys[8], (1, 128))
    p["ln_b"] = 0.01 * jax.random.normal(keys[9], (1, 128), jnp.float32)
    p["w1"] = 0.1 * jax.random.normal(keys[10], (128, 128), jnp.float32)
    p["b1"] = 0.1 * jax.random.normal(keys[11], (1, 128), jnp.float32)
    p["w2"] = 0.1 * jax.random.normal(keys[12], (128, slot_dim), jnp.float32)
    p["b2"] = 0.1 * jax.random.normal(keys[13], (1, slot_dim), jnp.float32)
    return p


def prepare_params(params, grid2d):
    """One-time re-layout of the base parameters into kernel-ready form."""
    bf16 = jnp.bfloat16
    kp = {}
    # conv1: block-diagonal (192,128) weight -> 4 output pixels per lane-dense GEMM row
    w0 = params["conv0_w"]                                           # (48, 32)
    eye4 = jnp.eye(4, dtype=jnp.float32)
    kp["c1_w"] = (eye4[:, None, :, None] * w0[None, :, None, :]).reshape(192, 128).astype(bf16)
    kp["c1_b"] = jnp.tile(params["conv0_b"], (1, 4))                 # (1, 128) f32
    # conv2: full im2col weight (K=512) for the single big-K matmul
    kp["c2_w"] = params["conv1_w"].astype(bf16)                      # (512, 64)
    kp["c2_b"] = params["conv1_b"]                                   # (1, 64)  f32
    # conv3: one (64,128) weight slab per (kh,kw) tap
    kp["c3_w"] = params["conv2_w"].reshape(16, 64, 128).astype(bf16)
    kp["c3_b"] = params["conv2_b"]                                   # (1, 128) f32
    # head: positional embedding hoisted; matmul weights bf16, biases/LN f32
    kp["pos"] = grid2d @ params["wp"] + params["bp"]                 # (64, 128) f32
    kp["ln_g"] = params["ln_g"]
    kp["ln_b"] = params["ln_b"]
    kp["w1"] = params["w1"].astype(bf16)
    kp["b1"] = params["b1"]
    kp["w2"] = params["w2"].astype(bf16)
    kp["b2"] = params["b2"]
    return kp


# --------------------------------------------------------------------------- #
# Full Encoder forward (2 Pallas kernels; conv2+conv3+head fully fused)
# --------------------------------------------------------------------------- #
@jax.jit
def encoder_forward(x_nchw, kp):
    B = x_nchw.shape[0]
    x = jnp.transpose(x_nchw, (0, 2, 3, 1)).astype(jnp.bfloat16)  # NHWC (B,64,64,3)
    # conv1: grouped im2col (K=192) -> lane-dense Pallas GEMM, bf16 output
    patches, _, _ = im2col(x, k=4, s=2, p=1)                  # (B*1024, 48)
    p1 = patches.reshape(-1, 192)                             # (B*256, 192) bf16
    y1 = conv1_gemm(p1, kp["c1_w"], kp["c1_b"])               # (B*256, 128) bf16
    x1 = y1.reshape(B, 32, 32, 32)                            # NHWC conv1 output
    # conv2 + conv3 + SoftPositionEmbed + LayerNorm + MLP, fully fused in Pallas
    p2 = conv2_patches(x1)                                    # (B, 256, 512) bf16
    return conv23_head(p2, kp)                                # (B, 64, slot_dim)


# Pure-JAX reference of the PyTorch Encoder forward.  Matmul operands are cast to
# bf16 (f32 accumulation) to match the Pallas kernels' MXU precision; everything
# else is f32, identical to the reference module's math.
def _bf16_dot(a, b):
    return jnp.dot(a.astype(jnp.bfloat16), b.astype(jnp.bfloat16),
                   preferred_element_type=jnp.float32)


@jax.jit
def encoder_forward_ref(x_nchw, params, grid2d):
    B = x_nchw.shape[0]
    x = jnp.transpose(x_nchw, (0, 2, 3, 1))
    for i, cout in enumerate((32, 64, 128)):
        patches, Ho, Wo = im2col(x, k=4, s=2, p=1)
        y = jnp.maximum(_bf16_dot(patches, params[f"conv{i}_w"]) + params[f"conv{i}_b"], 0.0)
        x = y.reshape(B, Ho, Wo, cout)
    pos = grid2d @ params["wp"] + params["bp"]
    h = x.reshape(B, 64, 128) + pos[None]
    mu = h.mean(-1, keepdims=True)
    var = ((h - mu) ** 2).mean(-1, keepdims=True)
    hn = (h - mu) / jnp.sqrt(var + 1e-5) * params["ln_g"] + params["ln_b"]
    h1 = jnp.maximum(_bf16_dot(hn, params["w1"]) + params["b1"], 0.0)
    return _bf16_dot(h1, params["w2"]) + params["b2"]


if __name__ == "__main__":
    SLOT_DIM = 64
    key = jax.random.PRNGKey(0)
    k_x, k_p = jax.random.split(key)

    # Input: NCHW (batch=2, 3 channels, 64x64) -- the (8,8) positional-embedding
    # resolution fixes the spatial size at 64 after three stride-2 convs.
    x = jax.random.normal(k_x, (2, 3, 64, 64), jnp.float32)
    params = init_params(k_p, slot_dim=SLOT_DIM)
    grid2d = jnp.asarray(build_grid((8, 8)).reshape(64, 4))  # (64, 4)
    kp = prepare_params(params, grid2d)

    out = jax.block_until_ready(encoder_forward(x, kp))
    assert out.shape == (2, 64, SLOT_DIM)

    ref = jax.block_until_ready(encoder_forward_ref(x, params, grid2d))
    np.testing.assert_allclose(np.asarray(out), np.asarray(ref), rtol=2e-2, atol=2e-2)

    print("KERNEL_OK")
</pallas_src>

<mosaic_0001>
module attributes {stable_mosaic.version = 11 : i64} {
  func.func @_conv1_kernel(%arg0: i32, %arg1: memref<256x192xbf16, #tpu.memory_space<vmem>>, %arg2: memref<192x128xbf16, #tpu.memory_space<vmem>>, %arg3: memref<1x128xf32, #tpu.memory_space<vmem>>, %arg4: memref<256x128xbf16, #tpu.memory_space<vmem>>) attributes {dimension_semantics = [#tpu.dimension_semantics<parallel>], iteration_bounds = array<i64: 2>, scalar_prefetch = 0 : i64, scratch_operands = 0 : i64, tpu.core_type = #tpu.core_type<tc>, window_params = [{transform_indices = @transform_0, window_bounds = array<i64: 256, 192>}, {pipeline_mode = #tpu.pipeline_mode<synchronous>, transform_indices = @transform_1, window_bounds = array<i64: 192, 128>}, {pipeline_mode = #tpu.pipeline_mode<synchronous>, transform_indices = @transform_2, window_bounds = array<i64: 1, 128>}, {transform_indices = @transform_3, window_bounds = array<i64: 256, 128>}]} {
    %c0 = arith.constant 0 : index
    %c0_0 = arith.constant 0 : index
    %0 = vector.load %arg1[%c0, %c0_0] : memref<256x192xbf16, #tpu.memory_space<vmem>>, vector<256x192xbf16>
    %c0_1 = arith.constant 0 : index
    %c0_2 = arith.constant 0 : index
    %1 = vector.load %arg2[%c0_1, %c0_2] : memref<192x128xbf16, #tpu.memory_space<vmem>>, vector<192x128xbf16>
    %cst = arith.constant dense<0.000000e+00> : vector<256x128xf32>
    %2 = tpu.matmul %0, %1, %cst {dimension_numbers = #tpu.dot_dimension_numbers<[1], [0], [0], [1], [0, 0, 1, 1], [], []>} : vector<256x192xbf16>, vector<192x128xbf16>, vector<256x128xf32> -> vector<256x128xf32>
    %c0_3 = arith.constant 0 : index
    %c0_4 = arith.constant 0 : index
    %3 = vector.load %arg3[%c0_3, %c0_4] : memref<1x128xf32, #tpu.memory_space<vmem>>, vector<1x128xf32>
    %4 = vector.broadcast %3 : vector<1x128xf32> to vector<256x128xf32>
    %5 = arith.addf %2, %4 : vector<256x128xf32>
    %cst_5 = arith.constant 0.000000e+00 : f32
    %6 = vector.broadcast %cst_5 : f32 to vector<256x128xf32>
    %7 = arith.maximumf %5, %6 : vector<256x128xf32>
    %8 = arith.truncf %7 : vector<256x128xf32> to vector<256x128xbf16>
    %c0_6 = arith.constant 0 : index
    %c0_7 = arith.constant 0 : index
    %9 = vector.load %arg4[%c0_6, %c0_7] : memref<256x128xbf16, #tpu.memory_space<vmem>>, vector<256x128xbf16>
    tpu.vector_store %arg4[%c0_6, %c0_7], %8 {strides = array<i32>} : memref<256x128xbf16, #tpu.memory_space<vmem>>, vector<256x128xbf16>,
    return
  }
  func.func @transform_0(%arg0: i32) -> (i32, i32) {
    %c0_i32 = arith.constant 0 : i32
    %c0_i32_0 = arith.constant 0 : i32
    return %arg0, %c0_i32 : i32, i32
  }
  func.func @transform_1(%arg0: i32) -> (i32, i32) {
    %c0_i32 = arith.constant 0 : i32
    %c0_i32_0 = arith.constant 0 : i32
    %c0_i32_1 = arith.constant 0 : i32
    return %c0_i32, %c0_i32_0 : i32, i32
  }
  func.func @transform_2(%arg0: i32) -> (i32, i32) {
    %c0_i32 = arith.constant 0 : i32
    %c0_i32_0 = arith.constant 0 : i32
    %c0_i32_1 = arith.constant 0 : i32
    return %c0_i32, %c0_i32_0 : i32, i32
  }
  func.func @transform_3(%arg0: i32) -> (i32, i32) {
    %c0_i32 = arith.constant 0 : i32
    %c0_i32_0 = arith.constant 0 : i32
    return %arg0, %c0_i32 : i32, i32
  }
}

module attributes {stable_mosaic.version = 11 : i64} {
  func.func @_conv23_head_kernel(%arg0: i32, %arg1: memref<1x256x512xbf16, #tpu.memory_space<vmem>>, %arg2: memref<512x64xbf16, #tpu.memory_space<vmem>>, %arg3: memref<1x64xf32, #tpu.memory_space<vmem>>, %arg4: memref<16x64x128xbf16, #tpu.memory_space<vmem>>, %arg5: memref<1x128xf32, #tpu.memory_space<vmem>>, %arg6: memref<64x128xf32, #tpu.memory_space<vmem>>, %arg7: memref<1x128xf32, #tpu.memory_space<vmem>>, %arg8: memref<1x128xf32, #tpu.memory_space<vmem>>, %arg9: memref<128x128xbf16, #tpu.memory_space<vmem>>, %arg10: memref<1x128xf32, #tpu.memory_space<vmem>>, %arg11: memref<128x64xbf16, #tpu.memory_space<vmem>>, %arg12: memref<1x64xf32, #tpu.memory_space<vmem>>, %arg13: memref<1x64x64xf32, #tpu.memory_space<vmem>>, %arg14: memref<4x10x16x64xf32, #tpu.memory_space<vmem>>) attributes {dimension_semantics = [#tpu.dimension_semantics<parallel>], iteration_bounds = array<i64: 2>, scalar_prefetch = 0 : i64, scratch_operands = 1 : i64, tpu.core_type = #tpu.core_type<tc>, window_params = [{transform_indices = @transform_0, window_bounds = array<i64: 1, 256, 512>}, {pipeline_mode = #tpu.pipeline_mode<synchronous>, transform_indices = @transform_1, window_bounds = array<i64: 512, 64>}, {pipeline_mode = #tpu.pipeline_mode<synchronous>, transform_indices = @transform_2, window_bounds = array<i64: 1, 64>}, {pipeline_mode = #tpu.pipeline_mode<synchronous>, transform_indices = @transform_3, window_bounds = array<i64: 16, 64, 128>}, {pipeline_mode = #tpu.pipeline_mode<synchronous>, transform_indices = @transform_4, window_bounds = array<i64: 1, 128>}, {pipeline_mode = #tpu.pipeline_mode<synchronous>, transform_indices = @transform_5, window_bounds = array<i64: 64, 128>}, {pipeline_mode = #tpu.pipeline_mode<synchronous>, transform_indices = @transform_6, window_bounds = array<i64: 1, 128>}, {pipeline_mode = #tpu.pipeline_mode<synchronous>, transform_indices = @transform_7, window_bounds = array<i64: 1, 128>}, {pipeline_mode = #tpu.pipeline_mode<synchronous>, transform_indices = @transform_8, window_bounds = array<i64: 128, 128>}, {pipeline_mode = #tpu.pipeline_mode<synchronous>, transform_indices = @transform_9, window_bounds = array<i64: 1, 128>}, {pipeline_mode = #tpu.pipeline_mode<synchronous>, transform_indices = @transform_10, window_bounds = array<i64: 128, 64>}, {pipeline_mode = #tpu.pipeline_mode<synchronous>, transform_indices = @transform_11, window_bounds = array<i64: 1, 64>}, {transform_indices = @transform_12, window_bounds = array<i64: 1, 64, 64>}]} {
    %c0 = arith.constant 0 : index
    %c0_0 = arith.constant 0 : index
    %c0_1 = arith.constant 0 : index
    %0 = vector.load %arg1[%c0, %c0_0, %c0_1] : memref<1x256x512xbf16, #tpu.memory_space<vmem>>, vector<1x256x512xbf16>
    %1 = vector.shape_cast %0 : vector<1x256x512xbf16> to vector<256x512xbf16>
    %c0_2 = arith.constant 0 : index
    %c0_3 = arith.constant 0 : index
    %2 = vector.load %arg2[%c0_2, %c0_3] : memref<512x64xbf16, #tpu.memory_space<vmem>>, vector<512x64xbf16>
    %cst = arith.constant dense<0.000000e+00> : vector<256x64xf32>
    %3 = tpu.matmul %1, %2, %cst {dimension_numbers = #tpu.dot_dimension_numbers<[1], [0], [0], [1], [0, 0, 1, 1], [], []>} : vector<256x512xbf16>, vector<512x64xbf16>, vector<256x64xf32> -> vector<256x64xf32>
    %c0_4 = arith.constant 0 : index
    %c0_5 = arith.constant 0 : index
    %4 = vector.load %arg3[%c0_4, %c0_5] : memref<1x64xf32, #tpu.memory_space<vmem>>, vector<1x64xf32>
    %5 = vector.broadcast %4 : vector<1x64xf32> to vector<256x64xf32>
    %6 = arith.addf %3, %5 : vector<256x64xf32>
    %cst_6 = arith.constant 0.000000e+00 : f32
    %7 = vector.broadcast %cst_6 : f32 to vector<256x64xf32>
    %8 = arith.maximumf %6, %7 : vector<256x64xf32>
    %cst_7 = arith.constant 0.000000e+00 : f32
    %9 = vector.broadcast %cst_7 : f32 to vector<4x10x16x64xf32>
    %c0_8 = arith.constant 0 : index
    %c0_9 = arith.constant 0 : index
    %c0_10 = arith.constant 0 : index
    %c0_11 = arith.constant 0 : index
    %10 = vector.load %arg14[%c0_8, %c0_9, %c0_10, %c0_11] : memref<4x10x16x64xf32, #tpu.memory_space<vmem>>, vector<4x10x16x64xf32>
    tpu.vector_store %arg14[%c0_8, %c0_9, %c0_10, %c0_11], %9 {strides = array<i32>} : memref<4x10x16x64xf32, #tpu.memory_space<vmem>>, vector<4x10x16x64xf32>,
    %11 = vector.shape_cast %8 : vector<256x64xf32> to vector<4x8x8x64xf32>
    %12 = vector.extract_strided_slice %11 {offsets = [0, 0, 0, 0], sizes = [1, 8, 8, 64], strides = [1, 1, 1, 1]} : vector<4x8x8x64xf32> to vector<1x8x8x64xf32>
    %13 = vector.shape_cast %12 : vector<1x8x8x64xf32> to vector<8x8x64xf32>
    %c0_12 = arith.constant 0 : index
    %c1 = arith.constant 1 : index
    %c1_13 = arith.constant 1 : index
    %c0_14 = arith.constant 0 : index
    %14 = vector.load %arg14[%c0_12, %c1, %c1_13, %c0_14] : memref<4x10x16x64xf32, #tpu.memory_space<vmem>>, vector<1x8x8x64xf32>
    %15 = vector.shape_cast %14 : vector<1x8x8x64xf32> to vector<8x8x64xf32>
    %16 = vector.shape_cast %13 : vector<8x8x64xf32> to vector<1x8x8x64xf32>
    tpu.vector_store %arg14[%c0_12, %c1, %c1_13, %c0_14], %16 {strides = array<i32>} : memref<4x10x16x64xf32, #tpu.memory_space<vmem>>, vector<1x8x8x64xf32>,
    %17 = vector.extract_strided_slice %11 {offsets = [1, 0, 0, 0], sizes = [1, 8, 8, 64], strides = [1, 1, 1, 1]} : vector<4x8x8x64xf32> to vector<1x8x8x64xf32>
    %18 = vector.shape_cast %17 : vector<1x8x8x64xf32> to vector<8x8x64xf32>
    %c1_15 = arith.constant 1 : index
    %c1_16 = arith.constant 1 : index
    %c1_17 = arith.constant 1 : index
    %c0_18 = arith.constant 0 : index
    %19 = vector.load %arg14[%c1_15, %c1_16, %c1_17, %c0_18] : memref<4x10x16x64xf32, #tpu.memory_space<vmem>>, vector<1x8x8x64xf32>
    %20 = vector.shape_cast %19 : vector<1x8x8x64xf32> to vector<8x8x64xf32>
    %21 = vector.shape_cast %18 : vector<8x8x64xf32> to vector<1x8x8x64xf32>
    tpu.vector_store %arg14[%c1_15, %c1_16, %c1_17, %c0_18], %21 {strides = array<i32>} : memref<4x10x16x64xf32, #tpu.memory_space<vmem>>, vector<1x8x8x64xf32>,
    %22 = vector.extract_strided_slice %11 {offsets = [2, 0, 0, 0], sizes = [1, 8, 8, 64], strides = [1, 1, 1, 1]} : vector<4x8x8x64xf32> to vector<1x8x8x64xf32>
    %23 = vector.shape_cast %22 : vector<1x8x8x64xf32> to vector<8x8x64xf32>
    %c2 = arith.constant 2 : index
    %c1_19 = arith.constant 1 : index
    %c1_20 = arith.constant 1 : index
    %c0_21 = arith.constant 0 : index
    %24 = vector.load %arg14[%c2, %c1_19, %c1_20, %c0_21] : memref<4x10x16x64xf32, #tpu.memory_space<vmem>>, vector<1x8x8x64xf32>
    %25 = vector.shape_cast %24 : vector<1x8x8x64xf32> to vector<8x8x64xf32>
    %26 = vector.shape_cast %23 : vector<8x8x64xf32> to vector<1x8x8x64xf32>
    tpu.vector_store %arg14[%c2, %c1_19, %c1_20, %c0_21], %26 {strides = array<i32>} : memref<4x10x16x64xf32, #tpu.memory_space<vmem>>, vector<1x8x8x64xf32>,
    %27 = vector.extract_strided_slice %11 {offsets = [3, 0, 0, 0], sizes = [1, 8, 8, 64], strides = [1, 1, 1, 1]} : vector<4x8x8x64xf32> to vector<1x8x8x64xf32>
    %28 = vector.shape_cast %27 : vector<1x8x8x64xf32> to vector<8x8x64xf32>
    %c3 = arith.constant 3 : index
    %c1_22 = arith.constant 1 : index
    %c1_23 = arith.constant 1 : index
    %c0_24 = arith.constant 0 : index
    %29 = vector.load %arg14[%c3, %c1_22, %c1_23, %c0_24] : memref<4x10x16x64xf32, #tpu.memory_space<vmem>>, vector<1x8x8x64xf32>
    %30 = vector.shape_cast %29 : vector<1x8x8x64xf32> to vector<8x8x64xf32>
    %31 = vector.shape_cast %28 : vector<8x8x64xf32> to vector<1x8x8x64xf32>
    tpu.vector_store %arg14[%c3, %c1_22, %c1_23, %c0_24], %31 {strides = array<i32>} : memref<4x10x16x64xf32, #tpu.memory_space<vmem>>, vector<1x8x8x64xf32>,
    %cst_25 = arith.constant 0.000000e+00 : f32
    %32 = vector.broadcast %cst_25 : f32 to vector<64x128xf32>
    %c3_26 = arith.constant 3 : index
    %c0_27 = arith.constant 0 : index
    %c0_28 = arith.constant 0 : index
    %c0_29 = arith.constant 0 : index
    %33 = vector.load %arg14[%c3_26, %c0_27, %c0_28, %c0_29] : memref<4x10x16x64xf32, #tpu.memory_space<vmem>>, vector<1x8x8x64xf32>
    %34 = vector.shape_cast %33 : vector<1x8x8x64xf32> to vector<8x8x64xf32>
    %35 = vector.shape_cast %34 : vector<8x8x64xf32> to vector<64x64xf32>
    %36 = arith.truncf %35 : vector<64x64xf32> to vector<64x64xbf16>
    %c0_30 = arith.constant 0 : index
    %c0_31 = arith.constant 0 : index
    %c0_32 = arith.constant 0 : index
    %37 = vector.load %arg4[%c0_30, %c0_31, %c0_32] : memref<16x64x128xbf16, #tpu.memory_space<vmem>>, vector<1x64x128xbf16>
    %38 = vector.shape_cast %37 : vector<1x64x128xbf16> to vector<64x128xbf16>
    %cst_33 = arith.constant dense<0.000000e+00> : vector<64x128xf32>
    %39 = tpu.matmul %36, %38, %cst_33 {dimension_numbers = #tpu.dot_dimension_numbers<[1], [0], [0], [1], [0, 0, 1, 1], [], []>} : vector<64x64xbf16>, vector<64x128xbf16>, vector<64x128xf32> -> vector<64x128xf32>
    %40 = arith.addf %32, %39 : vector<64x128xf32>
    %c2_34 = arith.constant 2 : index
    %c0_35 = arith.constant 0 : index
    %c1_36 = arith.constant 1 : index
    %c0_37 = arith.constant 0 : index
    %41 = vector.load %arg14[%c2_34, %c0_35, %c1_36, %c0_37] : memref<4x10x16x64xf32, #tpu.memory_space<vmem>>, vector<1x8x8x64xf32>
    %42 = vector.shape_cast %41 : vector<1x8x8x64xf32> to vector<8x8x64xf32>
    %43 = vector.shape_cast %42 : vector<8x8x64xf32> to vector<64x64xf32>
    %44 = arith.truncf %43 : vector<64x64xf32> to vector<64x64xbf16>
    %c1_38 = arith.constant 1 : index
    %c0_39 = arith.constant 0 : index
    %c0_40 = arith.constant 0 : index
    %45 = vector.load %arg4[%c1_38, %c0_39, %c0_40] : memref<16x64x128xbf16, #tpu.memory_space<vmem>>, vector<1x64x128xbf16>
    %46 = vector.shape_cast %45 : vector<1x64x128xbf16> to vector<64x128xbf16>
    %cst_41 = arith.constant dense<0.000000e+00> : vector<64x128xf32>
    %47 = tpu.matmul %44, %46, %cst_41 {dimension_numbers = #tpu.dot_dimension_numbers<[1], [0], [0], [1], [0, 0, 1, 1], [], []>} : vector<64x64xbf16>, vector<64x128xbf16>, vector<64x128xf32> -> vector<64x128xf32>
    %48 = arith.addf %40, %47 : vector<64x128xf32>
    %c3_42 = arith.constant 3 : index
    %c0_43 = arith.constant 0 : index
    %c1_44 = arith.constant 1 : index
    %c0_45 = arith.constant 0 : index
    %49 = vector.load %arg14[%c3_42, %c0_43, %c1_44, %c0_45] : memref<4x10x16x64xf32, #tpu.memory_space<vmem>>, vector<1x8x8x64xf32>
    %50 = vector.shape_cast %49 : vector<1x8x8x64xf32> to vector<8x8x64xf32>
    %51 = vector.shape_cast %50 : vector<8x8x64xf32> to vector<64x64xf32>
    %52 = arith.truncf %51 : vector<64x64xf32> to vector<64x64xbf16>
    %c2_46 = arith.constant 2 : index
    %c0_47 = arith.constant 0 : index
    %c0_48 = arith.constant 0 : index
    %53 = vector.load %arg4[%c2_46, %c0_47, %c0_48] : memref<16x64x128xbf16, #tpu.memory_space<vmem>>, vector<1x64x128xbf16>
    %54 = vector.shape_cast %53 : vector<1x64x128xbf16> to vector<64x128xbf16>
    %cst_49 = arith.constant dense<0.000000e+00> : vector<64x128xf32>
    %55 = tpu.matmul %52, %54, %cst_49 {dimension_numbers = #tpu.dot_dimension_numbers<[1], [0], [0], [1], [0, 0, 1, 1], [], []>} : vector<64x64xbf16>, vector<64x128xbf16>, vector<64x128xf32> -> vector<64x128xf32>
    %56 = arith.addf %48, %55 : vector<64x128xf32>
    %c2_50 = arith.constant 2 : index
    %c0_51 = arith.constant 0 : index
    %c2_52 = arith.constant 2 : index
    %c0_53 = arith.constant 0 : index
    %57 = vector.load %arg14[%c2_50, %c0_51, %c2_52, %c0_53] : memref<4x10x16x64xf32, #tpu.memory_space<vmem>>, vector<1x8x8x64xf32>
    %58 = vector.shape_cast %57 : vector<1x8x8x64xf32> to vector<8x8x64xf32>
    %59 = vector.shape_cast %58 : vector<8x8x64xf32> to vector<64x64xf32>
    %60 = arith.truncf %59 : vector<64x64xf32> to vector<64x64xbf16>
    %c3_54 = arith.constant 3 : index
    %c0_55 = arith.constant 0 : index
    %c0_56 = arith.constant 0 : index
    %61 = vector.load %arg4[%c3_54, %c0_55, %c0_56] : memref<16x64x128xbf16, #tpu.memory_space<vmem>>, vector<1x64x128xbf16>
    %62 = vector.shape_cast %61 : vector<1x64x128xbf16> to vector<64x128xbf16>
    %cst_57 = arith.constant dense<0.000000e+00> : vector<64x128xf32>
    %63 = tpu.matmul %60, %62, %cst_57 {dimension_numbers = #tpu.dot_dimension_numbers<[1], [0], [0], [1], [0, 0, 1, 1], [], []>} : vector<64x64xbf16>, vector<64x128xbf16>, vector<64x128xf32> -> vector<64x128xf32>
    %64 = arith.addf %56, %63 : vector<64x128xf32>
    %c1_58 = arith.constant 1 : index
    %c1_59 = arith.constant 1 : index
    %c0_60 = arith.constant 0 : index
    %c0_61 = arith.constant 0 : index
    %65 = vector.load %arg14[%c1_58, %c1_59, %c0_60, %c0_61] : memref<4x10x16x64xf32, #tpu.memory_space<vmem>>, vector<1x8x8x64xf32>
    %66 = vector.shape_cast %65 : vector<1x8x8x64xf32> to vector<8x8x64xf32>
    %67 = vector.shape_cast %66 : vector<8x8x64xf32> to vector<64x64xf32>
    %68 = arith.truncf %67 : vector<64x64xf32> to vector<64x64xbf16>
    %c4 = arith.constant 4 : index
    %c0_62 = arith.constant 0 : index
    %c0_63 = arith.constant 0 : index
    %69 = vector.load %arg4[%c4, %c0_62, %c0_63] : memref<16x64x128xbf16, #tpu.memory_space<vmem>>, vector<1x64x128xbf16>
    %70 = vector.shape_cast %69 : vector<1x64x128xbf16> to vector<64x128xbf16>
    %cst_64 = arith.constant dense<0.000000e+00> : vector<64x128xf32>
    %71 = tpu.matmul %68, %70, %cst_64 {dimension_numbers = #tpu.dot_dimension_numbers<[1], [0], [0], [1], [0, 0, 1, 1], [], []>} : vector<64x64xbf16>, vector<64x128xbf16>, vector<64x128xf32> -> vector<64x128xf32>
    %72 = arith.addf %64, %71 : vector<64x128xf32>
    %c0_65 = arith.constant 0 : index
    %c1_66 = arith.constant 1 : index
    %c1_67 = arith.constant 1 : index
    %c0_68 = arith.constant 0 : index
    %73 = vector.load %arg14[%c0_65, %c1_66, %c1_67, %c0_68] : memref<4x10x16x64xf32, #tpu.memory_space<vmem>>, vector<1x8x8x64xf32>
    %74 = vector.shape_cast %73 : vector<1x8x8x64xf32> to vector<8x8x64xf32>
    %75 = vector.shape_cast %74 : vector<8x8x64xf32> to vector<64x64xf32>
    %76 = arith.truncf %75 : vector<64x64xf32> to vector<64x64xbf16>
    %c5 = arith.constant 5 : index
    %c0_69 = arith.constant 0 : index
    %c0_70 = arith.constant 0 : index
    %77 = vector.load %arg4[%c5, %c0_69, %c0_70] : memref<16x64x128xbf16, #tpu.memory_space<vmem>>, vector<1x64x128xbf16>
    %78 = vector.shape_cast %77 : vector<1x64x128xbf16> to vector<64x128xbf16>
    %cst_71 = arith.constant dense<0.000000e+00> : vector<64x128xf32>
    %79 = tpu.matmul %76, %78, %cst_71 {dimension_numbers = #tpu.dot_dimension_numbers<[1], [0], [0], [1], [0, 0, 1, 1], [], []>} : vector<64x64xbf16>, vector<64x128xbf16>, vector<64x128xf32> -> vector<64x128xf32>
    %80 = arith.addf %72, %79 : vector<64x128xf32>
    %c1_72 = arith.constant 1 : index
    %c1_73 = arith.constant 1 : index
    %c1_74 = arith.constant 1 : index
    %c0_75 = arith.constant 0 : index
    %81 = vector.load %arg14[%c1_72, %c1_73, %c1_74, %c0_75] : memref<4x10x16x64xf32, #tpu.memory_space<vmem>>, vector<1x8x8x64xf32>
    %82 = vector.shape_cast %81 : vector<1x8x8x64xf32> to vector<8x8x64xf32>
    %83 = vector.shape_cast %82 : vector<8x8x64xf32> to vector<64x64xf32>
    %84 = arith.truncf %83 : vector<64x64xf32> to vector<64x64xbf16>
    %c6 = arith.constant 6 : index
    %c0_76 = arith.constant 0 : index
    %c0_77 = arith.constant 0 : index
    %85 = vector.load %arg4[%c6, %c0_76, %c0_77] : memref<16x64x128xbf16, #tpu.memory_space<vmem>>, vector<1x64x128xbf16>
    %86 = vector.shape_cast %85 : vector<1x64x128xbf16> to vector<64x128xbf16>
    %cst_78 = arith.constant dense<0.000000e+00> : vector<64x128xf32>
    %87 = tpu.matmul %84, %86, %cst_78 {dimension_numbers = #tpu.dot_dimension_numbers<[1], [0], [0], [1], [0, 0, 1, 1], [], []>} : vector<64x64xbf16>, vector<64x128xbf16>, vector<64x128xf32> -> vector<64x128xf32>
    %88 = arith.addf %80, %87 : vector<64x128xf32>
    %c0_79 = arith.constant 0 : index
    %c1_80 = arith.constant 1 : index
    %c2_81 = arith.constant 2 : index
    %c0_82 = arith.constant 0 : index
    %89 = vector.load %arg14[%c0_79, %c1_80, %c2_81, %c0_82] : memref<4x10x16x64xf32, #tpu.memory_space<vmem>>, vector<1x8x8x64xf32>
    %90 = vector.shape_cast %89 : vector<1x8x8x64xf32> to vector<8x8x64xf32>
    %91 = vector.shape_cast %90 : vector<8x8x64xf32> to vector<64x64xf32>
    %92 = arith.truncf %91 : vector<64x64xf32> to vector<64x64xbf16>
    %c7 = arith.constant 7 : index
    %c0_83 = arith.constant 0 : index
    %c0_84 = arith.constant 0 : index
    %93 = vector.load %arg4[%c7, %c0_83, %c0_84] : memref<16x64x128xbf16, #tpu.memory_space<vmem>>, vector<1x64x128xbf16>
    %94 = vector.shape_cast %93 : vector<1x64x128xbf16> to vector<64x128xbf16>
    %cst_85 = arith.constant dense<0.000000e+00> : vector<64x128xf32>
    %95 = tpu.matmul %92, %94, %cst_85 {dimension_numbers = #tpu.dot_dimension_numbers<[1], [0], [0], [1], [0, 0, 1, 1], [], []>} : vector<64x64xbf16>, vector<64x128xbf16>, vector<64x128xf32> -> vector<64x128xf32>
    %96 = arith.addf %88, %95 : vector<64x128xf32>
    %c3_86 = arith.constant 3 : index
    %c1_87 = arith.constant 1 : index
    %c0_88 = arith.constant 0 : index
    %c0_89 = arith.constant 0 : index
    %97 = vector.load %arg14[%c3_86, %c1_87, %c0_88, %c0_89] : memref<4x10x16x64xf32, #tpu.memory_space<vmem>>, vector<1x8x8x64xf32>
    %98 = vector.shape_cast %97 : vector<1x8x8x64xf32> to vector<8x8x64xf32>
    %99 = vector.shape_cast %98 : vector<8x8x64xf32> to vector<64x64xf32>
    %100 = arith.truncf %99 : vector<64x64xf32> to vector<64x64xbf16>
    %c8 = arith.constant 8 : index
    %c0_90 = arith.constant 0 : index
    %c0_91 = arith.constant 0 : index
    %101 = vector.load %arg4[%c8, %c0_90, %c0_91] : memref<16x64x128xbf16, #tpu.memory_space<vmem>>, vector<1x64x128xbf16>
    %102 = vector.shape_cast %101 : vector<1x64x128xbf16> to vector<64x128xbf16>
    %cst_92 = arith.constant dense<0.000000e+00> : vector<64x128xf32>
    %103 = tpu.matmul %100, %102, %cst_92 {dimension_numbers = #tpu.dot_dimension_numbers<[1], [0], [0], [1], [0, 0, 1, 1], [], []>} : vector<64x64xbf16>, vector<64x128xbf16>, vector<64x128xf32> -> vector<64x128xf32>
    %104 = arith.addf %96, %103 : vector<64x128xf32>
    %c2_93 = arith.constant 2 : index
    %c1_94 = arith.constant 1 : index
    %c1_95 = arith.constant 1 : index
    %c0_96 = arith.constant 0 : index
    %105 = vector.load %arg14[%c2_93, %c1_94, %c1_95, %c0_96] : memref<4x10x16x64xf32, #tpu.memory_space<vmem>>, vector<1x8x8x64xf32>
    %106 = vector.shape_cast %105 : vector<1x8x8x64xf32> to vector<8x8x64xf32>
    %107 = vector.shape_cast %106 : vector<8x8x64xf32> to vector<64x64xf32>
    %108 = arith.truncf %107 : vector<64x64xf32> to vector<64x64xbf16>
    %c9 = arith.constant 9 : index
    %c0_97 = arith.constant 0 : index
    %c0_98 = arith.constant 0 : index
    %109 = vector.load %arg4[%c9, %c0_97, %c0_98] : memref<16x64x128xbf16, #tpu.memory_space<vmem>>, vector<1x64x128xbf16>
    %110 = vector.shape_cast %109 : vector<1x64x128xbf16> to vector<64x128xbf16>
    %cst_99 = arith.constant dense<0.000000e+00> : vector<64x128xf32>
    %111 = tpu.matmul %108, %110, %cst_99 {dimension_numbers = #tpu.dot_dimension_numbers<[1], [0], [0], [1], [0, 0, 1, 1], [], []>} : vector<64x64xbf16>, vector<64x128xbf16>, vector<64x128xf32> -> vector<64x128xf32>
    %112 = arith.addf %104, %111 : vector<64x128xf32>
    %c3_100 = arith.constant 3 : index
    %c1_101 = arith.constant 1 : index
    %c1_102 = arith.constant 1 : index
    %c0_103 = arith.constant 0 : index
    %113 = vector.load %arg14[%c3_100, %c1_101, %c1_102, %c0_103] : memref<4x10x16x64xf32, #tpu.memory_space<vmem>>, vector<1x8x8x64xf32>
    %114 = vector.shape_cast %113 : vector<1x8x8x64xf32> to vector<8x8x64xf32>
    %115 = vector.shape_cast %114 : vector<8x8x64xf32> to vector<64x64xf32>
    %116 = arith.truncf %115 : vector<64x64xf32> to vector<64x64xbf16>
    %c10 = arith.constant 10 : index
    %c0_104 = arith.constant 0 : index
    %c0_105 = arith.constant 0 : index
    %117 = vector.load %arg4[%c10, %c0_104, %c0_105] : memref<16x64x128xbf16, #tpu.memory_space<vmem>>, vector<1x64x128xbf16>
    %118 = vector.shape_cast %117 : vector<1x64x128xbf16> to vector<64x128xbf16>
    %cst_106 = arith.constant dense<0.000000e+00> : vector<64x128xf32>
    %119 = tpu.matmul %116, %118, %cst_106 {dimension_numbers = #tpu.dot_dimension_numbers<[1], [0], [0], [1], [0, 0, 1, 1], [], []>} : vector<64x64xbf16>, vector<64x128xbf16>, vector<64x128xf32> -> vector<64x128xf32>
    %120 = arith.addf %112, %119 : vector<64x128xf32>
    %c2_107 = arith.constant 2 : index
    %c1_108 = arith.constant 1 : index
    %c2_109 = arith.constant 2 : index
    %c0_110 = arith.constant 0 : index
    %121 = vector.load %arg14[%c2_107, %c1_108, %c2_109, %c0_110] : memref<4x10x16x64xf32, #tpu.memory_space<vmem>>, vector<1x8x8x64xf32>
    %122 = vector.shape_cast %121 : vector<1x8x8x64xf32> to vector<8x8x64xf32>
    %123 = vector.shape_cast %122 : vector<8x8x64xf32> to vector<64x64xf32>
    %124 = arith.truncf %123 : vector<64x64xf32> to vector<64x64xbf16>
    %c11 = arith.constant 11 : index
    %c0_111 = arith.constant 0 : index
    %c0_112 = arith.constant 0 : index
    %125 = vector.load %arg4[%c11, %c0_111, %c0_112] : memref<16x64x128xbf16, #tpu.memory_space<vmem>>, vector<1x64x128xbf16>
    %126 = vector.shape_cast %125 : vector<1x64x128xbf16> to vector<64x128xbf16>
    %cst_113 = arith.constant dense<0.000000e+00> : vector<64x128xf32>
    %127 = tpu.matmul %124, %126, %cst_113 {dimension_numbers = #tpu.dot_dimension_numbers<[1], [0], [0], [1], [0, 0, 1, 1], [], []>} : vector<64x64xbf16>, vector<64x128xbf16>, vector<64x128xf32> -> vector<64x128xf32>
    %128 = arith.addf %120, %127 : vector<64x128xf32>
    %c1_114 = arith.constant 1 : index
    %c2_115 = arith.constant 2 : index
    %c0_116 = arith.constant 0 : index
    %c0_117 = arith.constant 0 : index
    %129 = vector.load %arg14[%c1_114, %c2_115, %c0_116, %c0_117] : memref<4x10x16x64xf32, #tpu.memory_space<vmem>>, vector<1x8x8x64xf32>
    %130 = vector.shape_cast %129 : vector<1x8x8x64xf32> to vector<8x8x64xf32>
    %131 = vector.shape_cast %130 : vector<8x8x64xf32> to vector<64x64xf32>
    %132 = arith.truncf %131 : vector<64x64xf32> to vector<64x64xbf16>
    %c12 = arith.constant 12 : index
    %c0_118 = arith.constant 0 : index
    %c0_119 = arith.constant 0 : index
    %133 = vector.load %arg4[%c12, %c0_118, %c0_119] : memref<16x64x128xbf16, #tpu.memory_space<vmem>>, vector<1x64x128xbf16>
    %134 = vector.shape_cast %133 : vector<1x64x128xbf16> to vector<64x128xbf16>
    %cst_120 = arith.constant dense<0.000000e+00> : vector<64x128xf32>
    %135 = tpu.matmul %132, %134, %cst_120 {dimension_numbers = #tpu.dot_dimension_numbers<[1], [0], [0], [1], [0, 0, 1, 1], [], []>} : vector<64x64xbf16>, vector<64x128xbf16>, vector<64x128xf32> -> vector<64x128xf32>
    %136 = arith.addf %128, %135 : vector<64x128xf32>
    %c0_121 = arith.constant 0 : index
    %c2_122 = arith.constant 2 : index
    %c1_123 = arith.constant 1 : index
    %c0_124 = arith.constant 0 : index
    %137 = vector.load %arg14[%c0_121, %c2_122, %c1_123, %c0_124] : memref<4x10x16x64xf32, #tpu.memory_space<vmem>>, vector<1x8x8x64xf32>
    %138 = vector.shape_cast %137 : vector<1x8x8x64xf32> to vector<8x8x64xf32>
    %139 = vector.shape_cast %138 : vector<8x8x64xf32> to vector<64x64xf32>
    %140 = arith.truncf %139 : vector<64x64xf32> to vector<64x64xbf16>
    %c13 = arith.constant 13 : index
    %c0_125 = arith.constant 0 : index
    %c0_126 = arith.constant 0 : index
    %141 = vector.load %arg4[%c13, %c0_125, %c0_126] : memref<16x64x128xbf16, #tpu.memory_space<vmem>>, vector<1x64x128xbf16>
    %142 = vector.shape_cast %141 : vector<1x64x128xbf16> to vector<64x128xbf16>
    %cst_127 = arith.constant dense<0.000000e+00> : vector<64x128xf32>
    %143 = tpu.matmul %140, %142, %cst_127 {dimension_numbers = #tpu.dot_dimension_numbers<[1], [0], [0], [1], [0, 0, 1, 1], [], []>} : vector<64x64xbf16>, vector<64x128xbf16>, vector<64x128xf32> -> vector<64x128xf32>
    %144 = arith.addf %136, %143 : vector<64x128xf32>
    %c1_128 = arith.constant 1 : index
    %c2_129 = arith.constant 2 : index
    %c1_130 = arith.constant 1 : index
    %c0_131 = arith.constant 0 : index
    %145 = vector.load %arg14[%c1_128, %c2_129, %c1_130, %c0_131] : memref<4x10x16x64xf32, #tpu.memory_space<vmem>>, vector<1x8x8x64xf32>
    %146 = vector.shape_cast %145 : vector<1x8x8x64xf32> to vector<8x8x64xf32>
    %147 = vector.shape_cast %146 : vector<8x8x64xf32> to vector<64x64xf32>
    %148 = arith.truncf %147 : vector<64x64xf32> to vector<64x64xbf16>
    %c14 = arith.constant 14 : index
    %c0_132 = arith.constant 0 : index
    %c0_133 = arith.constant 0 : index
    %149 = vector.load %arg4[%c14, %c0_132, %c0_133] : memref<16x64x128xbf16, #tpu.memory_space<vmem>>, vector<1x64x128xbf16>
    %150 = vector.shape_cast %149 : vector<1x64x128xbf16> to vector<64x128xbf16>
    %cst_134 = arith.constant dense<0.000000e+00> : vector<64x128xf32>
    %151 = tpu.matmul %148, %150, %cst_134 {dimension_numbers = #tpu.dot_dimension_numbers<[1], [0], [0], [1], [0, 0, 1, 1], [], []>} : vector<64x64xbf16>, vector<64x128xbf16>, vector<64x128xf32> -> vector<64x128xf32>
    %152 = arith.addf %144, %151 : vector<64x128xf32>
    %c0_135 = arith.constant 0 : index
    %c2_136 = arith.constant 2 : index
    %c2_137 = arith.constant 2 : index
    %c0_138 = arith.constant 0 : index
    %153 = vector.load %arg14[%c0_135, %c2_136, %c2_137, %c0_138] : memref<4x10x16x64xf32, #tpu.memory_space<vmem>>, vector<1x8x8x64xf32>
    %154 = vector.shape_cast %153 : vector<1x8x8x64xf32> to vector<8x8x64xf32>
    %155 = vector.shape_cast %154 : vector<8x8x64xf32> to vector<64x64xf32>
    %156 = arith.truncf %155 : vector<64x64xf32> to vector<64x64xbf16>
    %c15 = arith.constant 15 : index
    %c0_139 = arith.constant 0 : index
    %c0_140 = arith.constant 0 : index
    %157 = vector.load %arg4[%c15, %c0_139, %c0_140] : memref<16x64x128xbf16, #tpu.memory_space<vmem>>, vector<1x64x128xbf16>
    %158 = vector.shape_cast %157 : vector<1x64x128xbf16> to vector<64x128xbf16>
    %cst_141 = arith.constant dense<0.000000e+00> : vector<64x128xf32>
    %159 = tpu.matmul %156, %158, %cst_141 {dimension_numbers = #tpu.dot_dimension_numbers<[1], [0], [0], [1], [0, 0, 1, 1], [], []>} : vector<64x64xbf16>, vector<64x128xbf16>, vector<64x128xf32> -> vector<64x128xf32>
    %160 = arith.addf %152, %159 : vector<64x128xf32>
    %c0_142 = arith.constant 0 : index
    %c0_143 = arith.constant 0 : index
    %161 = vector.load %arg5[%c0_142, %c0_143] : memref<1x128xf32, #tpu.memory_space<vmem>>, vector<1x128xf32>
    %162 = vector.broadcast %161 : vector<1x128xf32> to vector<64x128xf32>
    %163 = arith.addf %160, %162 : vector<64x128xf32>
    %cst_144 = arith.constant 0.000000e+00 : f32
    %164 = vector.broadcast %cst_144 : f32 to vector<64x128xf32>
    %165 = arith.maximumf %163, %164 : vector<64x128xf32>
    %c0_145 = arith.constant 0 : index
    %c0_146 = arith.constant 0 : index
    %166 = vector.load %arg6[%c0_145, %c0_146] : memref<64x128xf32, #tpu.memory_space<vmem>>, vector<64x128xf32>
    %167 = arith.addf %165, %166 : vector<64x128xf32>
    %cst_147 = arith.constant dense<0.000000e+00> : vector<64xf32>
    %168 = vector.multi_reduction <add>, %167, %cst_147 [1] : vector<64x128xf32> to vector<64xf32>
    %169 = vector.shape_cast %168 : vector<64xf32> to vector<64x1xf32>
    %cst_148 = arith.constant 1.280000e+02 : f32
    %170 = vector.broadcast %cst_148 : f32 to vector<64x1xf32>
    %171 = arith.divf %169, %170 : vector<64x1xf32>
    %172 = vector.broadcast %171 : vector<64x1xf32> to vector<64x128xf32>
    %173 = arith.subf %167, %172 : vector<64x128xf32>
    %174 = vector.broadcast %171 : vector<64x1xf32> to vector<64x128xf32>
    %175 = arith.subf %167, %174 : vector<64x128xf32>
    %176 = arith.mulf %173, %175 : vector<64x128xf32>
    %cst_149 = arith.constant dense<0.000000e+00> : vector<64xf32>
    %177 = vector.multi_reduction <add>, %176, %cst_149 [1] : vector<64x128xf32> to vector<64xf32>
    %178 = vector.shape_cast %177 : vector<64xf32> to vector<64x1xf32>
    %cst_150 = arith.constant 1.280000e+02 : f32
    %179 = vector.broadcast %cst_150 : f32 to vector<64x1xf32>
    %180 = arith.divf %178, %179 : vector<64x1xf32>
    %181 = vector.broadcast %171 : vector<64x1xf32> to vector<64x128xf32>
    %182 = arith.subf %167, %181 : vector<64x128xf32>
    %cst_151 = arith.constant 9.99999974E-6 : f32
    %183 = vector.broadcast %cst_151 : f32 to vector<64x1xf32>
    %184 = arith.addf %180, %183 : vector<64x1xf32>
    %185 = math.rsqrt %184 : vector<64x1xf32>
    %186 = vector.broadcast %185 : vector<64x1xf32> to vector<64x128xf32>
    %187 = arith.mulf %182, %186 : vector<64x128xf32>
    %c0_152 = arith.constant 0 : index
    %c0_153 = arith.constant 0 : index
    %188 = vector.load %arg7[%c0_152, %c0_153] : memref<1x128xf32, #tpu.memory_space<vmem>>, vector<1x128xf32>
    %189 = vector.broadcast %188 : vector<1x128xf32> to vector<64x128xf32>
    %190 = arith.mulf %187, %189 : vector<64x128xf32>
    %c0_154 = arith.constant 0 : index
    %c0_155 = arith.constant 0 : index
    %191 = vector.load %arg8[%c0_154, %c0_155] : memref<1x128xf32, #tpu.memory_space<vmem>>, vector<1x128xf32>
    %192 = vector.broadcast %191 : vector<1x128xf32> to vector<64x128xf32>
    %193 = arith.addf %190, %192 : vector<64x128xf32>
    %194 = arith.truncf %193 : vector<64x128xf32> to vector<64x128xbf16>
    %c0_156 = arith.constant 0 : index
    %c0_157 = arith.constant 0 : index
    %195 = vector.load %arg9[%c0_156, %c0_157] : memref<128x128xbf16, #tpu.memory_space<vmem>>, vector<128x128xbf16>
    %cst_158 = arith.constant dense<0.000000e+00> : vector<64x128xf32>
    %196 = tpu.matmul %194, %195, %cst_158 {dimension_numbers = #tpu.dot_dimension_numbers<[1], [0], [0], [1], [0, 0, 1, 1], [], []>} : vector<64x128xbf16>, vector<128x128xbf16>, vector<64x128xf32> -> vector<64x128xf32>
    %c0_159 = arith.constant 0 : index
    %c0_160 = arith.constant 0 : index
    %197 = vector.load %arg10[%c0_159, %c0_160] : memref<1x128xf32, #tpu.memory_space<vmem>>, vector<1x128xf32>
    %198 = vector.broadcast %197 : vector<1x128xf32> to vector<64x128xf32>
    %199 = arith.addf %196, %198 : vector<64x128xf32>
    %cst_161 = arith.constant 0.000000e+00 : f32
    %200 = vector.broadcast %cst_161 : f32 to vector<64x128xf32>
    %201 = arith.maximumf %199, %200 : vector<64x128xf32>
    %202 = arith.truncf %201 : vector<64x128xf32> to vector<64x128xbf16>
    %c0_162 = arith.constant 0 : index
    %c0_163 = arith.constant 0 : index
    %203 = vector.load %arg11[%c0_162, %c0_163] : memref<128x64xbf16, #tpu.memory_space<vmem>>, vector<128x64xbf16>
    %cst_164 = arith.constant dense<0.000000e+00> : vector<64x64xf32>
    %204 = tpu.matmul %202, %203, %cst_164 {dimension_numbers = #tpu.dot_dimension_numbers<[1], [0], [0], [1], [0, 0, 1, 1], [], []>} : vector<64x128xbf16>, vector<128x64xbf16>, vector<64x64xf32> -> vector<64x64xf32>
    %c0_165 = arith.constant 0 : index
    %c0_166 = arith.constant 0 : index
    %205 = vector.load %arg12[%c0_165, %c0_166] : memref<1x64xf32, #tpu.memory_space<vmem>>, vector<1x64xf32>
    %206 = vector.broadcast %205 : vector<1x64xf32> to vector<64x64xf32>
    %207 = arith.addf %204, %206 : vector<64x64xf32>
    %c0_167 = arith.constant 0 : index
    %c0_168 = arith.constant 0 : index
    %c0_169 = arith.constant 0 : index
    %208 = vector.load %arg13[%c0_167, %c0_168, %c0_169] : memref<1x64x64xf32, #tpu.memory_space<vmem>>, vector<1x64x64xf32>
    %209 = vector.shape_cast %208 : vector<1x64x64xf32> to vector<64x64xf32>
    %210 = vector.shape_cast %207 : vector<64x64xf32> to vector<1x64x64xf32>
    tpu.vector_store %arg13[%c0_167, %c0_168, %c0_169], %210 {strides = array<i32>} : memref<1x64x64xf32, #tpu.memory_space<vmem>>, vector<1x64x64xf32>,
    return
  }
  func.func @transform_0(%arg0: i32) -> (i32, i32, i32) {
    %c0_i32 = arith.constant 0 : i32
    %c0_i32_0 = arith.constant 0 : i32
    %c0_i32_1 = arith.constant 0 : i32
    return %arg0, %c0_i32, %c0_i32_0 : i32, i32, i32
  }
  func.func @transform_1(%arg0: i32) -> (i32, i32) {
    %c0_i32 = arith.constant 0 : i32
    %c0_i32_0 = arith.constant 0 : i32
    %c0_i32_1 = arith.constant 0 : i32
    return %c0_i32, %c0_i32_0 : i32, i32
  }
  func.func @transform_2(%arg0: i32) -> (i32, i32) {
    %c0_i32 = arith.constant 0 : i32
    %c0_i32_0 = arith.constant 0 : i32
    %c0_i32_1 = arith.constant 0 : i32
    return %c0_i32, %c0_i32_0 : i32, i32
  }
  func.func @transform_3(%arg0: i32) -> (i32, i32, i32) {
    %c0_i32 = arith.constant 0 : i32
    %c0_i32_0 = arith.constant 0 : i32
    %c0_i32_1 = arith.constant 0 : i32
    %c0_i32_2 = arith.constant 0 : i32
    return %c0_i32, %c0_i32_0, %c0_i32_1 : i32, i32, i32
  }
  func.func @transform_4(%arg0: i32) -> (i32, i32) {
    %c0_i32 = arith.constant 0 : i32
    %c0_i32_0 = arith.constant 0 : i32
    %c0_i32_1 = arith.constant 0 : i32
    return %c0_i32, %c0_i32_0 : i32, i32
  }
  func.func @transform_5(%arg0: i32) -> (i32, i32) {
    %c0_i32 = arith.constant 0 : i32
    %c0_i32_0 = arith.constant 0 : i32
    %c0_i32_1 = arith.constant 0 : i32
    return %c0_i32, %c0_i32_0 : i32, i32
  }
  func.func @transform_6(%arg0: i32) -> (i32, i32) {
    %c0_i32 = arith.constant 0 : i32
    %c0_i32_0 = arith.constant 0 : i32
    %c0_i32_1 = arith.constant 0 : i32
    return %c0_i32, %c0_i32_0 : i32, i32
  }
  func.func @transform_7(%arg0: i32) -> (i32, i32) {
    %c0_i32 = arith.constant 0 : i32
    %c0_i32_0 = arith.constant 0 : i32
    %c0_i32_1 = arith.constant 0 : i32
    return %c0_i32, %c0_i32_0 : i32, i32
  }
  func.func @transform_8(%arg0: i32) -> (i32, i32) {
    %c0_i32 = arith.constant 0 : i32
    %c0_i32_0 = arith.constant 0 : i32
    %c0_i32_1 = arith.constant 0 : i32
    return %c0_i32, %c0_i32_0 : i32, i32
  }
  func.func @transform_9(%arg0: i32) -> (i32, i32) {
    %c0_i32 = arith.constant 0 : i32
    %c0_i32_0 = arith.constant 0 : i32
    %c0_i32_1 = arith.constant 0 : i32
    return %c0_i32, %c0_i32_0 : i32, i32
  }
  func.func @transform_10(%arg0: i32) -> (i32, i32) {
    %c0_i32 = arith.constant 0 : i32
    %c0_i32_0 = arith.constant 0 : i32
    %c0_i32_1 = arith.constant 0 : i32
    return %c0_i32, %c0_i32_0 : i32, i32
  }
  func.func @transform_11(%arg0: i32) -> (i32, i32) {
    %c0_i32 = arith.constant 0 : i32
    %c0_i32_0 = arith.constant 0 : i32
    %c0_i32_1 = arith.constant 0 : i32
    return %c0_i32, %c0_i32_0 : i32, i32
  }
  func.func @transform_12(%arg0: i32) -> (i32, i32, i32) {
    %c0_i32 = arith.constant 0 : i32
    %c0_i32_0 = arith.constant 0 : i32
    %c0_i32_1 = arith.constant 0 : i32
    return %arg0, %c0_i32, %c0_i32_0 : i32, i32, i32
  }
}

</mosaic_0001>

<bundles_post_ra>
// kernel: encoder_forward.2
= control target key start
LH: loop header
LB: loop body
LE: loop exit
PB: predicated region body
PF: predicated region fallthrough
CT: control target
= control target key end

     0   :  { %s1270_s12 = smov 0   ;;  %s1456_s0 = inlined_call_operand.vmem [shape: bf16[512,192], index: 0, kind: input, shape index: {}]   ;;  %s1457_s1 = inlined_call_operand.vmem [shape: bf16[192,128], index: 1, kind: input, shape index: {}]   ;;  %s1458_s2 = inlined_call_operand.vmem [shape: f32[1,128], index: 2, kind: input, shape index: {}]   ;;  %s1459_s3 = inlined_call_operand.vmem [shape: bf16[512,128], index: 3, kind: output, shape index: {}]  }
   0x1 LB: > { %s915_s13 = sadd.s32 4294967295, %s1247_s12   ;;  %p919_p0 = scmp.ge.s32.totalorder %s1247_s12, 1  ;;  %s1247_s12 = sphi %s1270_s12, %s13_s12  }
   0x2   : > { %p139_p1 = scmp.lt.s32.totalorder %s1247_s12, 3 }
   0x4   : > { %p140_p2 = pnand %p919_p0, %p139_p1 }
   0x5   : > { %v1181_v0 = vld [vmem:[%s1457_s1] sm:$0xff] (!%p140_p2)   ;;  %v1249_v1 = vmov (!%p140_p2), 0   ;;  %s920_s16 = sshll.u32 (!%p140_p2), %s915_s13, 5  ;;  %v1182_v2 = vld [vmem:[%s1457_s1 + $0x8] sm:$0xff] (!%p140_p2)   ;;  %v1183_v3 = vld [vmem:[%s1457_s1 + $0x10] sm:$0xff] (!%p140_p2)   ;;  %vm457_vm0 = vcmask (!%p140_p2), 523264  }
   0x6   : > { %143 = sbr.rel (%p140_p2) target bundleno = 331 (0x14b), region = 32  ;;  %506 = vmatprep.subr.bf16.mxu0 (!%p140_p2), %v1249_v1  ;;  %1148 = vmatprep.subr.bf16.mxu1 (!%p140_p2), %v1249_v1  ;;  %p165_p3 = scmp.lt.s32.totalorder (!%p140_p2), %s920_s16, 63  ;;  %v1184_v4 = vld [vmem:[%s1457_s1 + $0x18] sm:$0xff] (!%p140_p2)   ;;  %v1185_v6 = vld [vmem:[%s1457_s1 + $0x20] sm:$0xff] (!%p140_p2)   ;;  %v1186_v8 = vld [vmem:[%s1457_s1 + $0x28] sm:$0xff] (!%p140_p2)  }
   0x7   : > { %507 = vmatpush1.bf16.msra.mxu0 (!%p140_p2), %v1181_v0  ;;  %1160 = vmatpush1.bf16.msra.mxu1 (!%p140_p2), %v1181_v0  ;;  %v1187_v9 = vld [vmem:[%s1457_s1 + $0x30] sm:$0xff] (!%p140_p2)   ;;  %v1188_v10 = vld [vmem:[%s1457_s1 + $0x38] sm:$0xff] (!%p140_p2)   ;;  %v1189_v11 = vld [vmem:[%s1457_s1 + $0x40] sm:$0xff] (!%p140_p2)  }
   0x8   : > { %508 = vmatprep.subr.bf16.mxu0 (!%p140_p2), %v1249_v1  ;;  %1149 = vmatprep.subr.bf16.mxu1 (!%p140_p2), %v1249_v1  ;;  %v1190_v12 = vld [vmem:[%s1457_s1 + $0x48] sm:$0xff] (!%p140_p2)   ;;  %v1191_v13 = vld [vmem:[%s1457_s1 + $0x50] sm:$0xff] (!%p140_p2)   ;;  %v1192_v14 = vld [vmem:[%s1457_s1 + $0x58] sm:$0xff] (!%p140_p2)  }
   0x9   : > { %v1397_v45 = vld [vmem:[%s1458_s2] ss:$0 sm:$0xff] (!%p140_p2) }
   0xb   : > { %509 = vmatpush1.bf16.msra.mxu0 (!%p140_p2), %v1182_v2  ;;  %1161 = vmatpush1.bf16.msra.mxu1 (!%p140_p2), %v1182_v2 }
   0xc   : > { %510 = vmatprep.subr.bf16.mxu0 (!%p140_p2), %v1249_v1  ;;  %1150 = vmatprep.subr.bf16.mxu1 (!%p140_p2), %v1249_v1 }
   0xd   : > { %s1461_s16 = smov (!%p165_p3, %s920_s16), 63 }
   0xe   : > { %s1020_s21 = sshll.u32 %s1461_s16, 3  ;;  %s924_s20 = sshll.u32 %s1461_s16, 2 }
   0xf   : > { %511 = vmatpush1.bf16.msra.mxu0 %v1183_v3  ;;  %1162 = vmatpush1.bf16.msra.mxu1 %v1183_v3  ;;  %s1302_s26 = scalar_lea.vmem %s1456_s0, %s1020_s21  ;;  %s1407_s23 = scalar_lea.vmem %s1459_s3, %s924_s20 }
  0x10   : > { %512 = vmatprep.subr.bf16.mxu0 %v1249_v1  ;;  %1151 = vmatprep.subr.bf16.mxu1 %v1249_v1  ;;  %v1195_v5 = vld [vmem:[%s1302_s26 + $0x4] ss:$8 sps:$4 sm:$0xff]   ;;  %v1193_v15 = vld [vmem:[%s1302_s26] ss:$8 sps:$4 sm:$0xff]   ;;  %v1199_v17 = vld [vmem:[%s1302_s26 + $0x14] ss:$8 sps:$4 sm:$0xff]  }
  0x11   : > { %v1198_v7 = vld [vmem:[%s1302_s26 + $0x84] ss:$8 sps:$4 sm:$0xff]   ;;  %970 = vmatprep.mubr.msk.bf16.mxu0 %vm457_vm0, %v1195_v5  ;;  %v1196_v16 = vld [vmem:[%s1302_s26 + $0x80] ss:$8 sps:$4 sm:$0xff]   ;;  %v1201_v18 = vld [vmem:[%s1302_s26 + $0x94] ss:$8 sps:$4 sm:$0xff]  }
  0x12   : > { %978 = vmatprep.mubr.msk.bf16.mxu1 %vm457_vm0, %v1198_v7  ;;  %v1203_v19 = vld [vmem:[%s1302_s26 + $0x10] ss:$8 sps:$4 sm:$0xff]   ;;  %v1205_v21 = vld [vmem:[%s1302_s26 + $0x24] ss:$8 sps:$4 sm:$0xff]   ;;  %v1209_v23 = vld [vmem:[%s1302_s26 + $0x20] ss:$8 sps:$4 sm:$0xff]  }
  0x13   : > { %513 = vmatpush1.bf16.msra.mxu0 %v1184_v4  ;;  %1163 = vmatpush1.bf16.msra.mxu1 %v1184_v4  ;;  %v1204_v20 = vld [vmem:[%s1302_s26 + $0x90] ss:$8 sps:$4 sm:$0xff]   ;;  %v1207_v22 = vld [vmem:[%s1302_s26 + $0xa4] ss:$8 sps:$4 sm:$0xff]   ;;  %v1210_v24 = vld [vmem:[%s1302_s26 + $0xa0] ss:$8 sps:$4 sm:$0xff]  }
  0x14   : > { %514 = vmatprep.subr.bf16.mxu0 %v1249_v1  ;;  %1152 = vmatprep.subr.bf16.mxu1 %v1249_v1  ;;  %v1211_v25 = vld [vmem:[%s1302_s26 + $0x34] ss:$8 sps:$4 sm:$0xff]   ;;  %v1215_v27 = vld [vmem:[%s1302_s26 + $0x30] ss:$8 sps:$4 sm:$0xff]   ;;  %v1217_v29 = vld [vmem:[%s1302_s26 + $0x44] ss:$8 sps:$4 sm:$0xff]  }
  0x15   : > { %v1213_v26 = vld [vmem:[%s1302_s26 + $0xb4] ss:$8 sps:$4 sm:$0xff]   ;;  %v1216_v28 = vld [vmem:[%s1302_s26 + $0xb0] ss:$8 sps:$4 sm:$0xff]   ;;  %v1219_v30 = vld [vmem:[%s1302_s26 + $0xc4] ss:$8 sps:$4 sm:$0xff]  }
  0x16   : > { %v1221_v31 = vld [vmem:[%s1302_s26 + $0x40] ss:$8 sps:$4 sm:$0xff]   ;;  %v1223_v33 = vld [vmem:[%s1302_s26 + $0x54] ss:$8 sps:$4 sm:$0xff]   ;;  %v1227_v35 = vld [vmem:[%s1302_s26 + $0x50] ss:$8 sps:$4 sm:$0xff]  }
  0x17   : > { %515 = vmatpush1.bf16.msra.mxu0 %v1185_v6  ;;  %1164 = vmatpush1.bf16.msra.mxu1 %v1185_v6  ;;  %v1222_v32 = vld [vmem:[%s1302_s26 + $0xc0] ss:$8 sps:$4 sm:$0xff]   ;;  %v1225_v34 = vld [vmem:[%s1302_s26 + $0xd4] ss:$8 sps:$4 sm:$0xff]   ;;  %v1228_v36 = vld [vmem:[%s1302_s26 + $0xd0] ss:$8 sps:$4 sm:$0xff]  }
  0x18   : > { %516 = vmatprep.subr.bf16.mxu0 %v1249_v1  ;;  %1153 = vmatprep.subr.bf16.mxu1 %v1249_v1  ;;  %v1229_v37 = vld [vmem:[%s1302_s26 + $0x64] ss:$8 sps:$4 sm:$0xff]   ;;  %v1233_v39 = vld [vmem:[%s1302_s26 + $0x60] ss:$8 sps:$4 sm:$0xff]   ;;  %v1235_v41 = vld [vmem:[%s1302_s26 + $0x74] ss:$8 sps:$4 sm:$0xff]  }
  0x19   : > { %v1231_v38 = vld [vmem:[%s1302_s26 + $0xe4] ss:$8 sps:$4 sm:$0xff]   ;;  %v1234_v40 = vld [vmem:[%s1302_s26 + $0xe0] ss:$8 sps:$4 sm:$0xff]   ;;  %v1237_v42 = vld [vmem:[%s1302_s26 + $0xf4] ss:$8 sps:$4 sm:$0xff]  }
  0x1a   : > { %v1239_v43 = vld [vmem:[%s1302_s26 + $0x70] ss:$8 sps:$4 sm:$0xff]  }
  0x1b   : > { %517 = vmatpush1.bf16.msra.mxu0 %v1186_v8  ;;  %1165 = vmatpush1.bf16.msra.mxu1 %v1186_v8  ;;  %v1240_v44 = vld [vmem:[%s1302_s26 + $0xf0] ss:$8 sps:$4 sm:$0xff]  }
  0x1c   : > { %518 = vmatprep.subr.bf16.mxu0 %v1249_v1  ;;  %1154 = vmatprep.subr.bf16.mxu1 %v1249_v1 }
  0x1f   : > { %519 = vmatpush1.bf16.msra.mxu0 %v1187_v9  ;;  %1166 = vmatpush1.bf16.msra.mxu1 %v1187_v9 }
  0x20   : > { %520 = vmatprep.subr.bf16.mxu0 %v1249_v1  ;;  %1155 = vmatprep.subr.bf16.mxu1 %v1249_v1 }
  0x23   : > { %521 = vmatpush1.bf16.msra.mxu0 %v1188_v10  ;;  %1167 = vmatpush1.bf16.msra.mxu1 %v1188_v10 }
  0x24   : > { %522 = vmatprep.subr.bf16.mxu0 %v1249_v1  ;;  %1156 = vmatprep.subr.bf16.mxu1 %v1249_v1 }
  0x27   : > { %523 = vmatpush1.bf16.msra.mxu0 %v1189_v11  ;;  %1168 = vmatpush1.bf16.msra.mxu1 %v1189_v11 }
  0x28   : > { %524 = vmatprep.subr.bf16.mxu0 %v1249_v1  ;;  %1157 = vmatprep.subr.bf16.mxu1 %v1249_v1 }
  0x2b   : > { %525 = vmatpush1.bf16.msra.mxu0 %v1190_v12  ;;  %1169 = vmatpush1.bf16.msra.mxu1 %v1190_v12 }
  0x2c   : > { %526 = vmatprep.subr.bf16.mxu0 %v1249_v1  ;;  %1158 = vmatprep.subr.bf16.mxu1 %v1249_v1 }
  0x2f   : > { %527 = vmatpush1.bf16.msra.mxu0 %v1191_v13  ;;  %1170 = vmatpush1.bf16.msra.mxu1 %v1191_v13 }
  0x30   : > { %528 = vmatprep.subr.bf16.mxu0 %v1249_v1  ;;  %1159 = vmatprep.subr.bf16.mxu1 %v1249_v1 }
  0x33   : > { %529 = vmatpush1.bf16.msra.mxu0 %v1192_v14  ;;  %1171 = vmatpush1.bf16.msra.mxu1 %v1192_v14 }
  0x36   : > { %539 = vmatmul.mubr.bf16.vlgmr.msra.gmra.mrb[0].mxu0 %v1193_v15  ;;  %603 = vmatmul.mubr.bf16.vlgmr.msra.gmra.mrb[0].mxu1 %v1196_v16 }
  0x37   : > { %971 = vmatprep.mubr.msk.bf16.mxu0 %vm457_vm0, %v1199_v17  ;;  %979 = vmatprep.mubr.msk.bf16.mxu1 %vm457_vm0, %v1201_v18 }
  0x3e   : > { %547 = vmatmul.mubr.bf16.gmra.mrb[4].mxu0 %v1203_v19  ;;  %611 = vmatmul.mubr.bf16.gmra.mrb[4].mxu1 %v1204_v20 }
  0x3f   : > { %972 = vmatprep.mubr.msk.bf16.mxu0 %vm457_vm0, %v1205_v21  ;;  %980 = vmatprep.mubr.msk.bf16.mxu1 %vm457_vm0, %v1207_v22 }
  0x46   : > { %555 = vmatmul.mubr.bf16.gmra.mrb[8].mxu0 %v1209_v23  ;;  %619 = vmatmul.mubr.bf16.gmra.mrb[8].mxu1 %v1210_v24 }
  0x47   : > { %973 = vmatprep.mubr.msk.bf16.mxu0 %vm457_vm0, %v1211_v25  ;;  %981 = vmatprep.mubr.msk.bf16.mxu1 %vm457_vm0, %v1213_v26 }
  0x4e   : > { %563 = vmatmul.mubr.bf16.gmra.mrb[12].mxu0 %v1215_v27  ;;  %627 = vmatmul.mubr.bf16.gmra.mrb[12].mxu1 %v1216_v28 }
  0x4f   : > { %974 = vmatprep.mubr.msk.bf16.mxu0 %vm457_vm0, %v1217_v29  ;;  %982 = vmatprep.mubr.msk.bf16.mxu1 %vm457_vm0, %v1219_v30 }
  0x56   : > { %571 = vmatmul.mubr.bf16.gmra.mrb[16].mxu0 %v1221_v31  ;;  %635 = vmatmul.mubr.bf16.gmra.mrb[16].mxu1 %v1222_v32 }
  0x57   : > { %975 = vmatprep.mubr.msk.bf16.mxu0 %vm457_vm0, %v1223_v33  ;;  %983 = vmatprep.mubr.msk.bf16.mxu1 %vm457_vm0, %v1225_v34 }
  0x5e   : > { %579 = vmatmul.mubr.bf16.gmra.mrb[20].mxu0 %v1227_v35  ;;  %643 = vmatmul.mubr.bf16.gmra.mrb[20].mxu1 %v1228_v36 }
  0x5f   : > { %976 = vmatprep.mubr.msk.bf16.mxu0 %vm457_vm0, %v1229_v37  ;;  %984 = vmatprep.mubr.msk.bf16.mxu1 %vm457_vm0, %v1231_v38 }
  0x66   : > { %587 = vmatmul.mubr.bf16.gmra.mrb[24].mxu0 %v1233_v39  ;;  %651 = vmatmul.mubr.bf16.gmra.mrb[24].mxu1 %v1234_v40 }
  0x67   : > { %977 = vmatprep.mubr.msk.bf16.mxu0 %vm457_vm0, %v1235_v41  ;;  %985 = vmatprep.mubr.msk.bf16.mxu1 %vm457_vm0, %v1237_v42 }
  0x6e   : > { %595 = vmatmul.mubr.bf16.gmra.mrb[28].mxu0 %v1239_v43  ;;  %659 = vmatmul.mubr.bf16.gmra.mrb[28].mxu1 %v1240_v44 }
 0x109   : > { %v540_v46 = vpop.f32.mrb[0].mxu0  ;;  %v604_v47 = vpop.f32.mrb[0].mxu1 }
 0x10a   : > { %v541_v48 = vadd.f32 %v1397_v45, %v540_v46  ;;  %v605_v49 = vadd.f32 %v1397_v45, %v604_v47  ;;  %v542_v50 = vpop.f32.mrb[1].mxu0  ;;  %v606_v51 = vpop.f32.mrb[1].mxu1 }
 0x10b   : > { %v543_v52 = vpop.f32.mrb[2].mxu0  ;;  %v607_v53 = vpop.f32.mrb[2].mxu1 }
 0x10c   : > { %v544_v54 = vadd.f32 %v1397_v45, %v543_v52  ;;  %v608_v55 = vadd.f32 %v1397_v45, %v607_v53  ;;  %v545_v56 = vpop.f32.mrb[3].mxu0  ;;  %v609_v57 = vpop.f32.mrb[3].mxu1  ;;  %v667_v58 = vmax.f32 %v541_v48, 0.0  ;;  %v683_v59 = vmax.f32 %v605_v49, 0.0 }
 0x10e   : > { %v668_v60 = vmax.f32 %v544_v54, 0.0  ;;  %v684_v61 = vmax.f32 %v608_v55, 0.0 }
 0x110   : > { %v1056_v62 = vpack.c.bf16 %v668_v60, %v667_v58  ;;  %v1096_v63 = vpack.c.bf16 %v684_v61, %v683_v59 }
 0x111   : > { %v548_v0 = vpop.f32.mrb[4].mxu0  ;;  %v612_v1 = vpop.f32.mrb[4].mxu1 }
 0x112   : > { %1057 = vst [vmem:[%s1407_s23] sm:$0xff] %v1056_v62   ;;  %1140 = vst [vmem:[%s1407_s23 + $0x40] sm:$0xff] %v1096_v63   ;;  %v549_v2 = vadd.f32 %v1397_v45, %v548_v0  ;;  %v613_v3 = vadd.f32 %v1397_v45, %v612_v1  ;;  %v550_v4 = vpop.f32.mrb[5].mxu0  ;;  %v614_v5 = vpop.f32.mrb[5].mxu1 }
 0x113   : > { %v551_v6 = vpop.f32.mrb[6].mxu0  ;;  %v615_v7 = vpop.f32.mrb[6].mxu1 }
 0x114   : > { %v552_v8 = vadd.f32 %v1397_v45, %v551_v6  ;;  %v616_v9 = vadd.f32 %v1397_v45, %v615_v7  ;;  %v553_v10 = vpop.f32.mrb[7].mxu0  ;;  %v617_v11 = vpop.f32.mrb[7].mxu1  ;;  %v669_v12 = vmax.f32 %v549_v2, 0.0  ;;  %v685_v13 = vmax.f32 %v613_v3, 0.0 }
 0x116   : > { %v670_v14 = vmax.f32 %v552_v8, 0.0  ;;  %v686_v15 = vmax.f32 %v616_v9, 0.0 }
 0x118   : > { %v1061_v16 = vpack.c.bf16 %v670_v14, %v669_v12  ;;  %v1101_v17 = vpack.c.bf16 %v686_v15, %v685_v13 }
 0x119   : > { %v556_v18 = vpop.f32.mrb[8].mxu0  ;;  %v620_v19 = vpop.f32.mrb[8].mxu1 }
 0x11a   : > { %1133 = vst [vmem:[%s1407_s23 + $0x8] sm:$0xff] %v1061_v16   ;;  %1141 = vst [vmem:[%s1407_s23 + $0x48] sm:$0xff] %v1101_v17   ;;  %v557_v20 = vadd.f32 %v1397_v45, %v556_v18  ;;  %v621_v21 = vadd.f32 %v1397_v45, %v620_v19  ;;  %v558_v22 = vpop.f32.mrb[9].mxu0  ;;  %v622_v23 = vpop.f32.mrb[9].mxu1 }
 0x11b   : > { %v559_v24 = vpop.f32.mrb[10].mxu0  ;;  %v623_v25 = vpop.f32.mrb[10].mxu1 }
 0x11c   : > { %v560_v26 = vadd.f32 %v1397_v45, %v559_v24  ;;  %v624_v27 = vadd.f32 %v1397_v45, %v623_v25  ;;  %v561_v28 = vpop.f32.mrb[11].mxu0  ;;  %v625_v29 = vpop.f32.mrb[11].mxu1  ;;  %v671_v30 = vmax.f32 %v557_v20, 0.0  ;;  %v687_v31 = vmax.f32 %v621_v21, 0.0 }
 0x11e   : > { %v672_v32 = vmax.f32 %v560_v26, 0.0  ;;  %v688_v33 = vmax.f32 %v624_v27, 0.0 }
 0x120   : > { %v1066_v34 = vpack.c.bf16 %v672_v32, %v671_v30  ;;  %v1106_v35 = vpack.c.bf16 %v688_v33, %v687_v31 }
 0x121   : > { %v564_v36 = vpop.f32.mrb[12].mxu0  ;;  %v628_v37 = vpop.f32.mrb[12].mxu1 }
 0x122   : > { %1134 = vst [vmem:[%s1407_s23 + $0x10] sm:$0xff] %v1066_v34   ;;  %1142 = vst [vmem:[%s1407_s23 + $0x50] sm:$0xff] %v1106_v35   ;;  %v565_v38 = vadd.f32 %v1397_v45, %v564_v36  ;;  %v629_v39 = vadd.f32 %v1397_v45, %v628_v37  ;;  %v566_v40 = vpop.f32.mrb[13].mxu0  ;;  %v630_v41 = vpop.f32.mrb[13].mxu1 }
 0x123   : > { %v567_v42 = vpop.f32.mrb[14].mxu0  ;;  %v631_v43 = vpop.f32.mrb[14].mxu1 }
 0x124   : > { %v568_v44 = vadd.f32 %v1397_v45, %v567_v42  ;;  %v632_v46 = vadd.f32 %v1397_v45, %v631_v43  ;;  %v569_v47 = vpop.f32.mrb[15].mxu0  ;;  %v633_v48 = vpop.f32.mrb[15].mxu1  ;;  %v673_v49 = vmax.f32 %v565_v38, 0.0  ;;  %v689_v50 = vmax.f32 %v629_v39, 0.0 }
 0x126   : > { %v674_v51 = vmax.f32 %v568_v44, 0.0  ;;  %v690_v52 = vmax.f32 %v632_v46, 0.0 }
 0x128   : > { %v1071_v53 = vpack.c.bf16 %v674_v51, %v673_v49  ;;  %v1111_v54 = vpack.c.bf16 %v690_v52, %v689_v50 }
 0x129   : > { %v572_v55 = vpop.f32.mrb[16].mxu0  ;;  %v636_v56 = vpop.f32.mrb[16].mxu1 }
 0x12a   : > { %1135 = vst [vmem:[%s1407_s23 + $0x18] sm:$0xff] %v1071_v53   ;;  %1143 = vst [vmem:[%s1407_s23 + $0x58] sm:$0xff] %v1111_v54   ;;  %v573_v57 = vadd.f32 %v1397_v45, %v572_v55  ;;  %v637_v58 = vadd.f32 %v1397_v45, %v636_v56  ;;  %v574_v59 = vpop.f32.mrb[17].mxu0  ;;  %v638_v60 = vpop.f32.mrb[17].mxu1 }
 0x12b   : > { %v575_v61 = vpop.f32.mrb[18].mxu0  ;;  %v639_v62 = vpop.f32.mrb[18].mxu1 }
 0x12c   : > { %v576_v63 = vadd.f32 %v1397_v45, %v575_v61  ;;  %v640_v0 = vadd.f32 %v1397_v45, %v639_v62  ;;  %v577_v1 = vpop.f32.mrb[19].mxu0  ;;  %v641_v2 = vpop.f32.mrb[19].mxu1  ;;  %v675_v3 = vmax.f32 %v573_v57, 0.0  ;;  %v691_v4 = vmax.f32 %v637_v58, 0.0 }
 0x12e   : > { %v676_v5 = vmax.f32 %v576_v63, 0.0  ;;  %v692_v6 = vmax.f32 %v640_v0, 0.0 }
 0x130   : > { %v1076_v7 = vpack.c.bf16 %v676_v5, %v675_v3  ;;  %v1116_v8 = vpack.c.bf16 %v692_v6, %v691_v4 }
 0x131   : > { %v580_v9 = vpop.f32.mrb[20].mxu0  ;;  %v644_v10 = vpop.f32.mrb[20].mxu1 }
 0x132   : > { %1136 = vst [vmem:[%s1407_s23 + $0x20] sm:$0xff] %v1076_v7   ;;  %1144 = vst [vmem:[%s1407_s23 + $0x60] sm:$0xff] %v1116_v8   ;;  %v581_v11 = vadd.f32 %v1397_v45, %v580_v9  ;;  %v645_v12 = vadd.f32 %v1397_v45, %v644_v10  ;;  %v582_v13 = vpop.f32.mrb[21].mxu0  ;;  %v646_v14 = vpop.f32.mrb[21].mxu1 }
 0x133   : > { %v583_v15 = vpop.f32.mrb[22].mxu0  ;;  %v647_v16 = vpop.f32.mrb[22].mxu1 }
 0x134   : > { %v584_v17 = vadd.f32 %v1397_v45, %v583_v15  ;;  %v648_v18 = vadd.f32 %v1397_v45, %v647_v16  ;;  %v585_v19 = vpop.f32.mrb[23].mxu0  ;;  %v649_v20 = vpop.f32.mrb[23].mxu1  ;;  %v677_v21 = vmax.f32 %v581_v11, 0.0  ;;  %v693_v22 = vmax.f32 %v645_v12, 0.0 }
 0x136   : > { %v678_v23 = vmax.f32 %v584_v17, 0.0  ;;  %v694_v24 = vmax.f32 %v648_v18, 0.0 }
 0x138   : > { %v1081_v25 = vpack.c.bf16 %v678_v23, %v677_v21  ;;  %v1121_v26 = vpack.c.bf16 %v694_v24, %v693_v22 }
 0x139   : > { %v588_v27 = vpop.f32.mrb[24].mxu0  ;;  %v652_v28 = vpop.f32.mrb[24].mxu1 }
 0x13a   : > { %1137 = vst [vmem:[%s1407_s23 + $0x28] sm:$0xff] %v1081_v25   ;;  %1145 = vst [vmem:[%s1407_s23 + $0x68] sm:$0xff] %v1121_v26   ;;  %v589_v29 = vadd.f32 %v1397_v45, %v588_v27  ;;  %v653_v30 = vadd.f32 %v1397_v45, %v652_v28  ;;  %v590_v31 = vpop.f32.mrb[25].mxu0  ;;  %v654_v32 = vpop.f32.mrb[25].mxu1 }
 0x13b   : > { %v591_v33 = vpop.f32.mrb[26].mxu0  ;;  %v655_v34 = vpop.f32.mrb[26].mxu1 }
 0x13c   : > { %v592_v35 = vadd.f32 %v1397_v45, %v591_v33  ;;  %v656_v36 = vadd.f32 %v1397_v45, %v655_v34  ;;  %v593_v37 = vpop.f32.mrb[27].mxu0  ;;  %v657_v38 = vpop.f32.mrb[27].mxu1  ;;  %v679_v39 = vmax.f32 %v589_v29, 0.0  ;;  %v695_v40 = vmax.f32 %v653_v30, 0.0 }
 0x13e   : > { %v680_v41 = vmax.f32 %v592_v35, 0.0  ;;  %v696_v42 = vmax.f32 %v656_v36, 0.0 }
 0x140   : > { %v1086_v43 = vpack.c.bf16 %v680_v41, %v679_v39  ;;  %v1126_v44 = vpack.c.bf16 %v696_v42, %v695_v40 }
 0x141   : > { %v596_v46 = vpop.f32.mrb[28].mxu0  ;;  %v660_v47 = vpop.f32.mrb[28].mxu1 }
 0x142   : > { %1138 = vst [vmem:[%s1407_s23 + $0x30] sm:$0xff] %v1086_v43   ;;  %1146 = vst [vmem:[%s1407_s23 + $0x70] sm:$0xff] %v1126_v44   ;;  %v597_v48 = vadd.f32 %v1397_v45, %v596_v46  ;;  %v661_v49 = vadd.f32 %v1397_v45, %v660_v47  ;;  %v598_v50 = vpop.f32.mrb[29].mxu0  ;;  %v662_v51 = vpop.f32.mrb[29].mxu1 }
 0x143   : > { %v599_v52 = vpop.f32.mrb[30].mxu0  ;;  %v663_v53 = vpop.f32.mrb[30].mxu1 }
 0x144   : > { %v600_v54 = vadd.f32 %v1397_v45, %v599_v52  ;;  %v664_v55 = vadd.f32 %v1397_v45, %v663_v53  ;;  %v601_v56 = vpop.f32.mrb[31].mxu0  ;;  %v665_v57 = vpop.f32.mrb[31].mxu1  ;;  %v681_v58 = vmax.f32 %v597_v48, 0.0  ;;  %v697_v59 = vmax.f32 %v661_v49, 0.0 }
 0x146   : > { %v682_v60 = vmax.f32 %v600_v54, 0.0  ;;  %v698_v61 = vmax.f32 %v664_v55, 0.0 }
 0x148   : > { %v1091_v62 = vpack.c.bf16 %v682_v60, %v681_v58  ;;  %v1131_v63 = vpack.c.bf16 %v698_v61, %v697_v59 }
 0x14a   : > { %1139 = vst [vmem:[%s1407_s23 + $0x38] sm:$0xff] %v1091_v62   ;;  %1147 = vst [vmem:[%s1407_s23 + $0x78] sm:$0xff] %v1131_v63  }
 0x14b PF: > { %s13_s12 = sadd.s32 1, %s1247_s12  }
 0x14c   : > { %p10_p4 = scmp.ge.s32.totalorder %s13_s12, 4  }
 0x14e   :  { %12 = sbr.rel (!%p10_p4) target bundleno = 1 (0x1), region = 62 }

// kernel: encoder_forward.3
= control target key start
LH: loop header
LB: loop body
LE: loop exit
PB: predicated region body
PF: predicated region fallthrough
CT: control target
= control target key end

     0   :  { %17 = vsyncpa [#allocation4], 0  ;;  %s7000_s0 = inlined_call_operand.vmem [shape: bf16[2,256,512], index: 0, kind: input, shape index: {}]   ;;  %s7001_s1 = inlined_call_operand.vmem [shape: bf16[512,64], index: 1, kind: input, shape index: {}]   ;;  %s7002_s2 = inlined_call_operand.vmem [shape: f32[1,64], index: 2, kind: input, shape index: {}]   ;;  %s7003_s3 = inlined_call_operand.vmem [shape: bf16[16,64,128], index: 3, kind: input, shape index: {}]   ;;  %s7004_s4 = inlined_call_operand.vmem [shape: f32[1,128], index: 4, kind: input, shape index: {}]   ;;  %s7005_s5 = inlined_call_operand.vmem [shape: f32[64,128], index: 5, kind: input, shape index: {}]   ;;  %s7006_s6 = inlined_call_operand.vmem [shape: f32[1,128], index: 6, kind: input, shape index: {}]   ;;  %s7007_s7 = inlined_call_operand.vmem [shape: f32[1,128], index: 7, kind: input, shape index: {}]   ;;  %s7008_s8 = inlined_call_operand.vmem [shape: bf16[128,128], index: 8, kind: input, shape index: {}]   ;;  %s7009_s9 = inlined_call_operand.vmem [shape: f32[1,128], index: 9, kind: input, shape index: {}]   ;;  %s7010_s10 = inlined_call_operand.vmem [shape: bf16[128,64], index: 10, kind: input, shape index: {}]   ;;  %s7011_s11 = inlined_call_operand.vmem [shape: f32[1,64], index: 11, kind: input, shape index: {}]   ;;  %s7012_s12 = inlined_call_operand.hbm [shape: f32[2,64,64], index: 12, kind: output, shape index: {}]  }
   0x1   :  { %19 = vsyncpa [#allocation4 + $0x1], 0  ;;  %s5723_s21 = smov 0   ;;  %s5725_s22 = smov 0  }
   0x2   :  { %s5727_s23 = smov 0   ;;  %s5729_s24 = smov 0  }
   0x3 LB: > { %7014 = sst [smem:[#allocation6_spill]] %s5648_s23  ;;  %s5744_s25 = sadd.s32 4294967295, %s5652_s24   ;;  %s5652_s24 = sphi %s5729_s24, %s7045_s24   ;;  %s5648_s23 = sphi %s5727_s23, %s7042_s23   ;;  %s5644_s22 = sphi %s5725_s22, %s7044_s22   ;;  %s5640_s21 = sphi %s5723_s21, %s7043_s21  }
   0x4   : > { %s4128_s26 = sadd.s32 4294967294, %s5652_s24   ;;  %s5748_s27 = sadd.s32 1, %s5652_s24  }
   0x5   : > { %s289_s28 = sadd.s32 1, %s5648_s23  ;;  %s286_s29 = ssub.s32 %s5652_s24, %s5748_s27 }
   0x6   : > { %p299_p0 = scmp.ne.s32.totalorder %s5648_s23, %s5644_s22  ;;  %p287_p1 = scmp.eq.s32.totalorder %s286_s29, 0 }
   0x7   : > { %p300_p2 = scmp.eq.s32.totalorder %s5744_s25, 1  ;;  %p305_p3 = scmp.ne.s32.totalorder %s5644_s22, %s5640_s21 }
   0x8   : > { %p306_p4 = scmp.eq.s32.totalorder %s4128_s26, 1  ;;  %p4131_p7 = scmp.ge.s32.totalorder %s5652_s24, 1 }
   0x9   : > { %s5759_s30 = scalar_select %p287_p1, %s5648_s23, %s289_s28  }
   0xa   : > { %p5761_p5 = por %p300_p2, %p299_p0  ;;  %p5765_p6 = por %p306_p4, %p305_p3 }
   0xb   : > { %7015 = sst [smem:[#allocation7_spill]] %s5759_s30  ;;  %p365_p8 = scmp.lt.s32.totalorder %s5652_s24, 3 }
   0xd   : > { %p366_p9 = pnand %p4131_p7, %p365_p8 }
   0xe   : > { %v5366_v0 = vld [vmem:[%s7001_s1 + $0x40] sm:$0xff] (!%p366_p9)   ;;  %v5368_v2 = vld [vmem:[%s7001_s1 + $0x48] sm:$0xff] (!%p366_p9)   ;;  %p407_p10 = scmp.lt.s32.totalorder (!%p366_p9), %s5744_s25, 1  ;;  %v5370_v4 = vld [vmem:[%s7001_s1 + $0x50] sm:$0xff] (!%p366_p9)   ;;  %vm1414_vm0 = vcmask (!%p366_p9), 523264   ;;  %s404_s28 = sand.u32 (!%p366_p9), 1, %s5644_s22  }
   0xf   : > { %369 = sbr.rel (%p366_p9) target bundleno = 1719 (0x6b7), region = 68  ;;  %v5367_v1 = vld [vmem:[%s7001_s1] sm:$0xff] (!%p366_p9)   ;;  %5188 = vmatprep.subr.bf16.mxu1 (!%p366_p9), %v5366_v0  ;;  %4508 = vmatprep.subr.bf16.mxu0 (!%p366_p9), %v5366_v0  ;;  %v5369_v3 = vld [vmem:[%s7001_s1 + $0x8] sm:$0xff] (!%p366_p9)   ;;  %v5371_v5 = vld [vmem:[%s7001_s1 + $0x10] sm:$0xff] (!%p366_p9)   ;;  %s4507_s17 = sshll.u32 (!%p366_p9), %s5744_s25, 10 }
  0x10   : > { %5196 = vmatpush3.bf16.msra.mxu1 (!%p366_p9), %v5367_v1  ;;  %4509 = vmatpush3.bf16.msra.mxu0 (!%p366_p9), %v5367_v1  ;;  %v5372_v6 = vld [vmem:[%s7001_s1 + $0x58] sm:$0xff] (!%p366_p9)   ;;  %v5374_v8 = vld [vmem:[%s7001_s1 + $0x60] sm:$0xff] (!%p366_p9)   ;;  %v5376_v10 = vld [vmem:[%s7001_s1 + $0x68] sm:$0xff] (!%p366_p9)   ;;  %s6950_s26 = scalar_lea.hbm (!%p366_p9), %s7012_s12, %s4507_s17 }
  0x11   : > { %5189 = vmatprep.subr.bf16.mxu1 (!%p366_p9), %v5368_v2  ;;  %4510 = vmatprep.subr.bf16.mxu0 (!%p366_p9), %v5368_v2  ;;  %v5373_v7 = vld [vmem:[%s7001_s1 + $0x18] sm:$0xff] (!%p366_p9)   ;;  %v5375_v9 = vld [vmem:[%s7001_s1 + $0x20] sm:$0xff] (!%p366_p9)   ;;  %v5377_v12 = vld [vmem:[%s7001_s1 + $0x28] sm:$0xff] (!%p366_p9)  }
  0x12   : > { %v5378_v13 = vld [vmem:[%s7001_s1 + $0x70] sm:$0xff] (!%p366_p9)   ;;  %v5380_v15 = vld [vmem:[%s7001_s1 + $0x78] sm:$0xff] (!%p366_p9)   ;;  %v5385_v17 = vld [vmem:[%s7001_s1 + $0xc0] sm:$0xff] (!%p366_p9)  }
  0x13   : > { %v5379_v14 = vld [vmem:[%s7001_s1 + $0x30] sm:$0xff] (!%p366_p9)   ;;  %v5381_v16 = vld [vmem:[%s7001_s1 + $0x38] sm:$0xff] (!%p366_p9)   ;;  %v5386_v19 = vld [vmem:[%s7001_s1 + $0x80] sm:$0xff] (!%p366_p9)  }
  0x14   : > { %5197 = vmatpush3.bf16.msra.mxu1 (!%p366_p9), %v5369_v3  ;;  %4511 = vmatpush3.bf16.msra.mxu0 (!%p366_p9), %v5369_v3  ;;  %v5390_v21 = vld [vmem:[%s7001_s1 + $0xc8] sm:$0xff] (!%p366_p9)   ;;  %v5398_v23 = vld [vmem:[%s7001_s1 + $0xd0] sm:$0xff] (!%p366_p9)   ;;  %v5405_v27 = vld [vmem:[%s7001_s1 + $0xd8] sm:$0xff] (!%p366_p9)  }
  0x15   : > { %5190 = vmatprep.subr.bf16.mxu1 (!%p366_p9), %v5370_v4  ;;  %4512 = vmatprep.subr.bf16.mxu0 (!%p366_p9), %v5370_v4  ;;  %v5391_v22 = vld [vmem:[%s7001_s1 + $0x88] sm:$0xff] (!%p366_p9)   ;;  %v5399_v26 = vld [vmem:[%s7001_s1 + $0x90] sm:$0xff] (!%p366_p9)   ;;  %v5407_v28 = vld [vmem:[%s7001_s1 + $0x98] sm:$0xff] (!%p366_p9)  }
  0x16   : > { %s408_s18 = scalar_select %p407_p10, %s5744_s25, 1  ;;  %v5411_v29 = vld [vmem:[%s7001_s1 + $0xe0] sm:$0xff]   ;;  %v5419_v33 = vld [vmem:[%s7001_s1 + $0xe8] sm:$0xff]   ;;  %v5424_v37 = vld [vmem:[%s7001_s1 + $0xf0] sm:$0xff]  }
  0x17   : > { %v5412_v32 = vld [vmem:[%s7001_s1 + $0xa0] sm:$0xff]   ;;  %v5420_v36 = vld [vmem:[%s7001_s1 + $0xa8] sm:$0xff]   ;;  %v5427_v41 = vld [vmem:[%s7001_s1 + $0xb0] sm:$0xff]   ;;  %s6959_s25 = scalar_lea.sflag [#allocation4], %s404_s28 }
  0x18   : > { %5198 = vmatpush3.bf16.msra.mxu1 %v5371_v5  ;;  %s4506_s29 = sshll.u32 %s408_s18, 9  ;;  %4513 = vmatpush3.bf16.msra.mxu0 %v5371_v5  ;;  %v5432_v42 = vld [vmem:[%s7001_s1 + $0xf8] sm:$0xff]  }
  0x19   : > { %5191 = vmatprep.subr.bf16.mxu1 %v5372_v6  ;;  %4514 = vmatprep.subr.bf16.mxu0 %v5372_v6  ;;  %s5803_s23 = scalar_lea.vmem %s7000_s0, %s4506_s29  ;;  %v5433_v45 = vld [vmem:[%s7001_s1 + $0xb8] sm:$0xff]  }
  0x1a   : > { %v5384_v11 = vld [vmem:[%s5803_s23 + $0x64] ss:$16 sps:$4 sm:$0xff]   ;;  %v5382_v18 = vld [vmem:[%s5803_s23 + $0x60] ss:$16 sps:$4 sm:$0xff]   ;;  %v5442_v0 = vld [vmem:[%s5803_s23 + $0xc] ss:$16 sps:$4 sm:$0xff]  }
  0x1b   : > { %1116 = vmatprep.mubr.bf16.mxu1 %v5384_v11  ;;  %v5387_v20 = vld [vmem:[%s5803_s23 + $0x84] ss:$16 sps:$4 sm:$0xff]   ;;  %v5389_v24 = vld [vmem:[%s5803_s23 + $0x80] ss:$16 sps:$4 sm:$0xff]   ;;  %v5440_v1 = vld [vmem:[%s5803_s23 + $0x8] ss:$16 sps:$4 sm:$0xff]  }
  0x1c   : > { %5199 = vmatpush3.bf16.msra.mxu1 %v5373_v7  ;;  %4515 = vmatpush3.bf16.msra.mxu0 %v5373_v7  ;;  %v5392_v25 = vld [vmem:[%s5803_s23 + $0xa4] ss:$16 sps:$4 sm:$0xff]   ;;  %v5394_v30 = vld [vmem:[%s5803_s23 + $0xa0] ss:$16 sps:$4 sm:$0xff]   ;;  %v5446_v2 = vld [vmem:[%s5803_s23 + $0x2c] ss:$16 sps:$4 sm:$0xff]  }
  0x1d   : > { %5192 = vmatprep.subr.bf16.mxu1 %v5374_v8  ;;  %4516 = vmatprep.subr.bf16.mxu0 %v5374_v8  ;;  %v5395_v31 = vld [vmem:[%s5803_s23 + $0xc4] ss:$16 sps:$4 sm:$0xff]   ;;  %v5437_v34 = vld [vmem:[%s5803_s23] ss:$16 sps:$4 sm:$0xff]   ;;  %v5448_v3 = vld [vmem:[%s5803_s23 + $0x28] ss:$16 sps:$4 sm:$0xff]  }
  0x1e   : > { %v5439_v35 = vld [vmem:[%s5803_s23 + $0x4] ss:$16 sps:$4 sm:$0xff]   ;;  %v5397_v39 = vld [vmem:[%s5803_s23 + $0xc0] ss:$16 sps:$4 sm:$0xff]   ;;  %v5452_v4 = vld [vmem:[%s5803_s23 + $0x4c] ss:$16 sps:$4 sm:$0xff]  }
  0x1f   : > { %1092 = vmatprep.mubr.bf16.mxu0 %v5439_v35  ;;  %v5443_v38 = vld [vmem:[%s5803_s23 + $0x24] ss:$16 sps:$4 sm:$0xff]   ;;  %v5445_v43 = vld [vmem:[%s5803_s23 + $0x20] ss:$16 sps:$4 sm:$0xff]   ;;  %v5454_v5 = vld [vmem:[%s5803_s23 + $0x48] ss:$16 sps:$4 sm:$0xff]  }
  0x20   : > { %5200 = vmatpush3.bf16.msra.mxu1 %v5375_v9  ;;  %4517 = vmatpush3.bf16.msra.mxu0 %v5375_v9  ;;  %v5400_v40 = vld [vmem:[%s5803_s23 + $0xe4] ss:$16 sps:$4 sm:$0xff]   ;;  %v5402_v46 = vld [vmem:[%s5803_s23 + $0xe0] ss:$16 sps:$4 sm:$0xff]   ;;  %v5455_v6 = vld [vmem:[%s5803_s23 + $0x6c] ss:$16 sps:$4 sm:$0xff]  }
  0x21   : > { %5193 = vmatprep.subr.bf16.mxu1 %v5376_v10  ;;  %4518 = vmatprep.subr.bf16.mxu0 %v5376_v10  ;;  %v5449_v44 = vld [vmem:[%s5803_s23 + $0x44] ss:$16 sps:$4 sm:$0xff]   ;;  %v5451_v48 = vld [vmem:[%s5803_s23 + $0x40] ss:$16 sps:$4 sm:$0xff]   ;;  %v5457_v7 = vld [vmem:[%s5803_s23 + $0x68] ss:$16 sps:$4 sm:$0xff]  }
  0x22   : > { %v5403_v47 = vld [vmem:[%s5803_s23 + $0x104] ss:$16 sps:$4 sm:$0xff]   ;;  %v5406_v49 = vld [vmem:[%s5803_s23 + $0x100] ss:$16 sps:$4 sm:$0xff]   ;;  %v5458_v8 = vld [vmem:[%s5803_s23 + $0x8c] ss:$16 sps:$4 sm:$0xff]  }
  0x23   : > { %v5408_v50 = vld [vmem:[%s5803_s23 + $0x124] ss:$16 sps:$4 sm:$0xff]   ;;  %v5410_v51 = vld [vmem:[%s5803_s23 + $0x120] ss:$16 sps:$4 sm:$0xff]   ;;  %v5460_v9 = vld [vmem:[%s5803_s23 + $0x88] ss:$16 sps:$4 sm:$0xff]  }
  0x24   : > { %5201 = vmatpush3.bf16.msra.mxu1 %v5377_v12  ;;  %4519 = vmatpush3.bf16.msra.mxu0 %v5377_v12  ;;  %v5413_v52 = vld [vmem:[%s5803_s23 + $0x144] ss:$16 sps:$4 sm:$0xff]   ;;  %v5415_v53 = vld [vmem:[%s5803_s23 + $0x140] ss:$16 sps:$4 sm:$0xff]   ;;  %v5461_v10 = vld [vmem:[%s5803_s23 + $0xac] ss:$16 sps:$4 sm:$0xff]  }
  0x25   : > { %5194 = vmatprep.subr.bf16.mxu1 %v5378_v13  ;;  %4520 = vmatprep.subr.bf16.mxu0 %v5378_v13  ;;  %v5416_v54 = vld [vmem:[%s5803_s23 + $0x164] ss:$16 sps:$4 sm:$0xff]   ;;  %v5418_v55 = vld [vmem:[%s5803_s23 + $0x160] ss:$16 sps:$4 sm:$0xff]   ;;  %v5463_v11 = vld [vmem:[%s5803_s23 + $0xa8] ss:$16 sps:$4 sm:$0xff]  }
  0x26   : > { %v5421_v56 = vld [vmem:[%s5803_s23 + $0x184] ss:$16 sps:$4 sm:$0xff]   ;;  %v5423_v57 = vld [vmem:[%s5803_s23 + $0x180] ss:$16 sps:$4 sm:$0xff]   ;;  %v5464_v12 = vld [vmem:[%s5803_s23 + $0xcc] ss:$16 sps:$4 sm:$0xff]  }
  0x27   : > { %v5425_v58 = vld [vmem:[%s5803_s23 + $0x1a4] ss:$16 sps:$4 sm:$0xff]   ;;  %v5428_v59 = vld [vmem:[%s5803_s23 + $0x1a0] ss:$16 sps:$4 sm:$0xff]   ;;  %v5466_v13 = vld [vmem:[%s5803_s23 + $0xc8] ss:$16 sps:$4 sm:$0xff]  }
  0x28   : > { %5202 = vmatpush3.bf16.msra.mxu1 %v5379_v14  ;;  %4521 = vmatpush3.bf16.msra.mxu0 %v5379_v14  ;;  %v5429_v60 = vld [vmem:[%s5803_s23 + $0x1c4] ss:$16 sps:$4 sm:$0xff]   ;;  %v5431_v61 = vld [vmem:[%s5803_s23 + $0x1c0] ss:$16 sps:$4 sm:$0xff]   ;;  %v5467_v14 = vld [vmem:[%s5803_s23 + $0xec] ss:$16 sps:$4 sm:$0xff]  }
  0x29   : > { %5195 = vmatprep.subr.bf16.mxu1 %v5380_v15  ;;  %4522 = vmatprep.subr.bf16.mxu0 %v5380_v15  ;;  %v5434_v62 = vld [vmem:[%s5803_s23 + $0x1e4] ss:$16 sps:$4 sm:$0xff]   ;;  %v5436_v63 = vld [vmem:[%s5803_s23 + $0x1e0] ss:$16 sps:$4 sm:$0xff]   ;;  %v5469_v15 = vld [vmem:[%s5803_s23 + $0xe8] ss:$16 sps:$4 sm:$0xff]  }
  0x2a   : > { %v5491_v35 = vld [vmem:[%s5803_s23 + $0x1ec] ss:$16 sps:$4 sm:$0xff]  }
  0x2c   : > { %5203 = vmatpush3.bf16.msra.mxu1 %v5381_v16  ;;  %4523 = vmatpush3.bf16.msra.mxu0 %v5381_v16  ;;  %v5470_v16 = vld [vmem:[%s5803_s23 + $0x10c] ss:$16 sps:$4 sm:$0xff]  }
  0x2d   : > { %4620 = vmatprep.subr.bf16.mxu1 %v5385_v17  ;;  %v5472_v17 = vld [vmem:[%s5803_s23 + $0x108] ss:$16 sps:$4 sm:$0xff]  }
  0x2f   : > { %1117 = vmatmul.mubr.bf16.vlgmr.msra.gmra.mrb[0].mxu1 %v5382_v18  ;;  %1093 = vmatmul.mubr.bf16.vlgmr.msra.gmra.mrb[0].mxu0 %v5437_v34  ;;  %v5473_v18 = vld [vmem:[%s5803_s23 + $0x12c] ss:$16 sps:$4 sm:$0xff]  }
  0x30   : > { %4621 = vmatpush3.bf16.msra.mxu1 %v5386_v19  ;;  %1124 = vmatprep.mubr.bf16.mxu1 %v5387_v20  ;;  %v5475_v19 = vld [vmem:[%s5803_s23 + $0x128] ss:$16 sps:$4 sm:$0xff]   ;;  %v5476_v20 = vld [vmem:[%s5803_s23 + $0x14c] ss:$16 sps:$4 sm:$0xff]  }
  0x31   : > { %4622 = vmatprep.subr.bf16.mxu1 %v5390_v21  ;;  %1100 = vmatprep.mubr.bf16.mxu0 %v5443_v38  ;;  %v5478_v21 = vld [vmem:[%s5803_s23 + $0x148] ss:$16 sps:$4 sm:$0xff]  }
  0x34   : > { %4623 = vmatpush3.bf16.msra.mxu1 %v5391_v22  ;;  %v5479_v22 = vld [vmem:[%s5803_s23 + $0x16c] ss:$16 sps:$4 sm:$0xff]  }
  0x35   : > { %4624 = vmatprep.subr.bf16.mxu1 %v5398_v23  ;;  %v5481_v23 = vld [vmem:[%s5803_s23 + $0x168] ss:$16 sps:$4 sm:$0xff]  }
  0x37   : > { %1125 = vmatmul.mubr.bf16.gmra.mrb[4].mxu1 %v5389_v24  ;;  %1101 = vmatmul.mubr.bf16.gmra.mrb[4].mxu0 %v5445_v43  ;;  %v5482_v24 = vld [vmem:[%s5803_s23 + $0x18c] ss:$16 sps:$4 sm:$0xff]  }
  0x38   : > { %1132 = vmatprep.mubr.bf16.mxu1 %v5392_v25  ;;  %4625 = vmatpush3.bf16.msra.mxu1 %v5399_v26  ;;  %v5654_v25 = vmov 0.0   ;;  %v5484_v26 = vld [vmem:[%s5803_s23 + $0x188] ss:$16 sps:$4 sm:$0xff]  }
  0x39   : > { %4626 = vmatprep.subr.bf16.mxu1 %v5405_v27  ;;  %1108 = vmatprep.mubr.bf16.mxu0 %v5449_v44  ;;  %1417 = vst.msk [vmem:[#allocation2 + $0x10] sm:$0xff] %vm1414_vm0, %v5654_v25  ;;  %1418 = vst.msk [vmem:[#allocation2 + $0x18] sm:$0xff] %vm1414_vm0, %v5654_v25  ;;  %v5485_v27 = vld [vmem:[%s5803_s23 + $0x1ac] ss:$16 sps:$4 sm:$0xff]  }
  0x3a   : > { %1419 = vst.msk [vmem:[#allocation2 + $0x20] sm:$0xff] %vm1414_vm0, %v5654_v25  ;;  %1420 = vst.msk [vmem:[#allocation2 + $0x28] sm:$0xff] %vm1414_vm0, %v5654_v25 }
  0x3b   : > { %1421 = vst.msk [vmem:[#allocation2 + $0x30] sm:$0xff] %vm1414_vm0, %v5654_v25  ;;  %1422 = vst.msk [vmem:[#allocation2 + $0x38] sm:$0xff] %vm1414_vm0, %v5654_v25 }
  0x3c   : > { %4627 = vmatpush3.bf16.msra.mxu1 %v5407_v28  ;;  %1423 = vst.msk [vmem:[#allocation2 + $0x40] sm:$0xff] %vm1414_vm0, %v5654_v25  ;;  %1424 = vst.msk [vmem:[#allocation2 + $0x48] sm:$0xff] %vm1414_vm0, %v5654_v25  ;;  %v5487_v28 = vld [vmem:[%s5803_s23 + $0x1a8] ss:$16 sps:$4 sm:$0xff]  }
  0x3d   : > { %4628 = vmatprep.subr.bf16.mxu1 %v5411_v29  ;;  %1425 = vst.msk [vmem:[#allocation2 + $0x50] sm:$0xff] %vm1414_vm0, %v5654_v25  ;;  %1426 = vst.msk [vmem:[#allocation2 + $0x58] sm:$0xff] %vm1414_vm0, %v5654_v25  ;;  %v5488_v29 = vld [vmem:[%s5803_s23 + $0x1cc] ss:$16 sps:$4 sm:$0xff]  }
  0x3e   : > { %1427 = vst.msk [vmem:[#allocation2 + $0x60] sm:$0xff] %vm1414_vm0, %v5654_v25  ;;  %1428 = vst.msk [vmem:[#allocation2 + $0x68] sm:$0xff] %vm1414_vm0, %v5654_v25 }
  0x3f   : > { %1133 = vmatmul.mubr.bf16.gmra.mrb[8].mxu1 %v5394_v30  ;;  %1109 = vmatmul.mubr.bf16.gmra.mrb[8].mxu0 %v5451_v48  ;;  %1429 = vst.msk [vmem:[#allocation2 + $0x70] sm:$0xff] %vm1414_vm0, %v5654_v25  ;;  %1430 = vst.msk [vmem:[#allocation2 + $0x78] sm:$0xff] %vm1414_vm0, %v5654_v25 }
  0x40   : > { %1140 = vmatprep.mubr.bf16.mxu1 %v5395_v31  ;;  %4629 = vmatpush3.bf16.msra.mxu1 %v5412_v32  ;;  %1431 = vst.msk [vmem:[#allocation2 + $0x80] sm:$0xff] %vm1414_vm0, %v5654_v25  ;;  %1432 = vst.msk [vmem:[#allocation2 + $0x88] sm:$0xff] %vm1414_vm0, %v5654_v25  ;;  %v5490_v32 = vld [vmem:[%s5803_s23 + $0x1c8] ss:$16 sps:$4 sm:$0xff]  }
  0x41   : > { %4630 = vmatprep.subr.bf16.mxu1 %v5419_v33  ;;  %1433 = vst.msk [vmem:[#allocation2 + $0x90] sm:$0xff] %vm1414_vm0, %v5654_v25  ;;  %1434 = vst.msk [vmem:[#allocation2 + $0x98] sm:$0xff] %vm1414_vm0, %v5654_v25 }
  0x42   : > { %1437 = vst.msk [vmem:[#allocation2 + $0xb0] sm:$0xff] %vm1414_vm0, %v5654_v25  ;;  %1438 = vst.msk [vmem:[#allocation2 + $0xb8] sm:$0xff] %vm1414_vm0, %v5654_v25 }
  0x43   : > { %1439 = vst.msk [vmem:[#allocation2 + $0xc0] sm:$0xff] %vm1414_vm0, %v5654_v25  ;;  %1440 = vst.msk [vmem:[#allocation2 + $0xc8] sm:$0xff] %vm1414_vm0, %v5654_v25 }
  0x44   : > { %4631 = vmatpush3.bf16.msra.mxu1 %v5420_v36  ;;  %1441 = vst.msk [vmem:[#allocation2 + $0xd0] sm:$0xff] %vm1414_vm0, %v5654_v25  ;;  %1442 = vst.msk [vmem:[#allocation2 + $0xd8] sm:$0xff] %vm1414_vm0, %v5654_v25 }
  0x45   : > { %4632 = vmatprep.subr.bf16.mxu1 %v5424_v37  ;;  %1443 = vst.msk [vmem:[#allocation2 + $0xe0] sm:$0xff] %vm1414_vm0, %v5654_v25  ;;  %1444 = vst.msk [vmem:[#allocation2 + $0xe8] sm:$0xff] %vm1414_vm0, %v5654_v25 }
  0x46   : > { %1445 = vst.msk [vmem:[#allocation2 + $0xf0] sm:$0xff] %vm1414_vm0, %v5654_v25  ;;  %1446 = vst.msk [vmem:[#allocation2 + $0xf8] sm:$0xff] %vm1414_vm0, %v5654_v25 }
  0x47   : > { %1141 = vmatmul.mubr.bf16.gmra.mrb[12].mxu1 %v5397_v39  ;;  %1447 = vst.msk [vmem:[#allocation2 + $0x100] sm:$0xff] %vm1414_vm0, %v5654_v25  ;;  %1448 = vst.msk [vmem:[#allocation2 + $0x108] sm:$0xff] %vm1414_vm0, %v5654_v25 }
  0x48   : > { %1148 = vmatprep.mubr.bf16.mxu1 %v5400_v40  ;;  %4633 = vmatpush3.bf16.msra.mxu1 %v5427_v41  ;;  %1449 = vst.msk [vmem:[#allocation2 + $0x110] sm:$0xff] %vm1414_vm0, %v5654_v25  ;;  %1450 = vst.msk [vmem:[#allocation2 + $0x118] sm:$0xff] %vm1414_vm0, %v5654_v25  ;;  %v5493_v40 = vld [vmem:[%s5803_s23 + $0x1e8] ss:$16 sps:$4 sm:$0xff]   ;;  %s4132_s23 = sshll.u32 %s404_s28, 6 }
  0x49   : > { %4634 = vmatprep.subr.bf16.mxu1 %v5432_v42  ;;  %1451 = vst.msk [vmem:[#allocation2 + $0x120] sm:$0xff] %vm1414_vm0, %v5654_v25  ;;  %1452 = vst.msk [vmem:[#allocation2 + $0x128] sm:$0xff] %vm1414_vm0, %v5654_v25  ;;  %s406_s16 = scalar_lea.vmem [#allocation3], %s4132_s23  ;;  %s5655_s23 = smov [#allocation3]  }
  0x4a   : > { %1453 = vst.msk [vmem:[#allocation2 + $0x130] sm:$0xff] %vm1414_vm0, %v5654_v25  ;;  %1454 = vst.msk [vmem:[#allocation2 + $0x138] sm:$0xff] %vm1414_vm0, %v5654_v25  ;;  %s4066_s19 = sshll.u32 %s406_s16, 4  ;;  %s5594_s29 = sshll.u32 %s5655_s23, 4  ;;  %s6952_s19 = int_to_ptr.vmem [resolvable:$true] %s4066_s19  ;;  %s5595_s29 = int_to_ptr.vmem [resolvable:$false] %s5594_s29 }
  0x4b   : > { %1455 = vst.msk [vmem:[#allocation2 + $0x140] sm:$0xff] %vm1414_vm0, %v5654_v25  ;;  %1456 = vst.msk [vmem:[#allocation2 + $0x148] sm:$0xff] %vm1414_vm0, %v5654_v25  ;;  %s5590_s30 = scalar_lea.vmem %s6952_s19, 1024  ;;  %s5596_s15 = scalar_lea.vmem %s5595_s29, 2048 }
  0x4c   : > { %4635 = vmatpush3.bf16.msra.mxu1 %v5433_v45  ;;  %1457 = vst.msk [vmem:[#allocation2 + $0x150] sm:$0xff] %vm1414_vm0, %v5654_v25  ;;  %1458 = vst.msk [vmem:[#allocation2 + $0x158] sm:$0xff] %vm1414_vm0, %v5654_v25  ;;  %p5591_p11 = scmp.ne.s32.totalorder %s6952_s19, %s5590_s30  ;;  %p5597_p0 = scmp.lt.s32.totalorder %s6952_s19, %s5595_s29 }
  0x4d   : > { %1459 = vst.msk [vmem:[#allocation2 + $0x160] sm:$0xff] %vm1414_vm0, %v5654_v25  ;;  %1460 = vst.msk [vmem:[#allocation2 + $0x168] sm:$0xff] %vm1414_vm0, %v5654_v25  ;;  %p5598_p1 = scmp.lt.s32.totalorder %s5596_s15, %s5590_s30 }
  0x4e   : > { %1461 = vst.msk [vmem:[#allocation2 + $0x170] sm:$0xff] %vm1414_vm0, %v5654_v25  ;;  %1462 = vst.msk [vmem:[#allocation2 + $0x178] sm:$0xff] %vm1414_vm0, %v5654_v25  ;;  %p5592_p12 = pnand %p5591_p11, %p5761_p5 }
  0x4f   : > { %1149 = vmatmul.mubr.bf16.gmra.mrb[16].mxu1 %v5402_v46  ;;  %1463 = vst.msk [vmem:[#allocation2 + $0x180] sm:$0xff] %vm1414_vm0, %v5654_v25  ;;  %1464 = vst.msk [vmem:[#allocation2 + $0x188] sm:$0xff] %vm1414_vm0, %v5654_v25  ;;  %p5599_p2 = por %p5598_p1, %p5597_p0 }
  0x50   : > { %1156 = vmatprep.mubr.bf16.mxu1 %v5403_v47  ;;  %1465 = vst.msk [vmem:[#allocation2 + $0x190] sm:$0xff] %vm1414_vm0, %v5654_v25  ;;  %1466 = vst.msk [vmem:[#allocation2 + $0x198] sm:$0xff] %vm1414_vm0, %v5654_v25  ;;  %p5593_p13 = pneg %p5592_p12 }
  0x51   : > { %1467 = vst.msk [vmem:[#allocation2 + $0x1a0] sm:$0xff] %vm1414_vm0, %v5654_v25  ;;  %1468 = vst.msk [vmem:[#allocation2 + $0x1a8] sm:$0xff] %vm1414_vm0, %v5654_v25 }
  0x52   : > { %1469 = vst.msk [vmem:[#allocation2 + $0x1b0] sm:$0xff] %vm1414_vm0, %v5654_v25  ;;  %1470 = vst.msk [vmem:[#allocation2 + $0x1b8] sm:$0xff] %vm1414_vm0, %v5654_v25  ;;  %p5600_p3 = pnand %p5599_p2, %p5593_p13 }
  0x53   : > { %1471 = vst.msk [vmem:[#allocation2 + $0x1c0] sm:$0xff] %vm1414_vm0, %v5654_v25  ;;  %1472 = vst.msk [vmem:[#allocation2 + $0x1c8] sm:$0xff] %vm1414_vm0, %v5654_v25 }
  0x54   : > { %1475 = vst.msk [vmem:[#allocation2 + $0x1e0] sm:$0xff] %vm1414_vm0, %v5654_v25  ;;  %1476 = vst.msk [vmem:[#allocation2 + $0x1e8] sm:$0xff] %vm1414_vm0, %v5654_v25 }
  0x55   : > { %1477 = vst.msk [vmem:[#allocation2 + $0x1f0] sm:$0xff] %vm1414_vm0, %v5654_v25  ;;  %1478 = vst.msk [vmem:[#allocation2 + $0x1f8] sm:$0xff] %vm1414_vm0, %v5654_v25 }
  0x56   : > { %1479 = vst.msk [vmem:[#allocation2 + $0x200] sm:$0xff] %vm1414_vm0, %v5654_v25  ;;  %1480 = vst.msk [vmem:[#allocation2 + $0x208] sm:$0xff] %vm1414_vm0, %v5654_v25 }
  0x57   : > { %1157 = vmatmul.mubr.bf16.gmra.mrb[20].mxu1 %v5406_v49  ;;  %1481 = vst.msk [vmem:[#allocation2 + $0x210] sm:$0xff] %vm1414_vm0, %v5654_v25  ;;  %1482 = vst.msk [vmem:[#allocation2 + $0x218] sm:$0xff] %vm1414_vm0, %v5654_v25 }
  0x58   : > { %1164 = vmatprep.mubr.bf16.mxu1 %v5408_v50  ;;  %1483 = vst.msk [vmem:[#allocation2 + $0x220] sm:$0xff] %vm1414_vm0, %v5654_v25  ;;  %1484 = vst.msk [vmem:[#allocation2 + $0x228] sm:$0xff] %vm1414_vm0, %v5654_v25 }
  0x59   : > { %1485 = vst.msk [vmem:[#allocation2 + $0x230] sm:$0xff] %vm1414_vm0, %v5654_v25  ;;  %1486 = vst.msk [vmem:[#allocation2 + $0x238] sm:$0xff] %vm1414_vm0, %v5654_v25 }
  0x5a   : > { %1487 = vst.msk [vmem:[#allocation2 + $0x240] sm:$0xff] %vm1414_vm0, %v5654_v25  ;;  %1488 = vst.msk [vmem:[#allocation2 + $0x248] sm:$0xff] %vm1414_vm0, %v5654_v25 }
  0x5b   : > { %1489 = vst.msk [vmem:[#allocation2 + $0x250] sm:$0xff] %vm1414_vm0, %v5654_v25  ;;  %1490 = vst.msk [vmem:[#allocation2 + $0x258] sm:$0xff] %vm1414_vm0, %v5654_v25 }
  0x5c   : > { %1491 = vst.msk [vmem:[#allocation2 + $0x260] sm:$0xff] %vm1414_vm0, %v5654_v25  ;;  %1492 = vst.msk [vmem:[#allocation2 + $0x268] sm:$0xff] %vm1414_vm0, %v5654_v25 }
  0x5f   : > { %1165 = vmatmul.mubr.bf16.gmra.mrb[24].mxu1 %v5410_v51 }
  0x60   : > { %1172 = vmatprep.mubr.bf16.mxu1 %v5413_v52 }
  0x67   : > { %1173 = vmatmul.mubr.bf16.gmra.mrb[28].mxu1 %v5415_v53 }
  0x68   : > { %1180 = vmatprep.mubr.bf16.mxu1 %v5416_v54 }
  0x6f   : > { %1181 = vmatmul.mubr.bf16.gmra.mrb[32].mxu1 %v5418_v55 }
  0x70   : > { %1188 = vmatprep.mubr.bf16.mxu1 %v5421_v56 }
  0x77   : > { %1189 = vmatmul.mubr.bf16.gmra.mrb[36].mxu1 %v5423_v57 }
  0x78   : > { %1196 = vmatprep.mubr.bf16.mxu1 %v5425_v58 }
  0x7f   : > { %1197 = vmatmul.mubr.bf16.gmra.mrb[40].mxu1 %v5428_v59 }
  0x80   : > { %1204 = vmatprep.mubr.bf16.mxu1 %v5429_v60 }
  0x87   : > { %1205 = vmatmul.mubr.bf16.gmra.mrb[44].mxu1 %v5431_v61 }
  0x88   : > { %1212 = vmatprep.mubr.bf16.mxu1 %v5434_v62 }
  0x8f   : > { %1213 = vmatmul.mubr.bf16.gmra.mrb[48].mxu1 %v5436_v63 }
  0x90   : > { %1253 = vmatprep.mubr.bf16.mxu1 %v5442_v0 }
  0x97   : > { %1254 = vmatmul.mubr.bf16.vlgmr.msra.gmra.mrb[52].mxu1 %v5440_v1 }
  0x98   : > { %1261 = vmatprep.mubr.bf16.mxu1 %v5446_v2 }
  0x9f   : > { %1262 = vmatmul.mubr.bf16.gmra.mrb[56].mxu1 %v5448_v3 }
  0xa0   : > { %1269 = vmatprep.mubr.bf16.mxu1 %v5452_v4 }
  0xa7   : > { %1270 = vmatmul.mubr.bf16.gmra.mrb[60].mxu1 %v5454_v5 }
  0xa8   : > { %1277 = vmatprep.mubr.bf16.mxu1 %v5455_v6 }
  0xaf   : > { %1278 = vmatmul.mubr.bf16.gmra.mrb[64].mxu1 %v5457_v7 }
  0xb0   : > { %1285 = vmatprep.mubr.bf16.mxu1 %v5458_v8 }
  0xb7   : > { %1286 = vmatmul.mubr.bf16.gmra.mrb[68].mxu1 %v5460_v9 }
  0xb8   : > { %1293 = vmatprep.mubr.bf16.mxu1 %v5461_v10 }
  0xbf   : > { %1294 = vmatmul.mubr.bf16.gmra.mrb[72].mxu1 %v5463_v11 }
  0xc0   : > { %1301 = vmatprep.mubr.bf16.mxu1 %v5464_v12 }
  0xc7   : > { %1302 = vmatmul.mubr.bf16.gmra.mrb[76].mxu1 %v5466_v13 }
  0xc8   : > { %1309 = vmatprep.mubr.bf16.mxu1 %v5467_v14 }
  0xcf   : > { %1310 = vmatmul.mubr.bf16.gmra.mrb[80].mxu1 %v5469_v15 }
  0xd0   : > { %1317 = vmatprep.mubr.bf16.mxu1 %v5470_v16 }
  0xd7   : > { %1318 = vmatmul.mubr.bf16.gmra.mrb[84].mxu1 %v5472_v17 }
  0xd8   : > { %1325 = vmatprep.mubr.bf16.mxu1 %v5473_v18 }
  0xdf   : > { %1326 = vmatmul.mubr.bf16.gmra.mrb[88].mxu1 %v5475_v19 }
  0xe0   : > { %1333 = vmatprep.mubr.bf16.mxu1 %v5476_v20 }
  0xe7   : > { %1334 = vmatmul.mubr.bf16.gmra.mrb[92].mxu1 %v5478_v21 }
  0xe8   : > { %1341 = vmatprep.mubr.bf16.mxu1 %v5479_v22 }
  0xef   : > { %1342 = vmatmul.mubr.bf16.gmra.mrb[96].mxu1 %v5481_v23 }
  0xf0   : > { %1349 = vmatprep.mubr.bf16.mxu1 %v5482_v24  ;;  %v5494_v24 = vld [vmem:[%s7003_s3 + $0x20] sm:$0xff]  }
  0xf1   : > { %4884 = vmatprep.subr.bf16.mxu0 %v5494_v24 }
  0xf2   : > { %4885 = vmatpush3.bf16.msra.mxu0 %v5494_v24  ;;  %v6167_v24 = vld [vmem:[%s7002_s2] ss:$0 sm:$0xff] }
  0xf7   : > { %1350 = vmatmul.mubr.bf16.gmra.mrb[100].mxu1 %v5484_v26 }
  0xf8   : > { %1357 = vmatprep.mubr.bf16.mxu1 %v5485_v27 }
  0xff   : > { %1358 = vmatmul.mubr.bf16.gmra.mrb[104].mxu1 %v5487_v28 }
 0x100   : > { %1365 = vmatprep.mubr.bf16.mxu1 %v5488_v29 }
 0x102   : > { %v4542_v30 = vpop.f32.mrb[0].mxu1  ;;  %v4524_v50 = vpop.f32.mrb[0].mxu0 }
 0x103   : > { %v4543_v31 = vpop.f32.mrb[1].mxu1  ;;  %v4525_v52 = vpop.f32.mrb[1].mxu0 }
 0x104   : > { %v6080_v33 = vadd.f32 %v4543_v31, %v4542_v30  ;;  %v4545_v34 = vpop.f32.mrb[2].mxu1  ;;  %v6094_v53 = vadd.f32 %v4525_v52, %v4524_v50  ;;  %v4527_v54 = vpop.f32.mrb[2].mxu0  ;;  %v5495_v30 = vld [vmem:[%s7003_s3 + $0x28] sm:$0xff]  }
 0x105   : > { %v4546_v36 = vpop.f32.mrb[3].mxu1  ;;  %v4528_v55 = vpop.f32.mrb[3].mxu0  ;;  %4886 = vmatprep.subr.bf16.mxu0 %v5495_v30 }
 0x106   : > { %v6083_v37 = vadd.f32 %v4546_v36, %v4545_v34  ;;  %v6096_v56 = vadd.f32 %v4528_v55, %v4527_v54  ;;  %4887 = vmatpush3.bf16.msra.mxu0 %v5495_v30 }
 0x107   : > { %1366 = vmatmul.mubr.bf16.gmra.mrb[108].mxu1 %v5490_v32  ;;  %v5496_v32 = vld [vmem:[%s7003_s3 + $0x30] sm:$0xff]  }
 0x108   : > { %1373 = vmatprep.mubr.bf16.mxu1 %v5491_v35  ;;  %4888 = vmatprep.subr.bf16.mxu0 %v5496_v32  ;;  %v1098_v30 = vadd.f32 %v6096_v56, %v6167_v24 }
 0x10a   : > { %v4548_v38 = vpop.f32.mrb[4].mxu1  ;;  %v4530_v62 = vpop.f32.mrb[4].mxu0  ;;  %4889 = vmatpush3.bf16.msra.mxu0 %v5496_v32 }
 0x10b   : > { %v4549_v39 = vpop.f32.mrb[5].mxu1  ;;  %v4531_v0 = vpop.f32.mrb[5].mxu0 }
 0x10c   : > { %v6086_v41 = vadd.f32 %v4549_v39, %v4548_v38  ;;  %v4551_v42 = vpop.f32.mrb[6].mxu1  ;;  %v6102_v1 = vadd.f32 %v4531_v0, %v4530_v62  ;;  %v4533_v2 = vpop.f32.mrb[6].mxu0 }
 0x10d   : > { %v4552_v43 = vpop.f32.mrb[7].mxu1  ;;  %v4534_v3 = vpop.f32.mrb[7].mxu0 }
 0x10e   : > { %v6088_v44 = vadd.f32 %v4552_v43, %v4551_v42  ;;  %v6104_v4 = vadd.f32 %v4534_v3, %v4533_v2 }
 0x10f   : > { %1374 = vmatmul.mubr.bf16.gmra.mrb[112].mxu1 %v5493_v40  ;;  %v5497_v40 = vld [vmem:[%s7003_s3 + $0x38] sm:$0xff]  }
 0x110   : > { %4890 = vmatprep.subr.bf16.mxu0 %v5497_v40  ;;  %v1106_v56 = vadd.f32 %v6104_v4, %v6167_v24 }
 0x111   : > { %4891 = vmatpush3.bf16.msra.mxu0 %v5497_v40 }
 0x112   : > { %v4554_v45 = vpop.f32.mrb[8].mxu1  ;;  %v4536_v10 = vpop.f32.mrb[8].mxu0 }
 0x113   : > { %v4555_v46 = vpop.f32.mrb[9].mxu1  ;;  %v4537_v12 = vpop.f32.mrb[9].mxu0 }
 0x114   : > { %v6090_v47 = vadd.f32 %v4555_v46, %v4554_v45  ;;  %v4557_v48 = vpop.f32.mrb[10].mxu1  ;;  %v6110_v13 = vadd.f32 %v4537_v12, %v4536_v10  ;;  %v4539_v14 = vpop.f32.mrb[10].mxu0 }
 0x115   : > { %v4558_v49 = vpop.f32.mrb[11].mxu1  ;;  %v4540_v15 = vpop.f32.mrb[11].mxu0 }
 0x116   : > { %v6092_v51 = vadd.f32 %v4558_v49, %v4557_v48  ;;  %v6112_v16 = vadd.f32 %v4540_v15, %v4539_v14 }
 0x118   : > { %v1114_v4 = vadd.f32 %v6112_v16, %v6167_v24 }
 0x11a   : > { %v4560_v57 = vpop.f32.mrb[12].mxu1 }
 0x11b   : > { %v4561_v58 = vpop.f32.mrb[13].mxu1 }
 0x11c   : > { %v6098_v59 = vadd.f32 %v4561_v58, %v4560_v57  ;;  %v4563_v60 = vpop.f32.mrb[14].mxu1 }
 0x11d   : > { %v4564_v61 = vpop.f32.mrb[15].mxu1 }
 0x11e   : > { %v6100_v63 = vadd.f32 %v4564_v61, %v4563_v60  ;;  %v6149_v61 = vld [vmem:[%s7003_s3] sm:$0xff]  }
 0x11f   : > { %4900 = vmatprep.subr.bf16.mxu0 %v6149_v61 }
 0x122   : > { %v4566_v5 = vpop.f32.mrb[16].mxu1 }
 0x123   : > { %v4567_v6 = vpop.f32.mrb[17].mxu1 }
 0x124   : > { %v6106_v7 = vadd.f32 %v4567_v6, %v4566_v5  ;;  %v4569_v8 = vpop.f32.mrb[18].mxu1 }
 0x125   : > { %v4570_v9 = vpop.f32.mrb[19].mxu1 }
 0x126   : > { %v6108_v11 = vadd.f32 %v4570_v9, %v4569_v8 }
 0x12a   : > { %v4572_v17 = vpop.f32.mrb[20].mxu1 }
 0x12b   : > { %v4573_v18 = vpop.f32.mrb[21].mxu1 }
 0x12c   : > { %v6114_v19 = vadd.f32 %v4573_v18, %v4572_v17  ;;  %v4575_v20 = vpop.f32.mrb[22].mxu1 }
 0x12d   : > { %v4576_v21 = vpop.f32.mrb[23].mxu1 }
 0x12e   : > { %v6116_v22 = vadd.f32 %v4576_v21, %v4575_v20 }
 0x132   : > { %v4578_v23 = vpop.f32.mrb[24].mxu1 }
 0x133   : > { %v4579_v25 = vpop.f32.mrb[25].mxu1 }
 0x134   : > { %v6121_v26 = vadd.f32 %v4579_v25, %v4578_v23  ;;  %v4581_v27 = vpop.f32.mrb[26].mxu1  ;;  %v1095_v25 = vadd.f32 %v6094_v53, %v6167_v24 }
 0x135   : > { %v4582_v28 = vpop.f32.mrb[27].mxu1 }
 0x136   : > { %v6123_v29 = vadd.f32 %v4582_v28, %v4581_v27 }
 0x13a   : > { %v4584_v31 = vpop.f32.mrb[28].mxu1 }
 0x13b   : > { %v4585_v34 = vpop.f32.mrb[29].mxu1 }
 0x13c   : > { %v6131_v35 = vadd.f32 %v4585_v34, %v4584_v31  ;;  %v4587_v36 = vpop.f32.mrb[30].mxu1 }
 0x13d   : > { %v4588_v38 = vpop.f32.mrb[31].mxu1 }
 0x13e   : > { %v6133_v39 = vadd.f32 %v4588_v38, %v4587_v36 }
 0x142   : > { %v4590_v42 = vpop.f32.mrb[32].mxu1 }
 0x143   : > { %v4591_v43 = vpop.f32.mrb[33].mxu1 }
 0x144   : > { %v6138_v45 = vadd.f32 %v4591_v43, %v4590_v42  ;;  %v4593_v46 = vpop.f32.mrb[34].mxu1 }
 0x145   : > { %v4594_v48 = vpop.f32.mrb[35].mxu1 }
 0x146   : > { %v6140_v49 = vadd.f32 %v4594_v48, %v4593_v46  ;;  %v1103_v46 = vadd.f32 %v6102_v1, %v6167_v24  ;;  %v1111_v1 = vadd.f32 %v6110_v13, %v6167_v24 }
 0x14a   : > { %v4596_v50 = vpop.f32.mrb[36].mxu1 }
 0x14b   : > { %v4597_v52 = vpop.f32.mrb[37].mxu1 }
 0x14c   : > { %v6142_v54 = vadd.f32 %v4597_v52, %v4596_v50  ;;  %v4599_v55 = vpop.f32.mrb[38].mxu1 }
 0x14d   : > { %v4600_v57 = vpop.f32.mrb[39].mxu1 }
 0x14e   : > { %v6144_v58 = vadd.f32 %v4600_v57, %v4599_v55 }
 0x152   : > { %v4602_v60 = vpop.f32.mrb[40].mxu1 }
 0x153   : > { %v4603_v62 = vpop.f32.mrb[41].mxu1 }
 0x154   : > { %v6151_v0 = vadd.f32 %v4603_v62, %v4602_v60  ;;  %v4605_v2 = vpop.f32.mrb[42].mxu1 }
 0x155   : > { %v4606_v3 = vpop.f32.mrb[43].mxu1 }
 0x156   : > { %v6154_v5 = vadd.f32 %v4606_v3, %v4605_v2 }
 0x15a   : > { %v4608_v6 = vpop.f32.mrb[44].mxu1 }
 0x15b   : > { %v4609_v8 = vpop.f32.mrb[45].mxu1 }
 0x15c   : > { %v6156_v9 = vadd.f32 %v4609_v8, %v4608_v6  ;;  %v4611_v10 = vpop.f32.mrb[46].mxu1 }
 0x15d   : > { %v4612_v12 = vpop.f32.mrb[47].mxu1 }
 0x15e   : > { %v6158_v14 = vadd.f32 %v4612_v12, %v4611_v10 }
 0x162   : > { %v4614_v15 = vpop.f32.mrb[48].mxu1 }
 0x163   : > { %v4615_v17 = vpop.f32.mrb[49].mxu1 }
 0x164   : > { %v6160_v18 = vadd.f32 %v4615_v17, %v4614_v15  ;;  %v4617_v20 = vpop.f32.mrb[50].mxu1 }
 0x165   : > { %v4618_v21 = vpop.f32.mrb[51].mxu1 }
 0x166   : > { %v6162_v23 = vadd.f32 %v4618_v21, %v4617_v20 }
 0x16a   : > { %v4636_v27 = vpop.f32.mrb[52].mxu1 }
 0x16b   : > { %v4637_v28 = vpop.f32.mrb[53].mxu1 }
 0x16c   : > { %v4638_v31 = vadd.f32 %v4637_v28, %v4636_v27  ;;  %v4639_v32 = vpop.f32.mrb[54].mxu1 }
 0x16d   : > { %v4640_v34 = vpop.f32.mrb[55].mxu1 }
 0x16e   : > { %v1256_v36 = vadd.f32 %v4638_v31, %v1095_v25  ;;  %v4641_v38 = vadd.f32 %v4640_v34, %v4639_v32 }
 0x170   : > { %v1382_v40 = vmax.f32 %v1256_v36, 0.0  ;;  %v1259_v42 = vadd.f32 %v4641_v38, %v1098_v30  ;;  %v1119_v38 = vadd.f32 %v6080_v33, %v6167_v24 }
 0x172   : > { %1496 = vst.msk [vmem:[#allocation2 + $0x11] sm:$0xff] %vm1414_vm0, %v1382_v40  ;;  %v1383_v43 = vmax.f32 %v1259_v42, 0.0  ;;  %v4642_v48 = vpop.f32.mrb[56].mxu1 }
 0x173   : > { %v4643_v53 = vpop.f32.mrb[57].mxu1 }
 0x174   : > { %1497 = vst.msk [vmem:[#allocation2 + $0x21] sm:$0xff] %vm1414_vm0, %v1383_v43  ;;  %v4644_v50 = vadd.f32 %v4643_v53, %v4642_v48  ;;  %v4645_v52 = vpop.f32.mrb[58].mxu1 }
 0x175   : > { %v4646_v55 = vpop.f32.mrb[59].mxu1 }
 0x176   : > { %v1264_v57 = vadd.f32 %v4644_v50, %v1103_v46  ;;  %v4647_v60 = vadd.f32 %v4646_v55, %v4645_v52  ;;  %v1122_v46 = vadd.f32 %v6083_v37, %v6167_v24 }
 0x178   : > { %v1384_v62 = vmax.f32 %v1264_v57, 0.0  ;;  %v1267_v2 = vadd.f32 %v4647_v60, %v1106_v56 }
 0x17a   : > { %1498 = vst.msk [vmem:[#allocation2 + $0x31] sm:$0xff] %vm1414_vm0, %v1384_v62  ;;  %v1385_v3 = vmax.f32 %v1267_v2, 0.0  ;;  %v4648_v6 = vpop.f32.mrb[60].mxu1 }
 0x17b   : > { %v4649_v8 = vpop.f32.mrb[61].mxu1  ;;  %v6185_v27 = vld [vmem:[#allocation2 + $0x21] sm:$0xff] }
 0x17c   : > { %1499 = vst.msk [vmem:[#allocation2 + $0x41] sm:$0xff] %vm1414_vm0, %v1385_v3  ;;  %v4650_v10 = vadd.f32 %v4649_v8, %v4648_v6  ;;  %v4651_v12 = vpop.f32.mrb[62].mxu1  ;;  %v6189_v30 = vld [vmem:[#allocation2 + $0x22] sm:$0xff] }
 0x17d   : > { %v4652_v15 = vpop.f32.mrb[63].mxu1 }
 0x17e   : > { %v1272_v17 = vadd.f32 %v4650_v10, %v1111_v1  ;;  %v4653_v20 = vadd.f32 %v4652_v15, %v4651_v12  ;;  %v1127_v1 = vadd.f32 %v6086_v41, %v6167_v24  ;;  %v1130_v10 = vadd.f32 %v6088_v44, %v6167_v24 }
 0x180   : > { %v1386_v21 = vmax.f32 %v1272_v17, 0.0  ;;  %v1275_v25 = vadd.f32 %v4653_v20, %v1114_v4 }
 0x181   : > { %v6187_v28 = vld [vmem:[#allocation2 + $0x31] sm:$0xff] }
 0x182   : > { %v6191_v13 = vld [vmem:[#allocation2 + $0x32] sm:$0xff]  ;;  %1500 = vst.msk [vmem:[#allocation2 + $0x51] sm:$0xff] %vm1414_vm0, %v1386_v21  ;;  %v1387_v31 = vmax.f32 %v1275_v25, 0.0  ;;  %v4654_v32 = vpop.f32.mrb[64].mxu1 }
 0x183   : > { %v4655_v36 = vpop.f32.mrb[65].mxu1  ;;  %v6203_v52 = vld [vmem:[#allocation2 + $0x41] sm:$0xff] }
 0x184   : > { %1501 = vst.msk [vmem:[#allocation2 + $0x61] sm:$0xff] %vm1414_vm0, %v1387_v31  ;;  %v4656_v40 = vadd.f32 %v4655_v36, %v4654_v32  ;;  %v4657_v42 = vpop.f32.mrb[66].mxu1  ;;  %v6207_v57 = vld [vmem:[#allocation2 + $0x42] sm:$0xff] }
 0x185   : > { %v4658_v43 = vpop.f32.mrb[67].mxu1 }
 0x186   : > { %v1280_v48 = vadd.f32 %v4656_v40, %v1119_v38  ;;  %v4659_v53 = vadd.f32 %v4658_v43, %v4657_v42  ;;  %v1135_v42 = vadd.f32 %v6090_v47, %v6167_v24  ;;  %v1143_v47 = vadd.f32 %v6098_v59, %v6167_v24 }
 0x188   : > { %v1388_v56 = vmax.f32 %v1280_v48, 0.0  ;;  %v1283_v50 = vadd.f32 %v4659_v53, %v1122_v46  ;;  %v1138_v53 = vadd.f32 %v6092_v51, %v6167_v24  ;;  %v1146_v51 = vadd.f32 %v6100_v63, %v6167_v24 }
 0x189   : > { %v6205_v55 = vld [vmem:[#allocation2 + $0x51] sm:$0xff] }
 0x18a   : > { %v6209_v60 = vld [vmem:[#allocation2 + $0x52] sm:$0xff]  ;;  %1502 = vst.msk [vmem:[#allocation2 + $0x71] sm:$0xff] %vm1414_vm0, %v1388_v56  ;;  %v1389_v33 = vmax.f32 %v1283_v50, 0.0  ;;  %v4660_v62 = vpop.f32.mrb[68].mxu1 }
 0x18b   : > { %v4661_v3 = vpop.f32.mrb[69].mxu1  ;;  %v6221_v21 = vld [vmem:[#allocation2 + $0x61] sm:$0xff] }
 0x18c   : > { %1503 = vst.msk [vmem:[#allocation2 + $0x81] sm:$0xff] %vm1414_vm0, %v1389_v33  ;;  %v4662_v6 = vadd.f32 %v4661_v3, %v4660_v62  ;;  %v4663_v8 = vpop.f32.mrb[70].mxu1  ;;  %v6225_v31 = vld [vmem:[#allocation2 + $0x62] sm:$0xff] }
 0x18d   : > { %v4664_v4 = vpop.f32.mrb[71].mxu1 }
 0x18e   : > { %v1288_v12 = vadd.f32 %v4662_v6, %v1127_v1  ;;  %v4665_v15 = vadd.f32 %v4664_v4, %v4663_v8 }
 0x190   : > { %v1390_v17 = vmax.f32 %v1288_v12, 0.0  ;;  %v1291_v20 = vadd.f32 %v4665_v15, %v1130_v10 }
 0x191   : > { %v6223_v25 = vld [vmem:[#allocation2 + $0x71] sm:$0xff] }
 0x192   : > { %v6227_v32 = vld [vmem:[#allocation2 + $0x72] sm:$0xff]  ;;  %1505 = vst.msk [vmem:[#allocation2 + $0xb1] sm:$0xff] %vm1414_vm0, %v1390_v17  ;;  %v1391_v41 = vmax.f32 %v1291_v20, 0.0  ;;  %v4666_v36 = vpop.f32.mrb[72].mxu1 }
 0x193   : > { %v4667_v40 = vpop.f32.mrb[73].mxu1 }
 0x194   : > { %1506 = vst.msk [vmem:[#allocation2 + $0xc1] sm:$0xff] %vm1414_vm0, %v1391_v41  ;;  %v4668_v43 = vadd.f32 %v4667_v40, %v4666_v36  ;;  %v4669_v46 = vpop.f32.mrb[74].mxu1 }
 0x195   : > { %v4670_v48 = vpop.f32.mrb[75].mxu1 }
 0x196   : > { %v1296_v56 = vadd.f32 %v4668_v43, %v1135_v42  ;;  %v4671_v50 = vadd.f32 %v4670_v48, %v4669_v46 }
 0x198   : > { %v1392_v33 = vmax.f32 %v1296_v56, 0.0  ;;  %v1299_v62 = vadd.f32 %v4671_v50, %v1138_v53  ;;  %v1151_v53 = vadd.f32 %v6106_v7, %v6167_v24 }
 0x19a   : > { %1507 = vst.msk [vmem:[#allocation2 + $0xd1] sm:$0xff] %vm1414_vm0, %v1392_v33  ;;  %v1393_v3 = vmax.f32 %v1299_v62, 0.0  ;;  %v4672_v1 = vpop.f32.mrb[76].mxu1  ;;  %v1154_v62 = vadd.f32 %v6108_v11, %v6167_v24 }
 0x19b   : > { %v4673_v6 = vpop.f32.mrb[77].mxu1  ;;  %v6245_v41 = vld [vmem:[#allocation2 + $0xc0] sm:$0xff] }
 0x19c   : > { %1508 = vst.msk [vmem:[#allocation2 + $0xe1] sm:$0xff] %vm1414_vm0, %v1393_v3  ;;  %v4674_v8 = vadd.f32 %v4673_v6, %v4672_v1  ;;  %v4675_v4 = vpop.f32.mrb[78].mxu1  ;;  %v6249_v40 = vld [vmem:[#allocation2 + $0xc1] sm:$0xff] }
 0x19d   : > { %v4676_v10 = vpop.f32.mrb[79].mxu1 }
 0x19e   : > { %v1304_v12 = vadd.f32 %v4674_v8, %v1143_v47  ;;  %v4677_v15 = vadd.f32 %v4676_v10, %v4675_v4 }
 0x1a0   : > { %v1394_v17 = vmax.f32 %v1304_v12, 0.0  ;;  %v1307_v20 = vadd.f32 %v4677_v15, %v1146_v51 }
 0x1a1   : > { %v6247_v36 = vld [vmem:[#allocation2 + $0xd0] sm:$0xff] }
 0x1a2   : > { %v6251_v42 = vld [vmem:[#allocation2 + $0xd1] sm:$0xff]  ;;  %1509 = vst.msk [vmem:[#allocation2 + $0xf1] sm:$0xff] %vm1414_vm0, %v1394_v17  ;;  %v1395_v59 = vmax.f32 %v1307_v20, 0.0  ;;  %v4678_v43 = vpop.f32.mrb[80].mxu1  ;;  %v1159_v20 = vadd.f32 %v6114_v19, %v6167_v24 }
 0x1a3   : > { %v4679_v48 = vpop.f32.mrb[81].mxu1  ;;  %v6263_v8 = vld [vmem:[#allocation2 + $0xe0] sm:$0xff] }
 0x1a4   : > { %1510 = vst.msk [vmem:[#allocation2 + $0x101] sm:$0xff] %vm1414_vm0, %v1395_v59  ;;  %v4680_v56 = vadd.f32 %v4679_v48, %v4678_v43  ;;  %v4681_v50 = vpop.f32.mrb[82].mxu1  ;;  %v6267_v10 = vld [vmem:[#allocation2 + $0xe1] sm:$0xff] }
 0x1a5   : > { %v4682_v33 = vpop.f32.mrb[83].mxu1 }
 0x1a6   : > { %v1312_v3 = vadd.f32 %v4680_v56, %v1151_v53  ;;  %v4683_v1 = vadd.f32 %v4682_v33, %v4681_v50  ;;  %v1162_v53 = vadd.f32 %v6116_v22, %v6167_v24 }
 0x1a8   : > { %v1396_v6 = vmax.f32 %v1312_v3, 0.0  ;;  %v1315_v47 = vadd.f32 %v4683_v1, %v1154_v62 }
 0x1a9   : > { %v6265_v4 = vld [vmem:[#allocation2 + $0xf0] sm:$0xff] }
 0x1aa   : > { %v6269_v51 = vld [vmem:[#allocation2 + $0xf1] sm:$0xff]  ;;  %1511 = vst.msk [vmem:[#allocation2 + $0x111] sm:$0xff] %vm1414_vm0, %v1396_v6  ;;  %v1397_v7 = vmax.f32 %v1315_v47, 0.0  ;;  %v4684_v12 = vpop.f32.mrb[84].mxu1 }
 0x1ab   : > { %v4685_v17 = vpop.f32.mrb[85].mxu1  ;;  %v6281_v3 = vld [vmem:[#allocation2 + $0x100] sm:$0xff] }
 0x1ac   : > { %1512 = vst.msk [vmem:[#allocation2 + $0x121] sm:$0xff] %vm1414_vm0, %v1397_v7  ;;  %v4686_v59 = vadd.f32 %v4685_v17, %v4684_v12  ;;  %v4687_v43 = vpop.f32.mrb[86].mxu1  ;;  %v6285_v6 = vld [vmem:[#allocation2 + $0x101] sm:$0xff]  ;;  %v1194_v12 = vadd.f32 %v6144_v58, %v6167_v24 }
 0x1ad   : > { %v4688_v48 = vpop.f32.mrb[87].mxu1 }
 0x1ae   : > { %v1320_v56 = vadd.f32 %v4686_v59, %v1159_v20  ;;  %v4689_v50 = vadd.f32 %v4688_v48, %v4687_v43  ;;  %v1167_v20 = vadd.f32 %v6121_v26, %v6167_v24 }
 0x1b0   : > { %v1398_v33 = vmax.f32 %v1320_v56, 0.0  ;;  %v1323_v62 = vadd.f32 %v4689_v50, %v1162_v53  ;;  %v1170_v53 = vadd.f32 %v6123_v29, %v6167_v24  ;;  %v1175_v29 = vadd.f32 %v6131_v35, %v6167_v24 }
 0x1b1   : > { %v6283_v1 = vld [vmem:[#allocation2 + $0x110] sm:$0xff] }
 0x1b2   : > { %v6287_v47 = vld [vmem:[#allocation2 + $0x111] sm:$0xff]  ;;  %1514 = vst.msk [vmem:[#allocation2 + $0x151] sm:$0xff] %vm1414_vm0, %v1398_v33  ;;  %v1399_v19 = vmax.f32 %v1323_v62, 0.0  ;;  %v4690_v7 = vpop.f32.mrb[88].mxu1  ;;  %v1553_v33 = vld [vmem:[#allocation2 + $0x141] sm:$0xff] }
 0x1b3   : > { %v4691_v17 = vpop.f32.mrb[89].mxu1 }
 0x1b4   : > { %1515 = vst.msk [vmem:[#allocation2 + $0x161] sm:$0xff] %vm1414_vm0, %v1399_v19  ;;  %v4692_v59 = vadd.f32 %v4691_v17, %v4690_v7  ;;  %v4693_v43 = vpop.f32.mrb[90].mxu1 }
 0x1b5   : > { %v4694_v48 = vpop.f32.mrb[91].mxu1 }
 0x1b6   : > { %v1328_v56 = vadd.f32 %v4692_v59, %v1167_v20  ;;  %v4695_v50 = vadd.f32 %v4694_v48, %v4693_v43 }
 0x1b8   : > { %v1400_v62 = vmax.f32 %v1328_v56, 0.0  ;;  %v1331_v44 = vadd.f32 %v4695_v50, %v1170_v53  ;;  %v1178_v53 = vadd.f32 %v6133_v39, %v6167_v24 }
 0x1b9   : > { %v6299_v37 = vld [vmem:[#allocation2 + $0x151] sm:$0xff] }
 0x1ba   : > { %1516 = vst.msk [vmem:[#allocation2 + $0x171] sm:$0xff] %vm1414_vm0, %v1400_v62  ;;  %v1401_v34 = vmax.f32 %v1331_v44, 0.0  ;;  %v4696_v22 = vpop.f32.mrb[92].mxu1  ;;  %v1561_v26 = vpack.c.bf16 %v6299_v37, %v1553_v33  ;;  %v6305_v17 = vld [vmem:[#allocation2 + $0x152] sm:$0xff] }
 0x1bb   : > { %v4697_v19 = vpop.f32.mrb[93].mxu1  ;;  %v6303_v7 = vld [vmem:[#allocation2 + $0x161] sm:$0xff] }
 0x1bc   : > { %v6307_v11 = vld [vmem:[#allocation2 + $0x162] sm:$0xff]  ;;  %1517 = vst.msk [vmem:[#allocation2 + $0x181] sm:$0xff] %vm1414_vm0, %v1401_v34  ;;  %v4698_v20 = vadd.f32 %v4697_v19, %v4696_v22  ;;  %v4699_v59 = vpop.f32.mrb[94].mxu1  ;;  %4892 = vmatprep.mubr.msk.bf16.mxu0 %vm1414_vm0, %v1561_v26 }
 0x1bd   : > { %v4700_v48 = vpop.f32.mrb[95].mxu1  ;;  %v5499_v19 = vld [vmem:[%s7003_s3 + $0x8] sm:$0xff]  }
 0x1be   : > { %v1336_v56 = vadd.f32 %v4698_v20, %v1175_v29  ;;  %v4701_v50 = vadd.f32 %v4700_v48, %v4699_v59  ;;  %v1183_v20 = vadd.f32 %v6138_v45, %v6167_v24 }
 0x1c0   : > { %v1402_v33 = vmax.f32 %v1336_v56, 0.0  ;;  %v1339_v35 = vadd.f32 %v4701_v50, %v1178_v53 }
 0x1c1   : > { %v6319_v62 = vld [vmem:[#allocation2 + $0x171] sm:$0xff] }
 0x1c2   : > { %1518 = vst.msk [vmem:[#allocation2 + $0x191] sm:$0xff] %vm1414_vm0, %v1402_v33  ;;  %v1403_v34 = vmax.f32 %v1339_v35, 0.0  ;;  %v4702_v22 = vpop.f32.mrb[96].mxu1  ;;  %v1562_v26 = vpack.c.bf16 %v6319_v62, %v6303_v7  ;;  %v6329_v39 = vld [vmem:[#allocation2 + $0x172] sm:$0xff]  ;;  %v1186_v33 = vadd.f32 %v6140_v49, %v6167_v24 }
 0x1c3   : > { %v4703_v63 = vpop.f32.mrb[97].mxu1  ;;  %v6327_v38 = vld [vmem:[#allocation2 + $0x181] sm:$0xff]  ;;  %v5501_v49 = vld [vmem:[%s7003_s3 + $0x18] sm:$0xff]  }
 0x1c4   : > { %v6331_v29 = vld [vmem:[#allocation2 + $0x182] sm:$0xff]  ;;  %1519 = vst.msk [vmem:[#allocation2 + $0x1a1] sm:$0xff] %vm1414_vm0, %v1403_v34  ;;  %v4704_v59 = vadd.f32 %v4703_v63, %v4702_v22  ;;  %v4705_v48 = vpop.f32.mrb[98].mxu1  ;;  %4893 = vmatmul.mubr.msk.bf16.vlgmr.msra.gmra.mrb[12].mxu0 %vm1414_vm0, %v1562_v26  ;;  %v5500_v63 = vld [vmem:[%s7003_s3 + $0x10] sm:$0xff]  }
 0x1c5   : > { %v4706_v50 = vpop.f32.mrb[99].mxu1  ;;  %4901 = vmatpush3.bf16.msra.mxu0 %v6149_v61 }
 0x1c6   : > { %v1344_v35 = vadd.f32 %v4704_v59, %v1183_v20  ;;  %v4707_v45 = vadd.f32 %v4706_v50, %v4705_v48  ;;  %4902 = vmatprep.subr.bf16.mxu0 %v5499_v19 }
 0x1c8   : > { %v1404_v34 = vmax.f32 %v1344_v35, 0.0  ;;  %v1347_v22 = vadd.f32 %v4707_v45, %v1186_v33 }
 0x1c9   : > { %v6347_v26 = vld [vmem:[#allocation2 + $0x191] sm:$0xff]  ;;  %4903 = vmatpush3.bf16.msra.mxu0 %v5499_v19  ;;  %v1191_v19 = vadd.f32 %v6142_v54, %v6167_v24  ;;  %v5502_v54 = vld [vmem:[%s7003_s3 + $0x40] sm:$0xff]  }
 0x1ca   : > { %1520 = vst.msk [vmem:[#allocation2 + $0x1b1] sm:$0xff] %vm1414_vm0, %v1404_v34  ;;  %v1405_v2 = vmax.f32 %v1347_v22, 0.0  ;;  %v4708_v16 = vpop.f32.mrb[100].mxu1  ;;  %v1563_v61 = vpack.c.bf16 %v6347_v26, %v6327_v38  ;;  %4904 = vmatprep.subr.bf16.mxu0 %v5500_v63  ;;  %v6357_v48 = vld [vmem:[#allocation2 + $0x192] sm:$0xff] }
 0x1cb   : > { %v4709_v20 = vpop.f32.mrb[101].mxu1  ;;  %v6355_v59 = vld [vmem:[#allocation2 + $0x1a1] sm:$0xff] }
 0x1cc   : > { %v6359_v50 = vld [vmem:[#allocation2 + $0x1a2] sm:$0xff]  ;;  %1521 = vst.msk [vmem:[#allocation2 + $0x1c1] sm:$0xff] %vm1414_vm0, %v1405_v2  ;;  %v4710_v33 = vadd.f32 %v4709_v20, %v4708_v16  ;;  %v4711_v35 = vpop.f32.mrb[102].mxu1  ;;  %4896 = vmatprep.mubr.msk.bf16.mxu0 %vm1414_vm0, %v1563_v61 }
 0x1cd   : > { %v4712_v22 = vpop.f32.mrb[103].mxu1  ;;  %4905 = vmatpush3.bf16.msra.mxu0 %v5500_v63 }
 0x1ce   : > { %v1352_v15 = vadd.f32 %v4710_v33, %v1191_v19  ;;  %v4713_v46 = vadd.f32 %v4712_v22, %v4711_v35  ;;  %4906 = vmatprep.subr.bf16.mxu0 %v5501_v49  ;;  %v1199_v19 = vadd.f32 %v6151_v0, %v6167_v24  ;;  %v1532_v22 = vld [vmem:[#allocation2 + $0x1e0] sm:$0xff] }
 0x1d0   : > { %v1406_v16 = vmax.f32 %v1352_v15, 0.0  ;;  %v1355_v2 = vadd.f32 %v4713_v46, %v1194_v12  ;;  %v1202_v12 = vadd.f32 %v6154_v5, %v6167_v24  ;;  %v1207_v5 = vadd.f32 %v6156_v9, %v6167_v24 }
 0x1d1   : > { %v6374_v61 = vld [vmem:[#allocation2 + $0x1b1] sm:$0xff]  ;;  %4907 = vmatpush3.bf16.msra.mxu0 %v5501_v49 }
 0x1d2   : > { %1523 = vst.msk [vmem:[#allocation2 + $0x1f1] sm:$0xff] %vm1414_vm0, %v1406_v16  ;;  %v1407_v20 = vmax.f32 %v1355_v2, 0.0  ;;  %v4714_v34 = vpop.f32.mrb[104].mxu1  ;;  %v1564_v63 = vpack.c.bf16 %v6374_v61, %v6355_v59  ;;  %4916 = vmatprep.subr.bf16.mxu0 %v5502_v54 }
 0x1d3   : > { %v4715_v58 = vpop.f32.mrb[105].mxu1 }
 0x1d4   : > { %1524 = vst.msk [vmem:[#allocation2 + $0x201] sm:$0xff] %vm1414_vm0, %v1407_v20  ;;  %v4716_v33 = vadd.f32 %v4715_v58, %v4714_v34  ;;  %v4717_v15 = vpop.f32.mrb[106].mxu1  ;;  %4897 = vmatmul.mubr.msk.bf16.gmra.mrb[16].mxu0 %vm1414_vm0, %v1564_v63 }
 0x1d5   : > { %v4718_v46 = vpop.f32.mrb[107].mxu1 }
 0x1d6   : > { %v1360_v49 = vadd.f32 %v4716_v33, %v1199_v19  ;;  %v4719_v35 = vadd.f32 %v4718_v46, %v4717_v15 }
 0x1d8   : > { %v1408_v16 = vmax.f32 %v1360_v49, 0.0  ;;  %v1363_v2 = vadd.f32 %v4719_v35, %v1202_v12  ;;  %v1210_v49 = vadd.f32 %v6158_v14, %v6167_v24 }
 0x1d9   : > { %v6385_v56 = vld [vmem:[#allocation2 + $0x1f0] sm:$0xff] }
 0x1da   : > { %1525 = vst.msk [vmem:[#allocation2 + $0x211] sm:$0xff] %vm1414_vm0, %v1408_v16  ;;  %v1409_v0 = vmax.f32 %v1363_v2, 0.0  ;;  %v4720_v43 = vpop.f32.mrb[108].mxu1  ;;  %v1540_v34 = vpack.c.bf16 %v6385_v56, %v1532_v22  ;;  %v6391_v63 = vld [vmem:[#allocation2 + $0x1f1] sm:$0xff] }
 0x1db   : > { %v4721_v20 = vpop.f32.mrb[109].mxu1  ;;  %v6389_v58 = vld [vmem:[#allocation2 + $0x200] sm:$0xff] }
 0x1dc   : > { %v6393_v45 = vld [vmem:[#allocation2 + $0x201] sm:$0xff]  ;;  %1526 = vst.msk [vmem:[#allocation2 + $0x221] sm:$0xff] %vm1414_vm0, %v1409_v0  ;;  %v4722_v19 = vadd.f32 %v4721_v20, %v4720_v43  ;;  %v4723_v33 = vpop.f32.mrb[110].mxu1  ;;  %4908 = vmatprep.mubr.msk.bf16.mxu0 %vm1414_vm0, %v1540_v34  ;;  %v2564_v15 = vpack.c.bf16 %v6389_v58, %v6385_v56 }
 0x1dd   : > { %v4724_v12 = vpop.f32.mrb[111].mxu1  ;;  %v5503_v20 = vld [vmem:[%s7003_s3 + $0x48] sm:$0xff]  }
 0x1de   : > { %v1368_v35 = vadd.f32 %v4722_v19, %v1207_v5  ;;  %v4725_v22 = vadd.f32 %v4724_v12, %v4723_v33  ;;  %v1215_v19 = vadd.f32 %v6160_v18, %v6167_v24  ;;  %v5504_v18 = vld [vmem:[%s7003_s3 + $0x50] sm:$0xff]  }
 0x1e0   : > { %v1410_v16 = vmax.f32 %v1368_v35, 0.0  ;;  %v1371_v9 = vadd.f32 %v4725_v22, %v1210_v49  ;;  %v5519_v35 = vld [vmem:[%s7003_s3 + $0xc8] sm:$0xff]  }
 0x1e1   : > { %v6405_v2 = vld [vmem:[#allocation2 + $0x210] sm:$0xff]  ;;  %v5527_v49 = vld [vmem:[%s7003_s3 + $0x108] sm:$0xff]  }
 0x1e2   : > { %1527 = vst.msk [vmem:[#allocation2 + $0x231] sm:$0xff] %vm1414_vm0, %v1410_v16  ;;  %v1411_v43 = vmax.f32 %v1371_v9, 0.0  ;;  %v4726_v0 = vpop.f32.mrb[112].mxu1  ;;  %v1541_v34 = vpack.c.bf16 %v6405_v2, %v6389_v58  ;;  %v6415_v14 = vld [vmem:[#allocation2 + $0x211] sm:$0xff]  ;;  %v1218_v16 = vadd.f32 %v6162_v23, %v6167_v24 }
 0x1e3   : > { %v4727_v46 = vpop.f32.mrb[113].mxu1  ;;  %v6413_v53 = vld [vmem:[#allocation2 + $0x220] sm:$0xff]  ;;  %v5505_v23 = vld [vmem:[%s7003_s3 + $0x58] sm:$0xff]   ;;  %v5532_v58 = vld [vmem:[%s7003_s3 + $0x130] sm:$0xff]  }
 0x1e4   : > { %v6417_v5 = vld [vmem:[#allocation2 + $0x221] sm:$0xff]  ;;  %1528 = vst.msk [vmem:[#allocation2 + $0x241] sm:$0xff] %vm1414_vm0, %v1411_v43  ;;  %v4728_v33 = vadd.f32 %v4727_v46, %v4726_v0  ;;  %v4729_v12 = vpop.f32.mrb[114].mxu1  ;;  %4909 = vmatmul.mubr.msk.bf16.vlgmr.msra.gmra.mrb[12].mxu0 %vm1414_vm0, %v1541_v34 }
 0x1e5   : > { %v4730_v22 = vpop.f32.mrb[115].mxu1  ;;  %4917 = vmatpush3.bf16.msra.mxu0 %v5502_v54 }
 0x1e6   : > { %v1376_v9 = vadd.f32 %v4728_v33, %v1215_v19  ;;  %v4731_v44 = vadd.f32 %v4730_v22, %v4729_v12  ;;  %4918 = vmatprep.subr.bf16.mxu0 %v5503_v20  ;;  %v5506_v12 = vld [vmem:[%s7003_s3 + $0x60] sm:$0xff]  }
 0x1e7   : > { %v1776_v22 = vld [vmem:[#allocation2 + $0x1e1] sm:$0xff] }
 0x1e8   : > { %v1412_v46 = vmax.f32 %v1376_v9, 0.0  ;;  %v1379_v43 = vadd.f32 %v4731_v44, %v1218_v16  ;;  %v5523_v44 = vld [vmem:[%s7003_s3 + $0xe8] sm:$0xff]  }
 0x1e9   : > { %v6432_v0 = vld [vmem:[#allocation2 + $0x230] sm:$0xff]  ;;  %4919 = vmatpush3.bf16.msra.mxu0 %v5503_v20  ;;  %v5515_v20 = vld [vmem:[%s7003_s3 + $0xa8] sm:$0xff]  }
 0x1ea   : > { %1529 = vst.msk [vmem:[#allocation2 + $0x251] sm:$0xff] %vm1414_vm0, %v1412_v46  ;;  %v1413_v34 = vmax.f32 %v1379_v43, 0.0  ;;  %v1542_v54 = vpack.c.bf16 %v6432_v0, %v6413_v53  ;;  %4920 = vmatprep.subr.bf16.mxu0 %v5504_v18  ;;  %v6442_v19 = vld [vmem:[#allocation2 + $0x231] sm:$0xff]  ;;  %v1784_v46 = vpack.c.bf16 %v6391_v63, %v1776_v22  ;;  %v5507_v43 = vld [vmem:[%s7003_s3 + $0x68] sm:$0xff]  }
 0x1eb   : > { %v6440_v24 = vld [vmem:[#allocation2 + $0x240] sm:$0xff] }
 0x1ec   : > { %v6444_v33 = vld [vmem:[#allocation2 + $0x241] sm:$0xff]  ;;  %1530 = vst.msk [vmem:[#allocation2 + $0x261] sm:$0xff] %vm1414_vm0, %v1413_v34  ;;  %4912 = vmatprep.mubr.msk.bf16.mxu0 %vm1414_vm0, %v1542_v54  ;;  %v1786_v34 = vpack.c.bf16 %v6442_v19, %v6417_v5  ;;  %v5508_v54 = vld [vmem:[%s7003_s3 + $0x70] sm:$0xff]   ;;  %v7019_v56 = vpack.c.bf16 %v6440_v24, %v6432_v0 }
 0x1ed   : > { %4921 = vmatpush3.bf16.msra.mxu0 %v5504_v18  ;;  %v1785_v18 = vpack.c.bf16 %v6415_v14, %v6393_v45  ;;  %v1906_v22 = vld [vmem:[#allocation2 + $0x142] sm:$0xff] }
 0x1ee   : > { %4922 = vmatprep.subr.bf16.mxu0 %v5505_v23  ;;  %v5534_v0 = vld [vmem:[%s7003_s3 + $0x140] sm:$0xff]  }
 0x1f1   : > { %v6455_v16 = vld [vmem:[#allocation2 + $0x250] sm:$0xff]  ;;  %4923 = vmatpush3.bf16.msra.mxu0 %v5505_v23 }
 0x1f2   : > { %v1543_v9 = vpack.c.bf16 %v6455_v16, %v6440_v24  ;;  %4932 = vmatprep.subr.bf16.mxu0 %v5506_v12  ;;  %v6474_v23 = vld [vmem:[#allocation2 + $0x251] sm:$0xff]  ;;  %v5535_v24 = vld [vmem:[%s7003_s3 + $0x148] sm:$0xff]  }
 0x1f4   : > { %4913 = vmatmul.mubr.msk.bf16.gmra.mrb[16].mxu0 %vm1414_vm0, %v1543_v9  ;;  %v1787_v9 = vpack.c.bf16 %v6474_v23, %v6444_v33 }
 0x1f5   : > { %4924 = vmatprep.mubr.msk.bf16.mxu0 %vm1414_vm0, %v1784_v46  ;;  %v5509_v46 = vld [vmem:[%s7003_s3 + $0x78] sm:$0xff]  }
 0x1fc   : > { %4925 = vmatmul.mubr.msk.bf16.vlgmr.msra.gmra.mrb[12].mxu0 %vm1414_vm0, %v1785_v18  ;;  %v1914_v18 = vpack.c.bf16 %v6305_v17, %v1906_v22  ;;  %v1916_v22 = vpack.c.bf16 %v6357_v48, %v6331_v29 }
 0x1fd   : > { %4928 = vmatprep.mubr.msk.bf16.mxu0 %vm1414_vm0, %v1786_v34  ;;  %4933 = vmatpush3.bf16.msra.mxu0 %v5506_v12  ;;  %v5510_v12 = vld [vmem:[%s7003_s3 + $0x80] sm:$0xff]   ;;  %v5511_v34 = vld [vmem:[%s7003_s3 + $0x88] sm:$0xff]  }
 0x1fe   : > { %4934 = vmatprep.subr.bf16.mxu0 %v5507_v43 }
 0x201   : > { %4935 = vmatpush3.bf16.msra.mxu0 %v5507_v43  ;;  %v1915_v43 = vpack.c.bf16 %v6329_v39, %v6307_v11 }
 0x202   : > { %4936 = vmatprep.subr.bf16.mxu0 %v5508_v54 }
 0x204   : > { %4929 = vmatmul.mubr.msk.bf16.gmra.mrb[16].mxu0 %vm1414_vm0, %v1787_v9  ;;  %v6499_v9 = vld [vmem:[#allocation2 + $0x1b2] sm:$0xff] }
 0x205   : > { %4937 = vmatpush3.bf16.msra.mxu0 %v5508_v54  ;;  %4940 = vmatprep.mubr.msk.bf16.mxu0 %vm1414_vm0, %v1914_v18  ;;  %v5512_v54 = vld [vmem:[%s7003_s3 + $0x90] sm:$0xff]  }
 0x206   : > { %4938 = vmatprep.subr.bf16.mxu0 %v5509_v46  ;;  %v2036_v18 = vld [vmem:[#allocation2 + $0xb0] sm:$0xff] }
 0x209   : > { %4939 = vmatpush3.bf16.msra.mxu0 %v5509_v46  ;;  %v1917_v46 = vpack.c.bf16 %v6499_v9, %v6359_v50 }
 0x20a   : > { %4948 = vmatprep.subr.bf16.mxu0 %v5510_v12 }
 0x20c   : > { %4941 = vmatmul.mubr.msk.bf16.vlgmr.msra.gmra.mrb[12].mxu0 %vm1414_vm0, %v1915_v43  ;;  %v5513_v43 = vld [vmem:[%s7003_s3 + $0x98] sm:$0xff]  }
 0x20d   : > { %4944 = vmatprep.mubr.msk.bf16.mxu0 %vm1414_vm0, %v1916_v22  ;;  %4949 = vmatpush3.bf16.msra.mxu0 %v5510_v12  ;;  %v2044_v22 = vpack.c.bf16 %v6245_v41, %v2036_v18  ;;  %v5514_v12 = vld [vmem:[%s7003_s3 + $0xa0] sm:$0xff]  }
 0x20e   : > { %4950 = vmatprep.subr.bf16.mxu0 %v5511_v34  ;;  %v6524_v18 = vld [vmem:[#allocation2 + $0x120] sm:$0xff] }
 0x211   : > { %4951 = vmatpush3.bf16.msra.mxu0 %v5511_v34  ;;  %v2045_v34 = vpack.c.bf16 %v6263_v8, %v6247_v36 }
 0x212   : > { %4952 = vmatprep.subr.bf16.mxu0 %v5512_v54 }
 0x214   : > { %4945 = vmatmul.mubr.msk.bf16.gmra.mrb[16].mxu0 %vm1414_vm0, %v1917_v46  ;;  %v2046_v46 = vpack.c.bf16 %v6281_v3, %v6265_v4 }
 0x215   : > { %4953 = vmatpush3.bf16.msra.mxu0 %v5512_v54  ;;  %4956 = vmatprep.mubr.msk.bf16.mxu0 %vm1414_vm0, %v2044_v22  ;;  %v5516_v54 = vld [vmem:[%s7003_s3 + $0xb0] sm:$0xff]  }
 0x216   : > { %4954 = vmatprep.subr.bf16.mxu0 %v5513_v43  ;;  %v2166_v22 = vld [vmem:[#allocation2 + $0x11] sm:$0xff] }
 0x219   : > { %4955 = vmatpush3.bf16.msra.mxu0 %v5513_v43  ;;  %v2047_v43 = vpack.c.bf16 %v6524_v18, %v6283_v1 }
 0x21a   : > { %4964 = vmatprep.subr.bf16.mxu0 %v5514_v12 }
 0x21c   : > { %4957 = vmatmul.mubr.msk.bf16.vlgmr.msra.gmra.mrb[12].mxu0 %vm1414_vm0, %v2045_v34  ;;  %v5517_v34 = vld [vmem:[%s7003_s3 + $0xb8] sm:$0xff]  }
 0x21d   : > { %4960 = vmatprep.mubr.msk.bf16.mxu0 %vm1414_vm0, %v2046_v46  ;;  %4965 = vmatpush3.bf16.msra.mxu0 %v5514_v12  ;;  %v2174_v46 = vpack.c.bf16 %v6185_v27, %v2166_v22  ;;  %v2175_v12 = vpack.c.bf16 %v6203_v52, %v6187_v28  ;;  %v6549_v22 = vld [vmem:[#allocation2 + $0x81] sm:$0xff] }
 0x21e   : > { %4966 = vmatprep.subr.bf16.mxu0 %v5515_v20 }
 0x221   : > { %4967 = vmatpush3.bf16.msra.mxu0 %v5515_v20  ;;  %v5518_v20 = vld [vmem:[%s7003_s3 + $0xc0] sm:$0xff]  }
 0x222   : > { %4968 = vmatprep.subr.bf16.mxu0 %v5516_v54 }
 0x224   : > { %4961 = vmatmul.mubr.msk.bf16.gmra.mrb[16].mxu0 %vm1414_vm0, %v2047_v43  ;;  %v2176_v43 = vpack.c.bf16 %v6221_v21, %v6205_v55 }
 0x225   : > { %4969 = vmatpush3.bf16.msra.mxu0 %v5516_v54  ;;  %4972 = vmatprep.mubr.msk.bf16.mxu0 %vm1414_vm0, %v2174_v46  ;;  %v5520_v54 = vld [vmem:[%s7003_s3 + $0xd0] sm:$0xff]  }
 0x226   : > { %4970 = vmatprep.subr.bf16.mxu0 %v5517_v34  ;;  %v2296_v46 = vld [vmem:[#allocation2 + $0xb1] sm:$0xff] }
 0x229   : > { %4971 = vmatpush3.bf16.msra.mxu0 %v5517_v34  ;;  %v2177_v34 = vpack.c.bf16 %v6549_v22, %v6223_v25 }
 0x22a   : > { %4980 = vmatprep.subr.bf16.mxu0 %v5518_v20 }
 0x22c   : > { %4973 = vmatmul.mubr.msk.bf16.vlgmr.msra.gmra.mrb[12].mxu0 %vm1414_vm0, %v2175_v12  ;;  %v5521_v12 = vld [vmem:[%s7003_s3 + $0xd8] sm:$0xff]  }
 0x22d   : > { %4976 = vmatprep.mubr.msk.bf16.mxu0 %vm1414_vm0, %v2176_v43  ;;  %4981 = vmatpush3.bf16.msra.mxu0 %v5518_v20  ;;  %v2304_v43 = vpack.c.bf16 %v6249_v40, %v2296_v46  ;;  %v2305_v20 = vpack.c.bf16 %v6267_v10, %v6251_v42  ;;  %v6574_v46 = vld [vmem:[#allocation2 + $0x121] sm:$0xff] }
 0x22e   : > { %4982 = vmatprep.subr.bf16.mxu0 %v5519_v35 }
 0x231   : > { %4983 = vmatpush3.bf16.msra.mxu0 %v5519_v35  ;;  %v5522_v35 = vld [vmem:[%s7003_s3 + $0xe0] sm:$0xff]  }
 0x232   : > { %4984 = vmatprep.subr.bf16.mxu0 %v5520_v54 }
 0x234   : > { %4977 = vmatmul.mubr.msk.bf16.gmra.mrb[16].mxu0 %vm1414_vm0, %v2177_v34  ;;  %v2306_v34 = vpack.c.bf16 %v6285_v6, %v6269_v51 }
 0x235   : > { %4985 = vmatpush3.bf16.msra.mxu0 %v5520_v54  ;;  %4988 = vmatprep.mubr.msk.bf16.mxu0 %vm1414_vm0, %v2304_v43  ;;  %v5524_v54 = vld [vmem:[%s7003_s3 + $0xf0] sm:$0xff]  }
 0x236   : > { %4986 = vmatprep.subr.bf16.mxu0 %v5521_v12  ;;  %v2426_v43 = vld [vmem:[#allocation2 + $0x12] sm:$0xff] }
 0x239   : > { %4987 = vmatpush3.bf16.msra.mxu0 %v5521_v12  ;;  %v2307_v12 = vpack.c.bf16 %v6574_v46, %v6287_v47 }
 0x23a   : > { %4996 = vmatprep.subr.bf16.mxu0 %v5522_v35 }
 0x23c   : > { %4989 = vmatmul.mubr.msk.bf16.vlgmr.msra.gmra.mrb[12].mxu0 %vm1414_vm0, %v2305_v20  ;;  %v5525_v20 = vld [vmem:[%s7003_s3 + $0xf8] sm:$0xff]  }
 0x23d   : > { %4992 = vmatprep.mubr.msk.bf16.mxu0 %vm1414_vm0, %v2306_v34  ;;  %4997 = vmatpush3.bf16.msra.mxu0 %v5522_v35  ;;  %v2434_v34 = vpack.c.bf16 %v6189_v30, %v2426_v43  ;;  %v2435_v35 = vpack.c.bf16 %v6207_v57, %v6191_v13  ;;  %v6599_v43 = vld [vmem:[#allocation2 + $0x82] sm:$0xff] }
 0x23e   : > { %4998 = vmatprep.subr.bf16.mxu0 %v5523_v44 }
 0x241   : > { %4999 = vmatpush3.bf16.msra.mxu0 %v5523_v44  ;;  %v5526_v44 = vld [vmem:[%s7003_s3 + $0x100] sm:$0xff]  }
 0x242   : > { %5000 = vmatprep.subr.bf16.mxu0 %v5524_v54 }
 0x244   : > { %4993 = vmatmul.mubr.msk.bf16.gmra.mrb[16].mxu0 %vm1414_vm0, %v2307_v12  ;;  %v2436_v12 = vpack.c.bf16 %v6225_v31, %v6209_v60 }
 0x245   : > { %5001 = vmatpush3.bf16.msra.mxu0 %v5524_v54  ;;  %5004 = vmatprep.mubr.msk.bf16.mxu0 %vm1414_vm0, %v2434_v34  ;;  %v5528_v54 = vld [vmem:[%s7003_s3 + $0x110] sm:$0xff]   ;;  %v5529_v34 = vld [vmem:[%s7003_s3 + $0x118] sm:$0xff]  }
 0x246   : > { %5002 = vmatprep.subr.bf16.mxu0 %v5525_v20 }
 0x249   : > { %5003 = vmatpush3.bf16.msra.mxu0 %v5525_v20  ;;  %v2437_v20 = vpack.c.bf16 %v6599_v43, %v6227_v32 }
 0x24a   : > { %5012 = vmatprep.subr.bf16.mxu0 %v5526_v44 }
 0x24c   : > { %5005 = vmatmul.mubr.msk.bf16.vlgmr.msra.gmra.mrb[12].mxu0 %vm1414_vm0, %v2435_v35  ;;  %v7018_v35 = vpack.c.bf16 %v6413_v53, %v6405_v2  ;;  %v5533_v53 = vld [vmem:[%s7003_s3 + $0x138] sm:$0xff]   ;;  %v7020_v2 = vpack.c.bf16 %v6303_v7, %v6299_v37  ;;  %v7022_v37 = vpack.c.bf16 %v6355_v59, %v6347_v26  ;;  %v5536_v7 = vld [vmem:[%s7003_s3 + $0x150] sm:$0xff]   ;;  %v5538_v26 = vld [vmem:[%s7003_s3 + $0x160] sm:$0xff]  }
 0x24d   : > { %5008 = vmatprep.mubr.msk.bf16.mxu0 %vm1414_vm0, %v2436_v12  ;;  %5013 = vmatpush3.bf16.msra.mxu0 %v5526_v44  ;;  %v5531_v44 = vld [vmem:[%s7003_s3 + $0x128] sm:$0xff]  }
 0x24e   : > { %5014 = vmatprep.subr.bf16.mxu0 %v5527_v49  ;;  %v5539_v59 = vld [vmem:[%s7003_s3 + $0x168] sm:$0xff]  }
 0x251   : > { %5015 = vmatpush3.bf16.msra.mxu0 %v5527_v49  ;;  %v5530_v49 = vld [vmem:[%s7003_s3 + $0x120] sm:$0xff]  }
 0x252   : > { %5016 = vmatprep.subr.bf16.mxu0 %v5528_v54 }
 0x254   : > { %5009 = vmatmul.mubr.msk.bf16.gmra.mrb[16].mxu0 %vm1414_vm0, %v2437_v20 }
 0x255   : > { %5017 = vmatpush3.bf16.msra.mxu0 %v5528_v54  ;;  %5020 = vmatprep.mubr.msk.bf16.mxu0 %vm1414_vm0, %v2564_v15  ;;  %v2563_v15 = vld [vmem:[#allocation2 + $0x260] sm:$0xff] }
 0x256   : > { %5018 = vmatprep.subr.bf16.mxu0 %v5529_v34  ;;  %v2567_v12 = vpack.c.bf16 %v2563_v15, %v6455_v16  ;;  %v7021_v16 = vpack.c.bf16 %v6327_v38, %v6319_v62  ;;  %v2693_v54 = vld [vmem:[#allocation2 + $0x1c1] sm:$0xff]  ;;  %v5537_v38 = vld [vmem:[%s7003_s3 + $0x158] sm:$0xff]   ;;  %v7023_v62 = vpack.c.bf16 %v6393_v45, %v6391_v63  ;;  %v7025_v45 = vpack.c.bf16 %v6444_v33, %v6442_v19  ;;  %v5540_v63 = vld [vmem:[%s7003_s3 + $0x170] sm:$0xff]  }
 0x257   : > { %v2697_v20 = vpack.c.bf16 %v2693_v54, %v6374_v61  ;;  %v7024_v61 = vpack.c.bf16 %v6417_v5, %v6415_v14  ;;  %v5541_v14 = vld [vmem:[%s7003_s3 + $0x178] sm:$0xff]   ;;  %v7026_v5 = vpack.c.bf16 %v6307_v11, %v6305_v17  ;;  %v5542_v19 = vld [vmem:[%s7003_s3 + $0x180] sm:$0xff]   ;;  %v5543_v33 = vld [vmem:[%s7003_s3 + $0x188] sm:$0xff]   ;;  %v7028_v11 = vpack.c.bf16 %v6359_v50, %v6357_v48 }
 0x258   : > { %v5544_v17 = vld [vmem:[%s7003_s3 + $0x190] sm:$0xff]   ;;  %v5546_v48 = vld [vmem:[%s7003_s3 + $0x1a0] sm:$0xff]   ;;  %v5547_v50 = vld [vmem:[%s7003_s3 + $0x1a8] sm:$0xff]  }
 0x259   : > { %5019 = vmatpush3.bf16.msra.mxu0 %v5529_v34  ;;  %v2823_v34 = vld [vmem:[#allocation2 + $0x261] sm:$0xff]  ;;  %v3215_v15 = vld [vmem:[#allocation2 + $0x91] sm:$0xff] }
 0x25a   : > { %5028 = vmatprep.subr.bf16.mxu0 %v5530_v49 }
 0x25c   : > { %5021 = vmatmul.mubr.msk.bf16.vlgmr.msra.gmra.mrb[12].mxu0 %vm1414_vm0, %v7018_v35 }
 0x25d   : > { %5024 = vmatprep.mubr.msk.bf16.mxu0 %vm1414_vm0, %v7019_v56  ;;  %5029 = vmatpush3.bf16.msra.mxu0 %v5530_v49  ;;  %v2827_v49 = vpack.c.bf16 %v2823_v34, %v6474_v23  ;;  %v7027_v23 = vpack.c.bf16 %v6331_v29, %v6329_v39  ;;  %v5545_v39 = vld [vmem:[%s7003_s3 + $0x198] sm:$0xff]   ;;  %v7029_v29 = vpack.c.bf16 %v6247_v36, %v6245_v41  ;;  %v5548_v36 = vld [vmem:[%s7003_s3 + $0x1b0] sm:$0xff]  }
 0x25e   : > { %5030 = vmatprep.subr.bf16.mxu0 %v5531_v44  ;;  %v7031_v41 = vpack.c.bf16 %v6283_v1, %v6281_v3  ;;  %v3084_v56 = vld [vmem:[#allocation2 + $0x130] sm:$0xff]  ;;  %v5550_v3 = vld [vmem:[%s7003_s3 + $0x1c0] sm:$0xff]   ;;  %v5551_v1 = vld [vmem:[%s7003_s3 + $0x1c8] sm:$0xff]  }
 0x261   : > { %5031 = vmatpush3.bf16.msra.mxu0 %v5531_v44  ;;  %v2953_v44 = vld [vmem:[#allocation2 + $0x1c2] sm:$0xff] }
 0x262   : > { %5032 = vmatprep.subr.bf16.mxu0 %v5532_v58  ;;  %v2957_v35 = vpack.c.bf16 %v2953_v44, %v6499_v9  ;;  %v7030_v9 = vpack.c.bf16 %v6265_v4, %v6263_v8  ;;  %v5549_v8 = vld [vmem:[%s7003_s3 + $0x1b8] sm:$0xff]   ;;  %v7032_v4 = vpack.c.bf16 %v6187_v28, %v6185_v27  ;;  %v7034_v27 = vpack.c.bf16 %v6223_v25, %v6221_v21  ;;  %v5552_v28 = vld [vmem:[%s7003_s3 + $0x1d0] sm:$0xff]   ;;  %v5554_v21 = vld [vmem:[%s7003_s3 + $0x1e0] sm:$0xff]  }
 0x263   : > { %v5555_v25 = vld [vmem:[%s7003_s3 + $0x1e8] sm:$0xff]  }
 0x264   : > { %5025 = vmatmul.mubr.msk.bf16.gmra.mrb[16].mxu0 %vm1414_vm0, %v2567_v12  ;;  %v3219_v12 = vpack.c.bf16 %v3215_v15, %v6549_v22  ;;  %v7036_v22 = vpack.c.bf16 %v6269_v51, %v6267_v10  ;;  %v5557_v10 = vld [vmem:[%s7003_s3 + $0x1f8] sm:$0xff]   ;;  %v7038_v51 = vpack.c.bf16 %v6191_v13, %v6189_v30  ;;  %v4480_v30 = vld [vmem:[%s7004_s4] ss:$0 sm:$0xff]  ;;  %v5564_v15 = vld [vmem:[%s7008_s8 + $0x30] sm:$0xff]  }
 0x265   : > { %5033 = vmatpush3.bf16.msra.mxu0 %v5532_v58  ;;  %5036 = vmatprep.mubr.msk.bf16.mxu0 %vm1414_vm0, %v7020_v2  ;;  %v3088_v58 = vpack.c.bf16 %v3084_v56, %v6524_v18  ;;  %v7033_v18 = vpack.c.bf16 %v6205_v55, %v6203_v52  ;;  %v5553_v52 = vld [vmem:[%s7003_s3 + $0x1d8] sm:$0xff]   ;;  %v7035_v55 = vpack.c.bf16 %v6251_v42, %v6249_v40  ;;  %v5556_v42 = vld [vmem:[%s7003_s3 + $0x1f0] sm:$0xff]  }
 0x266   : > { %5034 = vmatprep.subr.bf16.mxu0 %v5533_v53  ;;  %v7037_v40 = vpack.c.bf16 %v6287_v47, %v6285_v6  ;;  %v7039_v6 = vpack.c.bf16 %v6209_v60, %v6207_v57  ;;  %v7040_v47 = vpack.c.bf16 %v6227_v32, %v6225_v31  ;;  %v3623_v31 = vld [vmem:[%s7005_s5 + $0x10] sm:$0xff]  ;;  %v3628_v56 = vld [vmem:[%s7005_s5 + $0x38] sm:$0xff] }
 0x269   : > { %5035 = vmatpush3.bf16.msra.mxu0 %v5533_v53  ;;  %v3345_v53 = vld [vmem:[#allocation2 + $0x131] sm:$0xff] }
 0x26a   : > { %5044 = vmatprep.subr.bf16.mxu0 %v5534_v0  ;;  %v3349_v2 = vpack.c.bf16 %v3345_v53, %v6574_v46  ;;  %v3475_v46 = vld [vmem:[#allocation2 + $0x92] sm:$0xff] }
 0x26c   : > { %5037 = vmatmul.mubr.msk.bf16.vlgmr.msra.gmra.mrb[12].mxu0 %vm1414_vm0, %v7021_v16 }
 0x26d   : > { %5040 = vmatprep.mubr.msk.bf16.mxu0 %vm1414_vm0, %v7022_v37  ;;  %5045 = vmatpush3.bf16.msra.mxu0 %v5534_v0  ;;  %v3479_v0 = vpack.c.bf16 %v3475_v46, %v6599_v43  ;;  %v3621_v43 = vld [vmem:[%s7005_s5] sm:$0xff] }
 0x26e   : > { %5046 = vmatprep.subr.bf16.mxu0 %v5535_v24 }
 0x271   : > { %5047 = vmatpush3.bf16.msra.mxu0 %v5535_v24 }
 0x272   : > { %5048 = vmatprep.subr.bf16.mxu0 %v5536_v7 }
 0x274   : > { %5041 = vmatmul.mubr.msk.bf16.gmra.mrb[16].mxu0 %vm1414_vm0, %v2697_v20 }
 0x275   : > { %5049 = vmatpush3.bf16.msra.mxu0 %v5536_v7  ;;  %5052 = vmatprep.mubr.msk.bf16.mxu0 %vm1414_vm0, %v7023_v62 }
 0x276   : > { %5050 = vmatprep.subr.bf16.mxu0 %v5537_v38 }
 0x279   : > { %5051 = vmatpush3.bf16.msra.mxu0 %v5537_v38 }
 0x27a   : > { %5060 = vmatprep.subr.bf16.mxu0 %v5538_v26 }
 0x27c   : > { %5053 = vmatmul.mubr.msk.bf16.vlgmr.msra.gmra.mrb[12].mxu0 %vm1414_vm0, %v7024_v61  ;;  %v3624_v61 = vld [vmem:[%s7005_s5 + $0x18] sm:$0xff] }
 0x27d   : > { %5056 = vmatprep.mubr.msk.bf16.mxu0 %vm1414_vm0, %v7025_v45  ;;  %5061 = vmatpush3.bf16.msra.mxu0 %v5538_v26  ;;  %v3622_v45 = vld [vmem:[%s7005_s5 + $0x8] sm:$0xff] }
 0x27e   : > { %5062 = vmatprep.subr.bf16.mxu0 %v5539_v59 }
 0x281   : > { %5063 = vmatpush3.bf16.msra.mxu0 %v5539_v59 }
 0x282   : > { %5064 = vmatprep.subr.bf16.mxu0 %v5540_v63 }
 0x284   : > { %5057 = vmatmul.mubr.msk.bf16.gmra.mrb[16].mxu0 %vm1414_vm0, %v2827_v49 }
 0x285   : > { %5065 = vmatpush3.bf16.msra.mxu0 %v5540_v63  ;;  %5068 = vmatprep.mubr.msk.bf16.mxu0 %vm1414_vm0, %v7026_v5 }
 0x286   : > { %5066 = vmatprep.subr.bf16.mxu0 %v5541_v14 }
 0x289   : > { %5067 = vmatpush3.bf16.msra.mxu0 %v5541_v14 }
 0x28a   : > { %5076 = vmatprep.subr.bf16.mxu0 %v5542_v19 }
 0x28c   : > { %5069 = vmatmul.mubr.msk.bf16.vlgmr.msra.gmra.mrb[12].mxu0 %vm1414_vm0, %v7027_v23 }
 0x28d   : > { %5072 = vmatprep.mubr.msk.bf16.mxu0 %vm1414_vm0, %v7028_v11  ;;  %5077 = vmatpush3.bf16.msra.mxu0 %v5542_v19  ;;  %v3625_v11 = vld [vmem:[%s7005_s5 + $0x20] sm:$0xff] }
 0x28e   : > { %5078 = vmatprep.subr.bf16.mxu0 %v5543_v33 }
 0x291   : > { %5079 = vmatpush3.bf16.msra.mxu0 %v5543_v33 }
 0x292   : > { %5080 = vmatprep.subr.bf16.mxu0 %v5544_v17 }
 0x294   : > { %5073 = vmatmul.mubr.msk.bf16.gmra.mrb[16].mxu0 %vm1414_vm0, %v2957_v35 }
 0x295   : > { %5081 = vmatpush3.bf16.msra.mxu0 %v5544_v17  ;;  %5084 = vmatprep.mubr.msk.bf16.mxu0 %vm1414_vm0, %v7029_v29 }
 0x296   : > { %5082 = vmatprep.subr.bf16.mxu0 %v5545_v39 }
 0x299   : > { %5083 = vmatpush3.bf16.msra.mxu0 %v5545_v39  ;;  %v3626_v39 = vld [vmem:[%s7005_s5 + $0x28] sm:$0xff] }
 0x29a   : > { %5092 = vmatprep.subr.bf16.mxu0 %v5546_v48 }
 0x29c   : > { %5085 = vmatmul.mubr.msk.bf16.vlgmr.msra.gmra.mrb[12].mxu0 %vm1414_vm0, %v7030_v9  ;;  %v3627_v9 = vld [vmem:[%s7005_s5 + $0x30] sm:$0xff] }
 0x29d   : > { %5088 = vmatprep.mubr.msk.bf16.mxu0 %vm1414_vm0, %v7031_v41  ;;  %5093 = vmatpush3.bf16.msra.mxu0 %v5546_v48 }
 0x29e   : > { %5094 = vmatprep.subr.bf16.mxu0 %v5547_v50 }
 0x2a1   : > { %5095 = vmatpush3.bf16.msra.mxu0 %v5547_v50 }
 0x2a2   : > { %5096 = vmatprep.subr.bf16.mxu0 %v5548_v36 }
 0x2a4   : > { %5089 = vmatmul.mubr.msk.bf16.gmra.mrb[16].mxu0 %vm1414_vm0, %v3088_v58 }
 0x2a5   : > { %5097 = vmatpush3.bf16.msra.mxu0 %v5548_v36  ;;  %5100 = vmatprep.mubr.msk.bf16.mxu0 %vm1414_vm0, %v7032_v4  ;;  %v5558_v4 = vld [vmem:[%s7008_s8] sm:$0xff]  }
 0x2a6   : > { %5098 = vmatprep.subr.bf16.mxu0 %v5549_v8  ;;  %5140 = vmatprep.subr.bf16.mxu1 %v5558_v4 }
 0x2a7   : > { %5141 = vmatpush3.bf16.msra.mxu1 %v5558_v4 }
 0x2a9   : > { %5099 = vmatpush3.bf16.msra.mxu0 %v5549_v8 }
 0x2aa   : > { %5108 = vmatprep.subr.bf16.mxu0 %v5550_v3 }
 0x2ac   : > { %5101 = vmatmul.mubr.msk.bf16.vlgmr.msra.gmra.mrb[12].mxu0 %vm1414_vm0, %v7033_v18  ;;  %v5561_v18 = vld [vmem:[%s7008_s8 + $0x18] sm:$0xff]  }
 0x2ad   : > { %5104 = vmatprep.mubr.msk.bf16.mxu0 %vm1414_vm0, %v7034_v27  ;;  %5109 = vmatpush3.bf16.msra.mxu0 %v5550_v3  ;;  %v5559_v3 = vld [vmem:[%s7008_s8 + $0x8] sm:$0xff]   ;;  %v5562_v27 = vld [vmem:[%s7008_s8 + $0x20] sm:$0xff]  }
 0x2ae   : > { %5110 = vmatprep.subr.bf16.mxu0 %v5551_v1  ;;  %5142 = vmatprep.subr.bf16.mxu1 %v5559_v3 }
 0x2af   : > { %5143 = vmatpush3.bf16.msra.mxu1 %v5559_v3  ;;  %v4481_v3 = vld [vmem:[%s7006_s6] ss:$0 sm:$0xff] }
 0x2b1   : > { %5111 = vmatpush3.bf16.msra.mxu0 %v5551_v1  ;;  %v5560_v1 = vld [vmem:[%s7008_s8 + $0x10] sm:$0xff]  }
 0x2b2   : > { %5112 = vmatprep.subr.bf16.mxu0 %v5552_v28  ;;  %5144 = vmatprep.subr.bf16.mxu1 %v5560_v1 }
 0x2b3   : > { %5145 = vmatpush3.bf16.msra.mxu1 %v5560_v1 }
 0x2b4   : > { %5105 = vmatmul.mubr.msk.bf16.gmra.mrb[16].mxu0 %vm1414_vm0, %v3219_v12  ;;  %5146 = vmatprep.subr.bf16.mxu1 %v5561_v18 }
 0x2b5   : > { %5113 = vmatpush3.bf16.msra.mxu0 %v5552_v28  ;;  %5116 = vmatprep.mubr.msk.bf16.mxu0 %vm1414_vm0, %v7035_v55  ;;  %v5563_v28 = vld [vmem:[%s7008_s8 + $0x28] sm:$0xff]  }
 0x2b6   : > { %5114 = vmatprep.subr.bf16.mxu0 %v5553_v52 }
 0x2b7   : > { %5147 = vmatpush3.bf16.msra.mxu1 %v5561_v18 }
 0x2b8   : > { %5148 = vmatprep.subr.bf16.mxu1 %v5562_v27 }
 0x2b9   : > { %5115 = vmatpush3.bf16.msra.mxu0 %v5553_v52 }
 0x2ba   : > { %5124 = vmatprep.subr.bf16.mxu0 %v5554_v21 }
 0x2bb   : > { %5149 = vmatpush3.bf16.msra.mxu1 %v5562_v27 }
 0x2bc   : > { %5117 = vmatmul.mubr.msk.bf16.vlgmr.msra.gmra.mrb[12].mxu0 %vm1414_vm0, %v7036_v22  ;;  %5150 = vmatprep.subr.bf16.mxu1 %v5563_v28 }
 0x2bd   : > { %5120 = vmatprep.mubr.msk.bf16.mxu0 %vm1414_vm0, %v7037_v40  ;;  %5125 = vmatpush3.bf16.msra.mxu0 %v5554_v21 }
 0x2be   : > { %5126 = vmatprep.subr.bf16.mxu0 %v5555_v25 }
 0x2bf   : > { %5151 = vmatpush3.bf16.msra.mxu1 %v5563_v28 }
 0x2c0   : > { %5152 = vmatprep.subr.bf16.mxu1 %v5564_v15 }
 0x2c1   : > { %5127 = vmatpush3.bf16.msra.mxu0 %v5555_v25 }
 0x2c2   : > { %5128 = vmatprep.subr.bf16.mxu0 %v5556_v42 }
 0x2c3   : > { %5153 = vmatpush3.bf16.msra.mxu1 %v5564_v15 }
 0x2c4   : > { %5121 = vmatmul.mubr.msk.bf16.gmra.mrb[16].mxu0 %vm1414_vm0, %v3349_v2 }
 0x2c5   : > { %5129 = vmatpush3.bf16.msra.mxu0 %v5556_v42  ;;  %5132 = vmatprep.mubr.msk.bf16.mxu0 %vm1414_vm0, %v7038_v51 }
 0x2c6   : > { %5130 = vmatprep.subr.bf16.mxu0 %v5557_v10 }
 0x2c9   : > { %5131 = vmatpush3.bf16.msra.mxu0 %v5557_v10 }
 0x2cc   : > { %5133 = vmatmul.mubr.msk.bf16.vlgmr.msra.gmra.mrb[12].mxu0 %vm1414_vm0, %v7039_v6 }
 0x2cd   : > { %5136 = vmatprep.mubr.msk.bf16.mxu0 %vm1414_vm0, %v7040_v47 }
 0x2d4   : > { %5137 = vmatmul.mubr.msk.bf16.gmra.mrb[16].mxu0 %vm1414_vm0, %v3479_v0 }
 0x39f   : > { %v5134_v13 = vpop.f32.mrb[12].mxu0 }
 0x3a0   : > { %v3607_v24 = vadd.f32 %v5134_v13, %v4480_v30  ;;  %v3559_v16 = vpop.f32.mrb[13].mxu0 }
 0x3a1   : > { %v3605_v57 = vadd.f32 %v4480_v30, %v3559_v16  ;;  %v5135_v60 = vpop.f32.mrb[14].mxu0 }
 0x3a2   : > { %v3615_v32 = vmax.f32 %v3607_v24, 0.0  ;;  %v3608_v37 = vadd.f32 %v5135_v60, %v4480_v30  ;;  %v3562_v7 = vpop.f32.mrb[15].mxu0 }
 0x3a3   : > { %v3613_v54 = vmax.f32 %v3605_v57, 0.0  ;;  %v3606_v20 = vadd.f32 %v4480_v30, %v3562_v7 }
 0x3a4   : > { %v3616_v38 = vmax.f32 %v3608_v37, 0.0  ;;  %v6812_v62 = vadd.f32 %v3623_v31, %v3615_v32 }
 0x3a5   : > { %v3614_v26 = vmax.f32 %v3606_v20, 0.0  ;;  %v3629_v59 = vadd.f32 %v3621_v43, %v3613_v54 }
 0x3a6   : > { %3641 = vadd.xlane.f32.xlu1 %v6812_v62  ;;  %v3632_v49 = vadd.f32 %v3624_v61, %v3616_v38  ;;  %v6893_v61 = vld [vmem:[%s7010_s10] sm:$0xff]  }
 0x3a7   : > { %3637 = vadd.xlane.f32.xlu0 %v3629_v59  ;;  %v5138_v63 = vpop.f32.mrb[16].mxu0  ;;  %v3630_v33 = vadd.f32 %v3622_v45, %v3614_v26 }
 0x3a8   : > { %v3575_v34 = vpop.f32.mrb[17].mxu0  ;;  %v3611_v14 = vadd.f32 %v5138_v63, %v4480_v30 }
 0x3a9   : > { %v3609_v5 = vadd.f32 %v4480_v30, %v3575_v34  ;;  %v5139_v19 = vpop.f32.mrb[18].mxu0 }
 0x3aa   : > { %3643 = vadd.xlane.f32.xlu1 %v3632_v49  ;;  %v3578_v23 = vpop.f32.mrb[19].mxu0  ;;  %v3612_v44 = vadd.f32 %v5139_v19, %v4480_v30  ;;  %v3619_v29 = vmax.f32 %v3611_v14, 0.0 }
 0x3ab   : > { %v3617_v17 = vmax.f32 %v3609_v5, 0.0  ;;  %v3610_v35 = vadd.f32 %v4480_v30, %v3578_v23  ;;  %3639 = vadd.xlane.f32.xlu0 %v3630_v33 }
 0x3ac   : > { %v3620_v41 = vmax.f32 %v3612_v44, 0.0  ;;  %v3635_v58 = vadd.f32 %v3627_v9, %v3619_v29 }
 0x3ad   : > { %v3618_v48 = vmax.f32 %v3610_v35, 0.0  ;;  %v3633_v50 = vadd.f32 %v3625_v11, %v3617_v17 }
 0x3ae   : > { %v3636_v8 = vadd.f32 %v3628_v56, %v3620_v41 }
 0x3af   : > { %3645 = vadd.xlane.f32.xlu0 %v3633_v50  ;;  %v3634_v36 = vadd.f32 %v3626_v39, %v3618_v48 }
 0x3b1   : > { %3647 = vadd.xlane.f32.xlu1 %v3634_v36 }
 0x3b3   : > { %3649 = vadd.xlane.f32.xlu0 %v3635_v58 }
 0x3b5   : > { %3651 = vadd.xlane.f32.xlu1 %v3636_v8 }
 0x433   : > { %v3642_v12 = vpop.xlane.xlu1 %3641 }
 0x434   : > { %v3638_v52 = vpop.xlane.xlu0 %3637  ;;  %v3656_v55 = vmul.f32 0.0078125, %v3642_v12 }
 0x435   : > { %v3654_v21 = vmul.f32 0.0078125, %v3638_v52 }
 0x436   : > { %v6857_v42 = vsub.f32 %v6812_v62, %v3656_v55  ;;  %v4482_v55 = vld [vmem:[%s7007_s7] ss:$0 sm:$0xff] }
 0x437   : > { %v6854_v25 = vsub.f32 %v3629_v59, %v3654_v21  ;;  %v3644_v22 = vpop.xlane.xlu1 %3643  ;;  %v5565_v59 = vld [vmem:[%s7008_s8 + $0x38] sm:$0xff]  }
 0x438   : > { %v3640_v40 = vpop.xlane.xlu0 %3639  ;;  %v3657_v53 = vmul.f32 0.0078125, %v3644_v22  ;;  %v3672_v0 = vmul.f32 %v6857_v42, %v6857_v42  ;;  %5154 = vmatprep.subr.bf16.mxu1 %v5565_v59 }
 0x439   : > { %v3655_v2 = vmul.f32 0.0078125, %v3640_v40  ;;  %v3670_v10 = vmul.f32 %v6854_v25, %v6854_v25  ;;  %5155 = vmatpush3.bf16.msra.mxu1 %v5565_v59 }
 0x43a   : > { %v6863_v47 = vsub.f32 %v3632_v49, %v3657_v53  ;;  %5164 = vmatprep.subr.bf16.mxu1 %v6893_v61 }
 0x43b   : > { %v6861_v51 = vsub.f32 %v3630_v33, %v3655_v2  ;;  %3678 = vadd.xlane.f32.xlu0 %v3670_v10 }
 0x43c   : > { %v3646_v6 = vpop.xlane.xlu0 %3645  ;;  %v3673_v37 = vmul.f32 %v6863_v47, %v6863_v47 }
 0x43d   : > { %v3658_v46 = vmul.f32 0.0078125, %v3646_v6  ;;  %v3671_v30 = vmul.f32 %v6861_v51, %v6861_v51 }
 0x43e   : > { %v3648_v13 = vpop.xlane.xlu1 %3647 }
 0x43f   : > { %v6869_v24 = vsub.f32 %v3633_v50, %v3658_v46  ;;  %v3659_v16 = vmul.f32 0.0078125, %v3648_v13  ;;  %3682 = vadd.xlane.f32.xlu0 %v3672_v0  ;;  %3680 = vadd.xlane.f32.xlu1 %v3671_v30 }
 0x440   : > { %v3650_v57 = vpop.xlane.xlu0 %3649 }
 0x441   : > { %v6871_v60 = vsub.f32 %v3634_v36, %v3659_v16  ;;  %v3660_v31 = vmul.f32 0.0078125, %v3650_v57  ;;  %v3674_v32 = vmul.f32 %v6869_v24, %v6869_v24 }
 0x442   : > { %v3652_v7 = vpop.xlane.xlu1 %3651 }
 0x443   : > { %v6877_v43 = vsub.f32 %v3635_v58, %v3660_v31  ;;  %v3661_v54 = vmul.f32 0.0078125, %v3652_v7  ;;  %3686 = vadd.xlane.f32.xlu0 %v3674_v32  ;;  %3684 = vadd.xlane.f32.xlu1 %v3673_v37  ;;  %v3675_v62 = vmul.f32 %v6871_v60, %v6871_v60 }
 0x445   : > { %v6879_v20 = vsub.f32 %v3636_v8, %v3661_v54  ;;  %v3676_v38 = vmul.f32 %v6877_v43, %v6877_v43 }
 0x447   : > { %3690 = vadd.xlane.f32.xlu0 %v3676_v38  ;;  %3688 = vadd.xlane.f32.xlu1 %v3675_v62  ;;  %v3677_v26 = vmul.f32 %v6879_v20, %v6879_v20 }
 0x44b   : > { %3692 = vadd.xlane.f32.xlu1 %v3677_v26 }
 0x4c8   : > { %v3679_v45 = vpop.xlane.xlu0 %3678 }
 0x4c9   : > { %v3694_v63 = vmul.f32 0.0078125, %v3679_v45 }
 0x4cb   : > { %v3702_v34 = vadd.f32 1e-05, %v3694_v63 }
 0x4cc   : > { %v3683_v49 = vpop.xlane.xlu0 %3682  ;;  %v3681_v14 = vpop.xlane.xlu1 %3680 }
 0x4cd   : > { %5574 = vrsqrt.f32 %v3702_v34  ;;  %v3696_v5 = vmul.f32 0.0078125, %v3683_v49  ;;  %v3695_v19 = vmul.f32 0.0078125, %v3681_v14  ;;  %v5571_v34 = vld [vmem:[%s7010_s10 + $0x28] sm:$0xff]   ;;  %v5572_v49 = vld [vmem:[%s7010_s10 + $0x30] sm:$0xff]   ;;  %v5573_v14 = vld [vmem:[%s7010_s10 + $0x38] sm:$0xff]  }
 0x4cf   : > { %v3704_v33 = vadd.f32 1e-05, %v3696_v5  ;;  %v3703_v23 = vadd.f32 1e-05, %v3695_v19  ;;  %v4483_v5 = vld [vmem:[%s7009_s9] ss:$0 sm:$0xff] }
 0x4d0   : > { %v3687_v11 = vpop.xlane.xlu0 %3686  ;;  %v3685_v17 = vpop.xlane.xlu1 %3684 }
 0x4d1   : > { %5576 = vrsqrt.f32 %v3704_v33  ;;  %v3698_v44 = vmul.f32 0.0078125, %v3687_v11  ;;  %v3697_v35 = vmul.f32 0.0078125, %v3685_v17 }
 0x4d2   : > { %5578 = vrsqrt.f32 %v3703_v23 }
 0x4d3   : > { %v3706_v39 = vadd.f32 1e-05, %v3698_v44  ;;  %v3705_v29 = vadd.f32 1e-05, %v3697_v35 }
 0x4d4   : > { %v3691_v48 = vpop.xlane.xlu0 %3690  ;;  %v3689_v50 = vpop.xlane.xlu1 %3688 }
 0x4d5   : > { %5580 = vrsqrt.f32 %v3706_v39  ;;  %v3700_v9 = vmul.f32 0.0078125, %v3691_v48  ;;  %v3699_v41 = vmul.f32 0.0078125, %v3689_v50 }
 0x4d6   : > { %5582 = vrsqrt.f32 %v3705_v29 }
 0x4d7   : > { %v5575_v36 = vpop.eup %5574  ;;  %v3708_v56 = vadd.f32 1e-05, %v3700_v9  ;;  %v3707_v58 = vadd.f32 1e-05, %v3699_v41 }
 0x4d8   : > { %v3693_v8 = vpop.xlane.xlu1 %3692  ;;  %v3718_v4 = vmul.f32 %v5575_v36, %v6854_v25 }
 0x4d9   : > { %5584 = vrsqrt.f32 %v3708_v56  ;;  %v3701_v1 = vmul.f32 0.0078125, %v3693_v8 }
 0x4da   : > { %5586 = vrsqrt.f32 %v3707_v58  ;;  %v3733_v15 = vmul.f32 %v4481_v3, %v3718_v4 }
 0x4db   : > { %v5577_v18 = vpop.eup %5576  ;;  %v3709_v27 = vadd.f32 1e-05, %v3701_v1 }
 0x4dc   : > { %v5579_v28 = vpop.eup %5578  ;;  %v3720_v12 = vmul.f32 %v5577_v18, %v6857_v42  ;;  %v3748_v40 = vadd.f32 %v4482_v55, %v3733_v15 }
 0x4dd   : > { %5588 = vrsqrt.f32 %v3709_v27  ;;  %v3719_v52 = vmul.f32 %v5579_v28, %v6861_v51 }
 0x4de   : > { %v3735_v53 = vmul.f32 %v4481_v3, %v3720_v12 }
 0x4df   : > { %v5581_v21 = vpop.eup %5580  ;;  %v3734_v25 = vmul.f32 %v4481_v3, %v3719_v52 }
 0x4e0   : > { %v5583_v22 = vpop.eup %5582  ;;  %v3722_v6 = vmul.f32 %v5581_v21, %v6869_v24  ;;  %v3750_v13 = vadd.f32 %v4482_v55, %v3735_v53 }
 0x4e1   : > { %v3721_v2 = vmul.f32 %v5583_v22, %v6863_v47  ;;  %v3749_v10 = vadd.f32 %v4482_v55, %v3734_v25  ;;  %v5567_v47 = vld [vmem:[%s7010_s10 + $0x8] sm:$0xff]   ;;  %v4492_v25 = vld [vmem:[%s7011_s11] ss:$0 sm:$0xff] }
 0x4e2   : > { %v3737_v31 = vmul.f32 %v4481_v3, %v3722_v6 }
 0x4e3   : > { %v5585_v46 = vpop.eup %5584  ;;  %v3736_v0 = vmul.f32 %v4481_v3, %v3721_v2  ;;  %v3756_v42 = vpack.c.bf16 %v3749_v10, %v3748_v40 }
 0x4e4   : > { %v5587_v30 = vpop.eup %5586  ;;  %v3724_v51 = vmul.f32 %v5585_v46, %v6877_v43  ;;  %v3752_v38 = vadd.f32 %v4482_v55, %v3737_v31 }
 0x4e5   : > { %5156 = vmatprep.mubr.bf16.mxu1 %v3756_v42  ;;  %v3751_v16 = vadd.f32 %v4482_v55, %v3736_v0  ;;  %v3723_v57 = vmul.f32 %v5587_v30, %v6871_v60  ;;  %v5568_v60 = vld [vmem:[%s7010_s10 + $0x10] sm:$0xff]  }
 0x4e6   : > { %v3739_v54 = vmul.f32 %v4481_v3, %v3724_v51 }
 0x4e7   : > { %v5589_v32 = vpop.eup %5588  ;;  %v3757_v37 = vpack.c.bf16 %v3751_v16, %v3750_v13  ;;  %v3738_v7 = vmul.f32 %v4481_v3, %v3723_v57 }
 0x4e8   : > { %v3725_v24 = vmul.f32 %v5589_v32, %v6879_v20  ;;  %v3754_v59 = vadd.f32 %v4482_v55, %v3739_v54  ;;  %v5569_v20 = vld [vmem:[%s7010_s10 + $0x18] sm:$0xff]  }
 0x4e9   : > { %5157 = vmatmul.mubr.bf16.vlgmr.msra.gmra.mrb[116].mxu1 %v3757_v37  ;;  %v3753_v62 = vadd.f32 %v4482_v55, %v3738_v7 }
 0x4ea   : > { %v3740_v43 = vmul.f32 %v4481_v3, %v3725_v24  ;;  %5165 = vmatpush3.bf16.msra.mxu1 %v6893_v61  ;;  %v5570_v61 = vld [vmem:[%s7010_s10 + $0x20] sm:$0xff]  }
 0x4eb   : > { %v3758_v26 = vpack.c.bf16 %v3753_v62, %v3752_v38  ;;  %5166 = vmatprep.subr.bf16.mxu1 %v5567_v47 }
 0x4ec   : > { %v3755_v45 = vadd.f32 %v4482_v55, %v3740_v43 }
 0x4ed   : > { %5160 = vmatprep.mubr.bf16.mxu1 %v3758_v26 }
 0x4ee   : > { %v3759_v63 = vpack.c.bf16 %v3755_v45, %v3754_v59  ;;  %5167 = vmatpush3.bf16.msra.mxu1 %v5567_v47 }
 0x4ef   : > { %5168 = vmatprep.subr.bf16.mxu1 %v5568_v60 }
 0x4f1   : > { %5161 = vmatmul.mubr.bf16.gmra.mrb[120].mxu1 %v3759_v63 }
 0x4f2   : > { %5169 = vmatpush3.bf16.msra.mxu1 %v5568_v60 }
 0x4f3   : > { %5170 = vmatprep.subr.bf16.mxu1 %v5569_v20 }
 0x4f6   : > { %5171 = vmatpush3.bf16.msra.mxu1 %v5569_v20 }
 0x4f7   : > { %5172 = vmatprep.subr.bf16.mxu1 %v5570_v61 }
 0x4fa   : > { %5173 = vmatpush3.bf16.msra.mxu1 %v5570_v61 }
 0x4fb   : > { %5174 = vmatprep.subr.bf16.mxu1 %v5571_v34 }
 0x4fe   : > { %5175 = vmatpush3.bf16.msra.mxu1 %v5571_v34 }
 0x4ff   : > { %5176 = vmatprep.subr.bf16.mxu1 %v5572_v49 }
 0x502   : > { %5177 = vmatpush3.bf16.msra.mxu1 %v5572_v49 }
 0x503   : > { %5178 = vmatprep.subr.bf16.mxu1 %v5573_v14 }
 0x506   : > { %5179 = vmatpush3.bf16.msra.mxu1 %v5573_v14 }
 0x5bc   : > { %v5158_v19 = vpop.f32.mrb[116].mxu1 }
 0x5bd   : > { %v3874_v33 = vadd.f32 %v5158_v19, %v4483_v5  ;;  %v3865_v23 = vpop.f32.mrb[117].mxu1 }
 0x5be   : > { %v3866_v11 = vadd.f32 %v4483_v5, %v3865_v23  ;;  %v5159_v17 = vpop.f32.mrb[118].mxu1 }
 0x5bf   : > { %v3877_v44 = vadd.f32 %v5159_v17, %v4483_v5  ;;  %v3868_v35 = vpop.f32.mrb[119].mxu1  ;;  %v3898_v29 = vmax.f32 %v3874_v33, 0.0 }
 0x5c0   : > { %v3869_v39 = vadd.f32 %v4483_v5, %v3868_v35  ;;  %v3896_v50 = vmax.f32 %v3866_v11, 0.0 }
 0x5c1   : > { %v3899_v48 = vmax.f32 %v3877_v44, 0.0 }
 0x5c2   : > { %v3897_v9 = vmax.f32 %v3869_v39, 0.0 }
 0x5c3   : > { %v3905_v41 = vpack.c.bf16 %v3899_v48, %v3898_v29 }
 0x5c4   : > { %v3904_v36 = vpack.c.bf16 %v3897_v9, %v3896_v50  ;;  %v5162_v56 = vpop.f32.mrb[120].mxu1 }
 0x5c5   : > { %v3890_v58 = vadd.f32 %v5162_v56, %v4483_v5  ;;  %v3881_v8 = vpop.f32.mrb[121].mxu1 }
 0x5c6   : > { %v3882_v4 = vadd.f32 %v4483_v5, %v3881_v8  ;;  %v5163_v3 = vpop.f32.mrb[122].mxu1  ;;  %5180 = vmatprep.mubr.bf16.mxu1 %v3904_v36 }
 0x5c7   : > { %v3893_v1 = vadd.f32 %v5163_v3, %v4483_v5  ;;  %v3884_v18 = vpop.f32.mrb[123].mxu1  ;;  %5181 = vmatmul.mubr.bf16.vlgmr.msra.gmra.mrb[124].mxu1 %v3905_v41  ;;  %v3902_v28 = vmax.f32 %v3890_v58, 0.0 }
 0x5c8   : > { %v3885_v27 = vadd.f32 %v4483_v5, %v3884_v18  ;;  %v3900_v12 = vmax.f32 %v3882_v4, 0.0 }
 0x5c9   : > { %v3903_v15 = vmax.f32 %v3893_v1, 0.0 }
 0x5ca   : > { %v3901_v52 = vmax.f32 %v3885_v27, 0.0 }
 0x5cb   : > { %v3907_v55 = vpack.c.bf16 %v3903_v15, %v3902_v28 }
 0x5cc   : > { %v3906_v21 = vpack.c.bf16 %v3901_v52, %v3900_v12 }
 0x5ce   : > { %5184 = vmatprep.mubr.bf16.mxu1 %v3906_v21 }
 0x5cf   : > { %5185 = vmatmul.mubr.bf16.gmra.mrb[128].mxu1 %v3907_v55 }
 0x69a   : > { %v5182_v22 = vpop.f32.mrb[124].mxu1 }
 0x69b   : > { %v4022_v40 = vadd.f32 %v5182_v22, %v4492_v25  ;;  %v4013_v53 = vpop.f32.mrb[125].mxu1 }
 0x69c   : > { %v4014_v2 = vadd.f32 %v4492_v25, %v4013_v53  ;;  %v5183_v10 = vpop.f32.mrb[126].mxu1 }
 0x69d   : > { %4046 = vst.msk [vmem:[%s406_s16 + $0x10] sm:$0xff] %vm1414_vm0, %v4022_v40  ;;  %v4025_v6 = vadd.f32 %v5183_v10, %v4492_v25  ;;  %v4016_v46 = vpop.f32.mrb[127].mxu1 }
 0x69e   : > { %4044 = vst.msk [vmem:[%s406_s16] sm:$0xff] %vm1414_vm0, %v4014_v2  ;;  %v4017_v0 = vadd.f32 %v4492_v25, %v4016_v46 }
 0x69f   : > { %4047 = vst.msk [vmem:[%s406_s16 + $0x18] sm:$0xff] %vm1414_vm0, %v4025_v6 }
 0x6a0   : > { %4045 = vst.msk [vmem:[%s406_s16 + $0x8] sm:$0xff] %vm1414_vm0, %v4017_v0 }
 0x6a2   : > { %v5186_v42 = vpop.f32.mrb[128].mxu1 }
 0x6a3   : > { %v4038_v30 = vadd.f32 %v5186_v42, %v4492_v25  ;;  %v4029_v51 = vpop.f32.mrb[129].mxu1 }
 0x6a4   : > { %v4030_v13 = vadd.f32 %v4492_v25, %v4029_v51  ;;  %v5187_v16 = vpop.f32.mrb[130].mxu1 }
 0x6a5   : > { %4050 = vst.msk [vmem:[%s406_s16 + $0x30] sm:$0xff] %vm1414_vm0, %v4038_v30  ;;  %v4041_v57 = vadd.f32 %v5187_v16, %v4492_v25  ;;  %v4032_v31 = vpop.f32.mrb[131].mxu1 }
 0x6a6   : > { %4048 = vst.msk [vmem:[%s406_s16 + $0x20] sm:$0xff] %vm1414_vm0, %v4030_v13  ;;  %v4033_v32 = vadd.f32 %v4492_v25, %v4032_v31 }
 0x6a7   : > { %4051 = vst.msk [vmem:[%s406_s16 + $0x38] sm:$0xff] %vm1414_vm0, %v4041_v57 }
 0x6a8   : > { %4049 = vst.msk [vmem:[%s406_s16 + $0x28] sm:$0xff] %vm1414_vm0, %v4033_v32 }
 0x6a9   : > { %5603 = shalt.err (!%p5600_p3)
}
 0x6aa   : > { %s5604_s28 = scalar_lea.hbm %s6950_s26, 1024  ;;  %s5608_s20 = scalar_lea.hbm %s7012_s12, 2048 }
 0x6ab   : > { %p5605_p4 = scmp.ne.s32.totalorder %s6950_s26, %s5604_s28  ;;  %p5609_p9 = scmp.lt.u32.totalorder %s6950_s26, %s7012_s12 }
 0x6ac   : > { %p5610_p10 = scmp.lt.u32.totalorder %s5608_s20, %s5604_s28  ;;  %p5612_p12 = scmp.lt.u32.totalorder %s5604_s28, %s6950_s26 }
 0x6ad   : > { %p5606_p7 = pnand %p5605_p4, %p5761_p5 }
 0x6ae   : > { %p5611_p11 = por %p5610_p10, %p5609_p9 }
 0x6af   : > { %p5607_p8 = pneg %p5606_p7 }
 0x6b0   : > { %p5613_p13 = por %p5612_p12, %p5611_p11 }
 0x6b2   : > { %p5614_p0 = pnand %p5613_p13, %p5607_p8 }
 0x6b4   : > { %5617 = shalt.err (!%p5614_p0)
}
 0x6b5   : > { %s5656_s30 = smov 128   ;;  %s5657_s29 = smov 8  }
 0x6b6   : > { %5324 = dma.vmem_to_hbm [thread:$0]  (%p5761_p5), %s6952_s19, 1024, %s6950_s26, %s6959_s25, %s5656_s30, %s5656_s30, %s5657_s29  }
 0x6b7 PF: > { %p5330_p1 = scmp.ge.s32.totalorder %s5652_s24, 2  ;;  %s4081_s15 = sand.u32 1, %s5640_s21  }
 0x6b8   : > { %s4082_s28 = scalar_lea.sflag [#allocation4], %s4081_s15 }
 0x6b9   : > { %p5327_p2 = pnand %p5330_p1, %p5765_p6 }
 0x6bb   : > { %5635 = dma.done.wait (!%p5327_p2), %s4082_s28, 1024  }
 0x6bc   : > { %5637 = vsyncadd (!%p5327_p2), %s4082_s28, 4294966272  ;;  %s7041_s16 = sld [smem:[#allocation6_spill]]  ;;  %s7042_s23 = sld [smem:[#allocation7_spill]] }
 0x6bd   : > { %p22_p3 = scmp.ge.s32.totalorder %s5748_s27, 4   ;;  %s7043_s21 = smov %s5644_s22 }
 0x6be   : > { %s7045_s24 = smov %s5748_s27 }
 0x6bf   :  { %24 = sbr.rel (!%p22_p3) target bundleno = 3 (0x3), region = 126 }
 0x6c2   : > { %s7044_s22 = smov %s7041_s16 }
 0x6c6   :  { %4087 = vsyncpa [#allocation4], 1 }
 0x6c7   :  { %4089 = vsyncpa [#allocation4 + $0x1], 1 }

</bundles_post_ra>
